<compile_context>
chip_gen: v7x
topology: tpu7x:2x2x1
jax: 0.10.0
libtpu: 0.0.40
codegen_flags: <defaults>
</compile_context>

<pallas_src>
import math

import jax
import jax.numpy as jnp
from jax.experimental import pallas as pl
from jax.experimental.pallas import tpu as pltpu

N_NODES = 64
IN_DIM = 9
HIDDEN = 80
HEADS = 8
HEAD_DIM = HIDDEN // HEADS          # 10
N_LAYERS = 10
N_CLASSES = 4

H_PAD = 128                         # lane-dense padded hidden width
HD_PAD = H_PAD // HEADS             # 16: per-head padded width
QKV_W = 3 * H_PAD                   # 384: [Q | K | V] blocks of 128 lanes each
SCALE = 1.0 / math.sqrt(HEAD_DIM)


# ------------------------------ fused kernel ------------------------------- #

def _net_kernel(x_ref, a_ref, eb_ref,
                wqkv_ref, wo_ref, bo_ref, w1_ref, b1_ref, w2_ref, b2_ref,
                mw1_ref, mb1_ref, mw2_ref, mb2_ref, mw3_ref, mb3_ref,
                o_ref, h_ref, heads_ref):
    # embedding_h weight is eye(80, 9): h0 = [x | 0] + b (already padded to 128
    # lanes; lane 127 carries the constant 1 driving the in-MXU row-sum trick).
    h_ref[...] = x_ref[...] + eb_ref[...]

    def layer(l, carry):
        A = a_ref[...]                                           # (N_dst, N_src)
        hb = h_ref[...].astype(jnp.bfloat16)                     # (N, 128)

        # fused Q/K/V projection: one MXU push, K = 128
        qkv = jnp.dot(hb, wqkv_ref[l],
                      preferred_element_type=jnp.float32)        # (N, 384) f32
        qkvb = qkv.astype(jnp.bfloat16)                          # 12 vregs live

        for hd in range(HEADS):                  # unrolled per-head attention
            cq = hd * HD_PAD
            ck = H_PAD + hd * HD_PAD
            cv = 2 * H_PAD + hd * HD_PAD
            q = qkvb[:, cq:cq + HD_PAD]                          # (N, 16)
            k = qkvb[:, ck:ck + HD_PAD]                          # (N, 16)
            v = qkvb[:, cv:cv + HD_PAD]                          # col 10 == 1.0
            # s[j, i] = Q_j . K_i  (dst, src): NT matmul, contraction on last dims
            s = jax.lax.dot_general(q, k, (((1,), (1,)), ((), ())),
                                    preferred_element_type=jnp.float32) * SCALE
            p = jnp.exp(jnp.clip(s, -5.0, 5.0)) * A              # masked scores
            # p @ [V | 1 | 0..] -> [wV | z | 0..]: row-sum folded into the MXU.
            pv = jnp.dot(p.astype(jnp.bfloat16), v,
                         preferred_element_type=jnp.float32)     # (N, 16)
            inv_z = pl.reciprocal(pv[:, HEAD_DIM:HEAD_DIM + 1] + 1e-6,
                                  approx=True)                   # EUP slot
            heads_ref[:, cq:cq + HD_PAD] = pv * inv_z            # stage head

        # fused O projection: ONE (64,128)@(128,128) matmul over all heads
        # (rows of Wo at padded head columns are zero, so the garbage/ones
        # columns of heads_ref contribute nothing).
        attn = jnp.dot(heads_ref[...].astype(jnp.bfloat16), wo_ref[l],
                       preferred_element_type=jnp.float32)
        h1 = h_ref[...] + attn + bo_ref[l]                       # O bias + res 1

        # FFN + residual 2
        f = jnp.maximum(
            jnp.dot(h1.astype(jnp.bfloat16), w1_ref[l],
                    preferred_element_type=jnp.float32) + b1_ref[l], 0.0)
        h_ref[...] = h1 + jnp.dot(f.astype(jnp.bfloat16), w2_ref[l],
                                  preferred_element_type=jnp.float32) + b2_ref[l]
        return carry

    jax.lax.fori_loop(0, N_LAYERS, layer, 0)

    # MLPReadout(80 -> 40 -> relu -> 20 -> relu -> 4); output padded to 128
    # lanes for an unmasked, lane-dense store (wrapper slices to 4).
    hb = h_ref[...].astype(jnp.bfloat16)
    y = jnp.maximum(jnp.dot(hb, mw1_ref[...],
                            preferred_element_type=jnp.float32) + mb1_ref[...], 0.0)
    y = jnp.maximum(jnp.dot(y.astype(jnp.bfloat16), mw2_ref[...],
                            preferred_element_type=jnp.float32) + mb2_ref[...], 0.0)
    o_ref[...] = (jnp.dot(y.astype(jnp.bfloat16), mw3_ref[...],
                          preferred_element_type=jnp.float32) + mb3_ref[...])


# ------------------------------- wrapper ----------------------------------- #

def forward(params, x, A):
    n = x.shape[0]
    x_pad = jnp.zeros((n, H_PAD), jnp.float32)
    x_pad = x_pad.at[:, :IN_DIM].set(x.astype(jnp.float32))
    x_pad = x_pad.at[:, H_PAD - 1].set(1.0)   # constant-1 feature -> in-MXU row-sum

    vmem = lambda: pl.BlockSpec(memory_space=pltpu.MemorySpace.VMEM)

    out = pl.pallas_call(
        _net_kernel,
        out_shape=jax.ShapeDtypeStruct((N_NODES, H_PAD), jnp.float32),
        in_specs=[vmem() for _ in range(16)],     # everything resident in VMEM
        out_specs=vmem(),
        scratch_shapes=[
            pltpu.VMEM((N_NODES, H_PAD), jnp.float32),   # h (residual stream)
            pltpu.VMEM((N_NODES, H_PAD), jnp.float32),   # per-head staging
        ],
    )(x_pad, A, params["emb_b"],
      params["wqkv"], params["wo"], params["bo"],
      params["w1"], params["b1"], params["w2"], params["b2"],
      params["mw1"], params["mb1"], params["mw2"], params["mb2"],
      params["mw3"], params["mb3"])
    return out[:, :N_CLASSES]


# ---------------------------- parameter init -------------------------------- #

def init_params(key):
    keys = iter(jax.random.split(key, 128))

    def rnd(shape, std):
        return (std * jax.random.normal(next(keys), shape)).astype(jnp.float32)

    s_h = 1.0 / math.sqrt(HIDDEN)
    s_2h = 1.0 / math.sqrt(2 * HIDDEN)

    def place_heads(w):          # (HIDDEN, HEADS, HEAD_DIM) -> (H_PAD, H_PAD)
        full = jnp.zeros((H_PAD, HEADS, HD_PAD), jnp.float32)
        full = full.at[:HIDDEN, :, :HEAD_DIM].set(w)
        return full.reshape(H_PAD, HEADS * HD_PAD)

    params = {
        # embedding weight is eye(80, 9) -> folded away; only the bias remains.
        "emb_b": jnp.zeros((1, H_PAD), jnp.float32).at[:, :HIDDEN].set(
            rnd((1, HIDDEN), 0.01)),
    }

    # each head's V block gets a 1.0 in its padding column HEAD_DIM, driven by
    # the constant-1 input lane (row H_PAD-1): p @ V then also yields z.
    ones_cols = 2 * H_PAD + jnp.arange(HEADS) * HD_PAD + HEAD_DIM

    wqkv_l, wo_l, bo_l, w1_l, b1_l, w2_l, b2_l = ([] for _ in range(7))
    for _ in range(N_LAYERS):
        wq = place_heads(rnd((HIDDEN, HEADS, HEAD_DIM), s_h))
        wk = place_heads(rnd((HIDDEN, HEADS, HEAD_DIM), s_h))
        wv = place_heads(rnd((HIDDEN, HEADS, HEAD_DIM), s_h))
        wqkv = jnp.concatenate([wq, wk, wv], axis=1)             # (128, 384)
        wqkv = wqkv.at[H_PAD - 1, ones_cols].set(1.0)
        wqkv_l.append(wqkv)

        wo = jnp.zeros((HEADS, HD_PAD, H_PAD), jnp.float32)
        wo = wo.at[:, :HEAD_DIM, :HIDDEN].set(rnd((HEADS, HEAD_DIM, HIDDEN), s_h))
        wo_l.append(wo.reshape(H_PAD, H_PAD))

        bo_l.append(jnp.zeros((1, H_PAD), jnp.float32).at[:, :HIDDEN].set(
            rnd((1, HIDDEN), 0.01)))
        w1_l.append(jnp.zeros((H_PAD, 2 * HIDDEN), jnp.float32).at[:HIDDEN].set(
            rnd((HIDDEN, 2 * HIDDEN), s_h)))
        b1_l.append(rnd((1, 2 * HIDDEN), 0.01))
        w2_l.append(jnp.zeros((2 * HIDDEN, H_PAD), jnp.float32).at[:, :HIDDEN].set(
            rnd((2 * HIDDEN, HIDDEN), s_2h)))
        b2_l.append(jnp.zeros((1, H_PAD), jnp.float32).at[:, :HIDDEN].set(
            rnd((1, HIDDEN), 0.01)))

    params["wqkv"] = jnp.stack(wqkv_l).astype(jnp.bfloat16)
    params["wo"] = jnp.stack(wo_l).astype(jnp.bfloat16)
    params["bo"] = jnp.stack(bo_l)
    params["w1"] = jnp.stack(w1_l).astype(jnp.bfloat16)
    params["b1"] = jnp.stack(b1_l)
    params["w2"] = jnp.stack(w2_l).astype(jnp.bfloat16)
    params["b2"] = jnp.stack(b2_l)

    # MLPReadout(80, 4): 80 -> 40 -> 20 -> 4 (bf16 weights; output padded to 128)
    params["mw1"] = jnp.zeros((H_PAD, HIDDEN // 2), jnp.float32).at[:HIDDEN].set(
        rnd((HIDDEN, HIDDEN // 2), s_h)).astype(jnp.bfloat16)
    params["mb1"] = rnd((1, HIDDEN // 2), 0.01)
    params["mw2"] = rnd((HIDDEN // 2, HIDDEN // 4),
                        1.0 / math.sqrt(HIDDEN // 2)).astype(jnp.bfloat16)
    params["mb2"] = rnd((1, HIDDEN // 4), 0.01)
    params["mw3"] = jnp.zeros((HIDDEN // 4, H_PAD), jnp.float32).at[:, :N_CLASSES].set(
        rnd((HIDDEN // 4, N_CLASSES), 1.0 / math.sqrt(HIDDEN // 4))).astype(jnp.bfloat16)
    params["mb3"] = jnp.zeros((1, H_PAD), jnp.float32).at[:, :N_CLASSES].set(
        rnd((1, N_CLASSES), 0.01))
    return params


# ----------------------- pure-JAX reference (same math) --------------------- #

@jax.jit
def reference_forward(params, x, A):
    # Mirror the kernel's bf16-operand / f32-accumulate matmuls WITHOUT issuing
    # bf16 x bf16 dots (unsupported on some non-TPU executors): quantize to
    # bf16, upcast, and dot in f32 -- numerically equivalent to the MXU path.
    def q16(a):
        return a.astype(jnp.bfloat16).astype(jnp.float32)

    def bdot(a, b):
        return jnp.dot(q16(a), q16(b))

    h = jnp.concatenate(
        [x, jnp.zeros((x.shape[0], HIDDEN - IN_DIM), jnp.float32)], axis=1)
    h = h + params["emb_b"][0, :HIDDEN]
    for l in range(N_LAYERS):
        wqkv = params["wqkv"][l].astype(jnp.float32)
        heads = []
        for hd in range(HEADS):
            cq, ck, cv = hd * HD_PAD, H_PAD + hd * HD_PAD, 2 * H_PAD + hd * HD_PAD
            q = bdot(h, wqkv[:HIDDEN, cq:cq + HEAD_DIM])
            k = bdot(h, wqkv[:HIDDEN, ck:ck + HEAD_DIM])
            v = bdot(h, wqkv[:HIDDEN, cv:cv + HEAD_DIM])
            s = bdot(q, k.T) * SCALE
            p = jnp.exp(jnp.clip(s, -5.0, 5.0)) * A
            z = jnp.sum(q16(p), axis=1, keepdims=True)
            heads.append(bdot(p, v) / (z + 1e-6))
        wo = params["wo"][l].astype(jnp.float32).reshape(HEADS, HD_PAD, H_PAD)
        wo = wo[:, :HEAD_DIM, :HIDDEN].reshape(HIDDEN, HIDDEN)
        h = h + bdot(jnp.concatenate(heads, axis=1), wo) + params["bo"][l][0, :HIDDEN]
        w1 = params["w1"][l].astype(jnp.float32)[:HIDDEN]
        w2 = params["w2"][l].astype(jnp.float32)[:, :HIDDEN]
        f = jnp.maximum(bdot(h, w1) + params["b1"][l][0], 0.0)
        h = h + bdot(f, w2) + params["b2"][l][0, :HIDDEN]
    y = jnp.maximum(bdot(h, params["mw1"].astype(jnp.float32)[:HIDDEN])
                    + params["mb1"][0], 0.0)
    y = jnp.maximum(bdot(y, params["mw2"].astype(jnp.float32))
                    + params["mb2"][0], 0.0)
    return (bdot(y, params["mw3"].astype(jnp.float32)[:, :N_CLASSES])
            + params["mb3"][0, :N_CLASSES])


# --------------------------------- main -------------------------------------- #

if __name__ == "__main__":
    key = jax.random.PRNGKey(0)
    k_param, k_x, k_adj = jax.random.split(key, 3)

    params = init_params(k_param)

    # node features g.ndata['h']: (N, 9)
    x = jax.random.normal(k_x, (N_NODES, IN_DIM), dtype=jnp.float32)

    # random directed graph + self-loops, stored as a dense (dst, src) mask.
    A = (jax.random.uniform(k_adj, (N_NODES, N_NODES)) < 0.2).astype(jnp.float32)
    A = jnp.maximum(A, jnp.eye(N_NODES, dtype=jnp.float32))

    out = jax.block_until_ready(forward(params, x, A))
    assert out.shape == (N_NODES, N_CLASSES), out.shape
    assert bool(jnp.all(jnp.isfinite(out)))

    # correctness vs. a plain-JAX implementation of the same (bf16-quantized)
    # math; remaining drift comes from pl.reciprocal(approx=True) and
    # accumulation order.
    ref = jax.block_until_ready(reference_forward(params, x, A))
    err = float(jnp.max(jnp.abs(out - ref)))
    tol = 0.1 * (1.0 + float(jnp.max(jnp.abs(ref))))
    assert err <= tol, f"kernel/reference mismatch: err={err}, tol={tol}"

    print("KERNEL_OK")
</pallas_src>

<mosaic_0001>
module attributes {stable_mosaic.version = 11 : i64} {
  func.func @_net_kernel(%arg0: memref<64x128xf32, #tpu.memory_space<vmem>>, %arg1: memref<64x64xf32, #tpu.memory_space<vmem>>, %arg2: memref<1x128xf32, #tpu.memory_space<vmem>>, %arg3: memref<10x128x384xbf16, #tpu.memory_space<vmem>>, %arg4: memref<10x128x128xbf16, #tpu.memory_space<vmem>>, %arg5: memref<10x1x128xf32, #tpu.memory_space<vmem>>, %arg6: memref<10x128x160xbf16, #tpu.memory_space<vmem>>, %arg7: memref<10x1x160xf32, #tpu.memory_space<vmem>>, %arg8: memref<10x160x128xbf16, #tpu.memory_space<vmem>>, %arg9: memref<10x1x128xf32, #tpu.memory_space<vmem>>, %arg10: memref<128x40xbf16, #tpu.memory_space<vmem>>, %arg11: memref<1x40xf32, #tpu.memory_space<vmem>>, %arg12: memref<40x20xbf16, #tpu.memory_space<vmem>>, %arg13: memref<1x20xf32, #tpu.memory_space<vmem>>, %arg14: memref<20x128xbf16, #tpu.memory_space<vmem>>, %arg15: memref<1x128xf32, #tpu.memory_space<vmem>>, %arg16: memref<64x128xf32, #tpu.memory_space<vmem>>, %arg17: memref<64x128xf32, #tpu.memory_space<vmem>>, %arg18: memref<64x128xf32, #tpu.memory_space<vmem>>) attributes {dimension_semantics = [], scalar_prefetch = 0 : i64, scratch_operands = 2 : i64, tpu.core_type = #tpu.core_type<tc>} {
    %c0 = arith.constant 0 : index
    %c0_0 = arith.constant 0 : index
    %0 = vector.load %arg0[%c0, %c0_0] : memref<64x128xf32, #tpu.memory_space<vmem>>, vector<64x128xf32>
    %c0_1 = arith.constant 0 : index
    %c0_2 = arith.constant 0 : index
    %1 = vector.load %arg2[%c0_1, %c0_2] : memref<1x128xf32, #tpu.memory_space<vmem>>, vector<1x128xf32>
    %2 = vector.broadcast %1 : vector<1x128xf32> to vector<64x128xf32>
    %3 = arith.addf %0, %2 : vector<64x128xf32>
    %c0_3 = arith.constant 0 : index
    %c0_4 = arith.constant 0 : index
    %4 = vector.load %arg17[%c0_3, %c0_4] : memref<64x128xf32, #tpu.memory_space<vmem>>, vector<64x128xf32>
    tpu.vector_store %arg17[%c0_3, %c0_4], %3 {strides = array<i32>} : memref<64x128xf32, #tpu.memory_space<vmem>>, vector<64x128xf32>,
    %c0_i32 = arith.constant 0 : i32
    %c10_i32 = arith.constant 10 : i32
    %5 = arith.addi %c0_i32, %c10_i32 : i32
    %c1_i32 = arith.constant 1 : i32
    scf.for %arg19 = %c0_i32 to %5 step %c1_i32  : i32 {
      %c0_26 = arith.constant 0 : index
      %c0_27 = arith.constant 0 : index
      %30 = vector.load %arg1[%c0_26, %c0_27] : memref<64x64xf32, #tpu.memory_space<vmem>>, vector<64x64xf32>
      %c0_28 = arith.constant 0 : index
      %c0_29 = arith.constant 0 : index
      %31 = vector.load %arg17[%c0_28, %c0_29] : memref<64x128xf32, #tpu.memory_space<vmem>>, vector<64x128xf32>
      %32 = arith.truncf %31 : vector<64x128xf32> to vector<64x128xbf16>
      %33 = arith.index_cast %arg19 : i32 to index
      %c0_30 = arith.constant 0 : index
      %c0_31 = arith.constant 0 : index
      %34 = vector.load %arg3[%33, %c0_30, %c0_31] : memref<10x128x384xbf16, #tpu.memory_space<vmem>>, vector<1x128x384xbf16>
      %35 = vector.shape_cast %34 : vector<1x128x384xbf16> to vector<128x384xbf16>
      %cst_32 = arith.constant dense<0.000000e+00> : vector<64x384xf32>
      %36 = tpu.matmul %32, %35, %cst_32 {dimension_numbers = #tpu.dot_dimension_numbers<[1], [0], [0], [1], [0, 0, 1, 1], [], []>} : vector<64x128xbf16>, vector<128x384xbf16>, vector<64x384xf32> -> vector<64x384xf32>
      %37 = arith.truncf %36 : vector<64x384xf32> to vector<64x384xbf16>
      %38 = vector.extract_strided_slice %37 {offsets = [0, 0], sizes = [64, 16], strides = [1, 1]} : vector<64x384xbf16> to vector<64x16xbf16>
      %39 = vector.extract_strided_slice %37 {offsets = [0, 128], sizes = [64, 16], strides = [1, 1]} : vector<64x384xbf16> to vector<64x16xbf16>
      %40 = vector.extract_strided_slice %37 {offsets = [0, 256], sizes = [64, 16], strides = [1, 1]} : vector<64x384xbf16> to vector<64x16xbf16>
      %cst_33 = arith.constant dense<0.000000e+00> : vector<64x64xf32>
      %41 = tpu.matmul %38, %39, %cst_33 {dimension_numbers = #tpu.dot_dimension_numbers<[1], [1], [0], [0], [0, 0, 1, 0], [], []>} : vector<64x16xbf16>, vector<64x16xbf16>, vector<64x64xf32> -> vector<64x64xf32>
      %cst_34 = arith.constant 0.316227764 : f32
      %42 = vector.broadcast %cst_34 : f32 to vector<64x64xf32>
      %43 = arith.mulf %41, %42 : vector<64x64xf32>
      %cst_35 = arith.constant -5.000000e+00 : f32
      %cst_36 = arith.constant 5.000000e+00 : f32
      %44 = vector.broadcast %cst_35 : f32 to vector<64x64xf32>
      %45 = arith.maximumf %44, %43 : vector<64x64xf32>
      %46 = vector.broadcast %cst_36 : f32 to vector<64x64xf32>
      %47 = arith.minimumf %46, %45 : vector<64x64xf32>
      %48 = math.exp %47 : vector<64x64xf32>
      %49 = arith.mulf %48, %30 : vector<64x64xf32>
      %50 = arith.truncf %49 : vector<64x64xf32> to vector<64x64xbf16>
      %cst_37 = arith.constant dense<0.000000e+00> : vector<64x16xf32>
      %51 = tpu.matmul %50, %40, %cst_37 {dimension_numbers = #tpu.dot_dimension_numbers<[1], [0], [0], [1], [0, 0, 1, 1], [], []>} : vector<64x64xbf16>, vector<64x16xbf16>, vector<64x16xf32> -> vector<64x16xf32>
      %52 = vector.extract_strided_slice %51 {offsets = [0, 10], sizes = [64, 1], strides = [1, 1]} : vector<64x16xf32> to vector<64x1xf32>
      %cst_38 = arith.constant 9.99999997E-7 : f32
      %53 = vector.broadcast %cst_38 : f32 to vector<64x1xf32>
      %54 = arith.addf %52, %53 : vector<64x1xf32>
      %55 = tpu.reciprocal %54 {approx = true} : vector<64x1xf32> -> vector<64x1xf32>
      %56 = vector.broadcast %55 : vector<64x1xf32> to vector<64x16xf32>
      %57 = arith.mulf %51, %56 : vector<64x16xf32>
      %c0_39 = arith.constant 0 : index
      %c0_40 = arith.constant 0 : index
      %58 = vector.load %arg18[%c0_39, %c0_40] : memref<64x128xf32, #tpu.memory_space<vmem>>, vector<64x16xf32>
      tpu.vector_store %arg18[%c0_39, %c0_40], %57 {strides = array<i32>} : memref<64x128xf32, #tpu.memory_space<vmem>>, vector<64x16xf32>,
      %59 = vector.extract_strided_slice %37 {offsets = [0, 16], sizes = [64, 16], strides = [1, 1]} : vector<64x384xbf16> to vector<64x16xbf16>
      %60 = vector.extract_strided_slice %37 {offsets = [0, 144], sizes = [64, 16], strides = [1, 1]} : vector<64x384xbf16> to vector<64x16xbf16>
      %61 = vector.extract_strided_slice %37 {offsets = [0, 272], sizes = [64, 16], strides = [1, 1]} : vector<64x384xbf16> to vector<64x16xbf16>
      %cst_41 = arith.constant dense<0.000000e+00> : vector<64x64xf32>
      %62 = tpu.matmul %59, %60, %cst_41 {dimension_numbers = #tpu.dot_dimension_numbers<[1], [1], [0], [0], [0, 0, 1, 0], [], []>} : vector<64x16xbf16>, vector<64x16xbf16>, vector<64x64xf32> -> vector<64x64xf32>
      %cst_42 = arith.constant 0.316227764 : f32
      %63 = vector.broadcast %cst_42 : f32 to vector<64x64xf32>
      %64 = arith.mulf %62, %63 : vector<64x64xf32>
      %cst_43 = arith.constant -5.000000e+00 : f32
      %cst_44 = arith.constant 5.000000e+00 : f32
      %65 = vector.broadcast %cst_43 : f32 to vector<64x64xf32>
      %66 = arith.maximumf %65, %64 : vector<64x64xf32>
      %67 = vector.broadcast %cst_44 : f32 to vector<64x64xf32>
      %68 = arith.minimumf %67, %66 : vector<64x64xf32>
      %69 = math.exp %68 : vector<64x64xf32>
      %70 = arith.mulf %69, %30 : vector<64x64xf32>
      %71 = arith.truncf %70 : vector<64x64xf32> to vector<64x64xbf16>
      %cst_45 = arith.constant dense<0.000000e+00> : vector<64x16xf32>
      %72 = tpu.matmul %71, %61, %cst_45 {dimension_numbers = #tpu.dot_dimension_numbers<[1], [0], [0], [1], [0, 0, 1, 1], [], []>} : vector<64x64xbf16>, vector<64x16xbf16>, vector<64x16xf32> -> vector<64x16xf32>
      %73 = vector.extract_strided_slice %72 {offsets = [0, 10], sizes = [64, 1], strides = [1, 1]} : vector<64x16xf32> to vector<64x1xf32>
      %cst_46 = arith.constant 9.99999997E-7 : f32
      %74 = vector.broadcast %cst_46 : f32 to vector<64x1xf32>
      %75 = arith.addf %73, %74 : vector<64x1xf32>
      %76 = tpu.reciprocal %75 {approx = true} : vector<64x1xf32> -> vector<64x1xf32>
      %77 = vector.broadcast %76 : vector<64x1xf32> to vector<64x16xf32>
      %78 = arith.mulf %72, %77 : vector<64x16xf32>
      %c0_47 = arith.constant 0 : index
      %c16 = arith.constant 16 : index
      %79 = vector.load %arg18[%c0_47, %c16] : memref<64x128xf32, #tpu.memory_space<vmem>>, vector<64x16xf32>
      tpu.vector_store %arg18[%c0_47, %c16], %78 {strides = array<i32>} : memref<64x128xf32, #tpu.memory_space<vmem>>, vector<64x16xf32>,
      %80 = vector.extract_strided_slice %37 {offsets = [0, 32], sizes = [64, 16], strides = [1, 1]} : vector<64x384xbf16> to vector<64x16xbf16>
      %81 = vector.extract_strided_slice %37 {offsets = [0, 160], sizes = [64, 16], strides = [1, 1]} : vector<64x384xbf16> to vector<64x16xbf16>
      %82 = vector.extract_strided_slice %37 {offsets = [0, 288], sizes = [64, 16], strides = [1, 1]} : vector<64x384xbf16> to vector<64x16xbf16>
      %cst_48 = arith.constant dense<0.000000e+00> : vector<64x64xf32>
      %83 = tpu.matmul %80, %81, %cst_48 {dimension_numbers = #tpu.dot_dimension_numbers<[1], [1], [0], [0], [0, 0, 1, 0], [], []>} : vector<64x16xbf16>, vector<64x16xbf16>, vector<64x64xf32> -> vector<64x64xf32>
      %cst_49 = arith.constant 0.316227764 : f32
      %84 = vector.broadcast %cst_49 : f32 to vector<64x64xf32>
      %85 = arith.mulf %83, %84 : vector<64x64xf32>
      %cst_50 = arith.constant -5.000000e+00 : f32
      %cst_51 = arith.constant 5.000000e+00 : f32
      %86 = vector.broadcast %cst_50 : f32 to vector<64x64xf32>
      %87 = arith.maximumf %86, %85 : vector<64x64xf32>
      %88 = vector.broadcast %cst_51 : f32 to vector<64x64xf32>
      %89 = arith.minimumf %88, %87 : vector<64x64xf32>
      %90 = math.exp %89 : vector<64x64xf32>
      %91 = arith.mulf %90, %30 : vector<64x64xf32>
      %92 = arith.truncf %91 : vector<64x64xf32> to vector<64x64xbf16>
      %cst_52 = arith.constant dense<0.000000e+00> : vector<64x16xf32>
      %93 = tpu.matmul %92, %82, %cst_52 {dimension_numbers = #tpu.dot_dimension_numbers<[1], [0], [0], [1], [0, 0, 1, 1], [], []>} : vector<64x64xbf16>, vector<64x16xbf16>, vector<64x16xf32> -> vector<64x16xf32>
      %94 = vector.extract_strided_slice %93 {offsets = [0, 10], sizes = [64, 1], strides = [1, 1]} : vector<64x16xf32> to vector<64x1xf32>
      %cst_53 = arith.constant 9.99999997E-7 : f32
      %95 = vector.broadcast %cst_53 : f32 to vector<64x1xf32>
      %96 = arith.addf %94, %95 : vector<64x1xf32>
      %97 = tpu.reciprocal %96 {approx = true} : vector<64x1xf32> -> vector<64x1xf32>
      %98 = vector.broadcast %97 : vector<64x1xf32> to vector<64x16xf32>
      %99 = arith.mulf %93, %98 : vector<64x16xf32>
      %c0_54 = arith.constant 0 : index
      %c32 = arith.constant 32 : index
      %100 = vector.load %arg18[%c0_54, %c32] : memref<64x128xf32, #tpu.memory_space<vmem>>, vector<64x16xf32>
      tpu.vector_store %arg18[%c0_54, %c32], %99 {strides = array<i32>} : memref<64x128xf32, #tpu.memory_space<vmem>>, vector<64x16xf32>,
      %101 = vector.extract_strided_slice %37 {offsets = [0, 48], sizes = [64, 16], strides = [1, 1]} : vector<64x384xbf16> to vector<64x16xbf16>
      %102 = vector.extract_strided_slice %37 {offsets = [0, 176], sizes = [64, 16], strides = [1, 1]} : vector<64x384xbf16> to vector<64x16xbf16>
      %103 = vector.extract_strided_slice %37 {offsets = [0, 304], sizes = [64, 16], strides = [1, 1]} : vector<64x384xbf16> to vector<64x16xbf16>
      %cst_55 = arith.constant dense<0.000000e+00> : vector<64x64xf32>
      %104 = tpu.matmul %101, %102, %cst_55 {dimension_numbers = #tpu.dot_dimension_numbers<[1], [1], [0], [0], [0, 0, 1, 0], [], []>} : vector<64x16xbf16>, vector<64x16xbf16>, vector<64x64xf32> -> vector<64x64xf32>
      %cst_56 = arith.constant 0.316227764 : f32
      %105 = vector.broadcast %cst_56 : f32 to vector<64x64xf32>
      %106 = arith.mulf %104, %105 : vector<64x64xf32>
      %cst_57 = arith.constant -5.000000e+00 : f32
      %cst_58 = arith.constant 5.000000e+00 : f32
      %107 = vector.broadcast %cst_57 : f32 to vector<64x64xf32>
      %108 = arith.maximumf %107, %106 : vector<64x64xf32>
      %109 = vector.broadcast %cst_58 : f32 to vector<64x64xf32>
      %110 = arith.minimumf %109, %108 : vector<64x64xf32>
      %111 = math.exp %110 : vector<64x64xf32>
      %112 = arith.mulf %111, %30 : vector<64x64xf32>
      %113 = arith.truncf %112 : vector<64x64xf32> to vector<64x64xbf16>
      %cst_59 = arith.constant dense<0.000000e+00> : vector<64x16xf32>
      %114 = tpu.matmul %113, %103, %cst_59 {dimension_numbers = #tpu.dot_dimension_numbers<[1], [0], [0], [1], [0, 0, 1, 1], [], []>} : vector<64x64xbf16>, vector<64x16xbf16>, vector<64x16xf32> -> vector<64x16xf32>
      %115 = vector.extract_strided_slice %114 {offsets = [0, 10], sizes = [64, 1], strides = [1, 1]} : vector<64x16xf32> to vector<64x1xf32>
      %cst_60 = arith.constant 9.99999997E-7 : f32
      %116 = vector.broadcast %cst_60 : f32 to vector<64x1xf32>
      %117 = arith.addf %115, %116 : vector<64x1xf32>
      %118 = tpu.reciprocal %117 {approx = true} : vector<64x1xf32> -> vector<64x1xf32>
      %119 = vector.broadcast %118 : vector<64x1xf32> to vector<64x16xf32>
      %120 = arith.mulf %114, %119 : vector<64x16xf32>
      %c0_61 = arith.constant 0 : index
      %c48 = arith.constant 48 : index
      %121 = vector.load %arg18[%c0_61, %c48] : memref<64x128xf32, #tpu.memory_space<vmem>>, vector<64x16xf32>
      tpu.vector_store %arg18[%c0_61, %c48], %120 {strides = array<i32>} : memref<64x128xf32, #tpu.memory_space<vmem>>, vector<64x16xf32>,
      %122 = vector.extract_strided_slice %37 {offsets = [0, 64], sizes = [64, 16], strides = [1, 1]} : vector<64x384xbf16> to vector<64x16xbf16>
      %123 = vector.extract_strided_slice %37 {offsets = [0, 192], sizes = [64, 16], strides = [1, 1]} : vector<64x384xbf16> to vector<64x16xbf16>
      %124 = vector.extract_strided_slice %37 {offsets = [0, 320], sizes = [64, 16], strides = [1, 1]} : vector<64x384xbf16> to vector<64x16xbf16>
      %cst_62 = arith.constant dense<0.000000e+00> : vector<64x64xf32>
      %125 = tpu.matmul %122, %123, %cst_62 {dimension_numbers = #tpu.dot_dimension_numbers<[1], [1], [0], [0], [0, 0, 1, 0], [], []>} : vector<64x16xbf16>, vector<64x16xbf16>, vector<64x64xf32> -> vector<64x64xf32>
      %cst_63 = arith.constant 0.316227764 : f32
      %126 = vector.broadcast %cst_63 : f32 to vector<64x64xf32>
      %127 = arith.mulf %125, %126 : vector<64x64xf32>
      %cst_64 = arith.constant -5.000000e+00 : f32
      %cst_65 = arith.constant 5.000000e+00 : f32
      %128 = vector.broadcast %cst_64 : f32 to vector<64x64xf32>
      %129 = arith.maximumf %128, %127 : vector<64x64xf32>
      %130 = vector.broadcast %cst_65 : f32 to vector<64x64xf32>
      %131 = arith.minimumf %130, %129 : vector<64x64xf32>
      %132 = math.exp %131 : vector<64x64xf32>
      %133 = arith.mulf %132, %30 : vector<64x64xf32>
      %134 = arith.truncf %133 : vector<64x64xf32> to vector<64x64xbf16>
      %cst_66 = arith.constant dense<0.000000e+00> : vector<64x16xf32>
      %135 = tpu.matmul %134, %124, %cst_66 {dimension_numbers = #tpu.dot_dimension_numbers<[1], [0], [0], [1], [0, 0, 1, 1], [], []>} : vector<64x64xbf16>, vector<64x16xbf16>, vector<64x16xf32> -> vector<64x16xf32>
      %136 = vector.extract_strided_slice %135 {offsets = [0, 10], sizes = [64, 1], strides = [1, 1]} : vector<64x16xf32> to vector<64x1xf32>
      %cst_67 = arith.constant 9.99999997E-7 : f32
      %137 = vector.broadcast %cst_67 : f32 to vector<64x1xf32>
      %138 = arith.addf %136, %137 : vector<64x1xf32>
      %139 = tpu.reciprocal %138 {approx = true} : vector<64x1xf32> -> vector<64x1xf32>
      %140 = vector.broadcast %139 : vector<64x1xf32> to vector<64x16xf32>
      %141 = arith.mulf %135, %140 : vector<64x16xf32>
      %c0_68 = arith.constant 0 : index
      %c64 = arith.constant 64 : index
      %142 = vector.load %arg18[%c0_68, %c64] : memref<64x128xf32, #tpu.memory_space<vmem>>, vector<64x16xf32>
      tpu.vector_store %arg18[%c0_68, %c64], %141 {strides = array<i32>} : memref<64x128xf32, #tpu.memory_space<vmem>>, vector<64x16xf32>,
      %143 = vector.extract_strided_slice %37 {offsets = [0, 80], sizes = [64, 16], strides = [1, 1]} : vector<64x384xbf16> to vector<64x16xbf16>
      %144 = vector.extract_strided_slice %37 {offsets = [0, 208], sizes = [64, 16], strides = [1, 1]} : vector<64x384xbf16> to vector<64x16xbf16>
      %145 = vector.extract_strided_slice %37 {offsets = [0, 336], sizes = [64, 16], strides = [1, 1]} : vector<64x384xbf16> to vector<64x16xbf16>
      %cst_69 = arith.constant dense<0.000000e+00> : vector<64x64xf32>
      %146 = tpu.matmul %143, %144, %cst_69 {dimension_numbers = #tpu.dot_dimension_numbers<[1], [1], [0], [0], [0, 0, 1, 0], [], []>} : vector<64x16xbf16>, vector<64x16xbf16>, vector<64x64xf32> -> vector<64x64xf32>
      %cst_70 = arith.constant 0.316227764 : f32
      %147 = vector.broadcast %cst_70 : f32 to vector<64x64xf32>
      %148 = arith.mulf %146, %147 : vector<64x64xf32>
      %cst_71 = arith.constant -5.000000e+00 : f32
      %cst_72 = arith.constant 5.000000e+00 : f32
      %149 = vector.broadcast %cst_71 : f32 to vector<64x64xf32>
      %150 = arith.maximumf %149, %148 : vector<64x64xf32>
      %151 = vector.broadcast %cst_72 : f32 to vector<64x64xf32>
      %152 = arith.minimumf %151, %150 : vector<64x64xf32>
      %153 = math.exp %152 : vector<64x64xf32>
      %154 = arith.mulf %153, %30 : vector<64x64xf32>
      %155 = arith.truncf %154 : vector<64x64xf32> to vector<64x64xbf16>
      %cst_73 = arith.constant dense<0.000000e+00> : vector<64x16xf32>
      %156 = tpu.matmul %155, %145, %cst_73 {dimension_numbers = #tpu.dot_dimension_numbers<[1], [0], [0], [1], [0, 0, 1, 1], [], []>} : vector<64x64xbf16>, vector<64x16xbf16>, vector<64x16xf32> -> vector<64x16xf32>
      %157 = vector.extract_strided_slice %156 {offsets = [0, 10], sizes = [64, 1], strides = [1, 1]} : vector<64x16xf32> to vector<64x1xf32>
      %cst_74 = arith.constant 9.99999997E-7 : f32
      %158 = vector.broadcast %cst_74 : f32 to vector<64x1xf32>
      %159 = arith.addf %157, %158 : vector<64x1xf32>
      %160 = tpu.reciprocal %159 {approx = true} : vector<64x1xf32> -> vector<64x1xf32>
      %161 = vector.broadcast %160 : vector<64x1xf32> to vector<64x16xf32>
      %162 = arith.mulf %156, %161 : vector<64x16xf32>
      %c0_75 = arith.constant 0 : index
      %c80 = arith.constant 80 : index
      %163 = vector.load %arg18[%c0_75, %c80] : memref<64x128xf32, #tpu.memory_space<vmem>>, vector<64x16xf32>
      tpu.vector_store %arg18[%c0_75, %c80], %162 {strides = array<i32>} : memref<64x128xf32, #tpu.memory_space<vmem>>, vector<64x16xf32>,
      %164 = vector.extract_strided_slice %37 {offsets = [0, 96], sizes = [64, 16], strides = [1, 1]} : vector<64x384xbf16> to vector<64x16xbf16>
      %165 = vector.extract_strided_slice %37 {offsets = [0, 224], sizes = [64, 16], strides = [1, 1]} : vector<64x384xbf16> to vector<64x16xbf16>
      %166 = vector.extract_strided_slice %37 {offsets = [0, 352], sizes = [64, 16], strides = [1, 1]} : vector<64x384xbf16> to vector<64x16xbf16>
      %cst_76 = arith.constant dense<0.000000e+00> : vector<64x64xf32>
      %167 = tpu.matmul %164, %165, %cst_76 {dimension_numbers = #tpu.dot_dimension_numbers<[1], [1], [0], [0], [0, 0, 1, 0], [], []>} : vector<64x16xbf16>, vector<64x16xbf16>, vector<64x64xf32> -> vector<64x64xf32>
      %cst_77 = arith.constant 0.316227764 : f32
      %168 = vector.broadcast %cst_77 : f32 to vector<64x64xf32>
      %169 = arith.mulf %167, %168 : vector<64x64xf32>
      %cst_78 = arith.constant -5.000000e+00 : f32
      %cst_79 = arith.constant 5.000000e+00 : f32
      %170 = vector.broadcast %cst_78 : f32 to vector<64x64xf32>
      %171 = arith.maximumf %170, %169 : vector<64x64xf32>
      %172 = vector.broadcast %cst_79 : f32 to vector<64x64xf32>
      %173 = arith.minimumf %172, %171 : vector<64x64xf32>
      %174 = math.exp %173 : vector<64x64xf32>
      %175 = arith.mulf %174, %30 : vector<64x64xf32>
      %176 = arith.truncf %175 : vector<64x64xf32> to vector<64x64xbf16>
      %cst_80 = arith.constant dense<0.000000e+00> : vector<64x16xf32>
      %177 = tpu.matmul %176, %166, %cst_80 {dimension_numbers = #tpu.dot_dimension_numbers<[1], [0], [0], [1], [0, 0, 1, 1], [], []>} : vector<64x64xbf16>, vector<64x16xbf16>, vector<64x16xf32> -> vector<64x16xf32>
      %178 = vector.extract_strided_slice %177 {offsets = [0, 10], sizes = [64, 1], strides = [1, 1]} : vector<64x16xf32> to vector<64x1xf32>
      %cst_81 = arith.constant 9.99999997E-7 : f32
      %179 = vector.broadcast %cst_81 : f32 to vector<64x1xf32>
      %180 = arith.addf %178, %179 : vector<64x1xf32>
      %181 = tpu.reciprocal %180 {approx = true} : vector<64x1xf32> -> vector<64x1xf32>
      %182 = vector.broadcast %181 : vector<64x1xf32> to vector<64x16xf32>
      %183 = arith.mulf %177, %182 : vector<64x16xf32>
      %c0_82 = arith.constant 0 : index
      %c96 = arith.constant 96 : index
      %184 = vector.load %arg18[%c0_82, %c96] : memref<64x128xf32, #tpu.memory_space<vmem>>, vector<64x16xf32>
      tpu.vector_store %arg18[%c0_82, %c96], %183 {strides = array<i32>} : memref<64x128xf32, #tpu.memory_space<vmem>>, vector<64x16xf32>,
      %185 = vector.extract_strided_slice %37 {offsets = [0, 112], sizes = [64, 16], strides = [1, 1]} : vector<64x384xbf16> to vector<64x16xbf16>
      %186 = vector.extract_strided_slice %37 {offsets = [0, 240], sizes = [64, 16], strides = [1, 1]} : vector<64x384xbf16> to vector<64x16xbf16>
      %187 = vector.extract_strided_slice %37 {offsets = [0, 368], sizes = [64, 16], strides = [1, 1]} : vector<64x384xbf16> to vector<64x16xbf16>
      %cst_83 = arith.constant dense<0.000000e+00> : vector<64x64xf32>
      %188 = tpu.matmul %185, %186, %cst_83 {dimension_numbers = #tpu.dot_dimension_numbers<[1], [1], [0], [0], [0, 0, 1, 0], [], []>} : vector<64x16xbf16>, vector<64x16xbf16>, vector<64x64xf32> -> vector<64x64xf32>
      %cst_84 = arith.constant 0.316227764 : f32
      %189 = vector.broadcast %cst_84 : f32 to vector<64x64xf32>
      %190 = arith.mulf %188, %189 : vector<64x64xf32>
      %cst_85 = arith.constant -5.000000e+00 : f32
      %cst_86 = arith.constant 5.000000e+00 : f32
      %191 = vector.broadcast %cst_85 : f32 to vector<64x64xf32>
      %192 = arith.maximumf %191, %190 : vector<64x64xf32>
      %193 = vector.broadcast %cst_86 : f32 to vector<64x64xf32>
      %194 = arith.minimumf %193, %192 : vector<64x64xf32>
      %195 = math.exp %194 : vector<64x64xf32>
      %196 = arith.mulf %195, %30 : vector<64x64xf32>
      %197 = arith.truncf %196 : vector<64x64xf32> to vector<64x64xbf16>
      %cst_87 = arith.constant dense<0.000000e+00> : vector<64x16xf32>
      %198 = tpu.matmul %197, %187, %cst_87 {dimension_numbers = #tpu.dot_dimension_numbers<[1], [0], [0], [1], [0, 0, 1, 1], [], []>} : vector<64x64xbf16>, vector<64x16xbf16>, vector<64x16xf32> -> vector<64x16xf32>
      %199 = vector.extract_strided_slice %198 {offsets = [0, 10], sizes = [64, 1], strides = [1, 1]} : vector<64x16xf32> to vector<64x1xf32>
      %cst_88 = arith.constant 9.99999997E-7 : f32
      %200 = vector.broadcast %cst_88 : f32 to vector<64x1xf32>
      %201 = arith.addf %199, %200 : vector<64x1xf32>
      %202 = tpu.reciprocal %201 {approx = true} : vector<64x1xf32> -> vector<64x1xf32>
      %203 = vector.broadcast %202 : vector<64x1xf32> to vector<64x16xf32>
      %204 = arith.mulf %198, %203 : vector<64x16xf32>
      %c0_89 = arith.constant 0 : index
      %c112 = arith.constant 112 : index
      %205 = vector.load %arg18[%c0_89, %c112] : memref<64x128xf32, #tpu.memory_space<vmem>>, vector<64x16xf32>
      tpu.vector_store %arg18[%c0_89, %c112], %204 {strides = array<i32>} : memref<64x128xf32, #tpu.memory_space<vmem>>, vector<64x16xf32>,
      %c0_90 = arith.constant 0 : index
      %c0_91 = arith.constant 0 : index
      %206 = vector.load %arg18[%c0_90, %c0_91] : memref<64x128xf32, #tpu.memory_space<vmem>>, vector<64x128xf32>
      %207 = arith.truncf %206 : vector<64x128xf32> to vector<64x128xbf16>
      %208 = arith.index_cast %arg19 : i32 to index
      %c0_92 = arith.constant 0 : index
      %c0_93 = arith.constant 0 : index
      %209 = vector.load %arg4[%208, %c0_92, %c0_93] : memref<10x128x128xbf16, #tpu.memory_space<vmem>>, vector<1x128x128xbf16>
      %210 = vector.shape_cast %209 : vector<1x128x128xbf16> to vector<128x128xbf16>
      %cst_94 = arith.constant dense<0.000000e+00> : vector<64x128xf32>
      %211 = tpu.matmul %207, %210, %cst_94 {dimension_numbers = #tpu.dot_dimension_numbers<[1], [0], [0], [1], [0, 0, 1, 1], [], []>} : vector<64x128xbf16>, vector<128x128xbf16>, vector<64x128xf32> -> vector<64x128xf32>
      %c0_95 = arith.constant 0 : index
      %c0_96 = arith.constant 0 : index
      %212 = vector.load %arg17[%c0_95, %c0_96] : memref<64x128xf32, #tpu.memory_space<vmem>>, vector<64x128xf32>
      %213 = arith.addf %212, %211 : vector<64x128xf32>
      %214 = arith.index_cast %arg19 : i32 to index
      %c0_97 = arith.constant 0 : index
      %c0_98 = arith.constant 0 : index
      %215 = vector.load %arg5[%214, %c0_97, %c0_98] : memref<10x1x128xf32, #tpu.memory_space<vmem>>, vector<1x1x128xf32>
      %216 = vector.shape_cast %215 : vector<1x1x128xf32> to vector<1x128xf32>
      %217 = vector.broadcast %216 : vector<1x128xf32> to vector<64x128xf32>
      %218 = arith.addf %213, %217 : vector<64x128xf32>
      %219 = arith.truncf %218 : vector<64x128xf32> to vector<64x128xbf16>
      %220 = arith.index_cast %arg19 : i32 to index
      %c0_99 = arith.constant 0 : index
      %c0_100 = arith.constant 0 : index
      %221 = vector.load %arg6[%220, %c0_99, %c0_100] : memref<10x128x160xbf16, #tpu.memory_space<vmem>>, vector<1x128x160xbf16>
      %222 = vector.shape_cast %221 : vector<1x128x160xbf16> to vector<128x160xbf16>
      %cst_101 = arith.constant dense<0.000000e+00> : vector<64x160xf32>
      %223 = tpu.matmul %219, %222, %cst_101 {dimension_numbers = #tpu.dot_dimension_numbers<[1], [0], [0], [1], [0, 0, 1, 1], [], []>} : vector<64x128xbf16>, vector<128x160xbf16>, vector<64x160xf32> -> vector<64x160xf32>
      %224 = arith.index_cast %arg19 : i32 to index
      %c0_102 = arith.constant 0 : index
      %c0_103 = arith.constant 0 : index
      %225 = vector.load %arg7[%224, %c0_102, %c0_103] : memref<10x1x160xf32, #tpu.memory_space<vmem>>, vector<1x1x160xf32>
      %226 = vector.shape_cast %225 : vector<1x1x160xf32> to vector<1x160xf32>
      %227 = vector.broadcast %226 : vector<1x160xf32> to vector<64x160xf32>
      %228 = arith.addf %223, %227 : vector<64x160xf32>
      %cst_104 = arith.constant 0.000000e+00 : f32
      %229 = vector.broadcast %cst_104 : f32 to vector<64x160xf32>
      %230 = arith.maximumf %228, %229 : vector<64x160xf32>
      %231 = arith.truncf %230 : vector<64x160xf32> to vector<64x160xbf16>
      %232 = arith.index_cast %arg19 : i32 to index
      %c0_105 = arith.constant 0 : index
      %c0_106 = arith.constant 0 : index
      %233 = vector.load %arg8[%232, %c0_105, %c0_106] : memref<10x160x128xbf16, #tpu.memory_space<vmem>>, vector<1x160x128xbf16>
      %234 = vector.shape_cast %233 : vector<1x160x128xbf16> to vector<160x128xbf16>
      %cst_107 = arith.constant dense<0.000000e+00> : vector<64x128xf32>
      %235 = tpu.matmul %231, %234, %cst_107 {dimension_numbers = #tpu.dot_dimension_numbers<[1], [0], [0], [1], [0, 0, 1, 1], [], []>} : vector<64x160xbf16>, vector<160x128xbf16>, vector<64x128xf32> -> vector<64x128xf32>
      %236 = arith.addf %218, %235 : vector<64x128xf32>
      %237 = arith.index_cast %arg19 : i32 to index
      %c0_108 = arith.constant 0 : index
      %c0_109 = arith.constant 0 : index
      %238 = vector.load %arg9[%237, %c0_108, %c0_109] : memref<10x1x128xf32, #tpu.memory_space<vmem>>, vector<1x1x128xf32>
      %239 = vector.shape_cast %238 : vector<1x1x128xf32> to vector<1x128xf32>
      %240 = vector.broadcast %239 : vector<1x128xf32> to vector<64x128xf32>
      %241 = arith.addf %236, %240 : vector<64x128xf32>
      %c0_110 = arith.constant 0 : index
      %c0_111 = arith.constant 0 : index
      %242 = vector.load %arg17[%c0_110, %c0_111] : memref<64x128xf32, #tpu.memory_space<vmem>>, vector<64x128xf32>
      tpu.vector_store %arg17[%c0_110, %c0_111], %241 {strides = array<i32>} : memref<64x128xf32, #tpu.memory_space<vmem>>, vector<64x128xf32>,
    }
    %c10_i32_5 = arith.constant 10 : i32
    %c0_6 = arith.constant 0 : index
    %c0_7 = arith.constant 0 : index
    %6 = vector.load %arg17[%c0_6, %c0_7] : memref<64x128xf32, #tpu.memory_space<vmem>>, vector<64x128xf32>
    %7 = arith.truncf %6 : vector<64x128xf32> to vector<64x128xbf16>
    %c0_8 = arith.constant 0 : index
    %c0_9 = arith.constant 0 : index
    %8 = vector.load %arg10[%c0_8, %c0_9] : memref<128x40xbf16, #tpu.memory_space<vmem>>, vector<128x40xbf16>
    %cst = arith.constant dense<0.000000e+00> : vector<64x40xf32>
    %9 = tpu.matmul %7, %8, %cst {dimension_numbers = #tpu.dot_dimension_numbers<[1], [0], [0], [1], [0, 0, 1, 1], [], []>} : vector<64x128xbf16>, vector<128x40xbf16>, vector<64x40xf32> -> vector<64x40xf32>
    %c0_10 = arith.constant 0 : index
    %c0_11 = arith.constant 0 : index
    %10 = vector.load %arg11[%c0_10, %c0_11] : memref<1x40xf32, #tpu.memory_space<vmem>>, vector<1x40xf32>
    %11 = vector.broadcast %10 : vector<1x40xf32> to vector<64x40xf32>
    %12 = arith.addf %9, %11 : vector<64x40xf32>
    %cst_12 = arith.constant 0.000000e+00 : f32
    %13 = vector.broadcast %cst_12 : f32 to vector<64x40xf32>
    %14 = arith.maximumf %12, %13 : vector<64x40xf32>
    %15 = arith.truncf %14 : vector<64x40xf32> to vector<64x40xbf16>
    %c0_13 = arith.constant 0 : index
    %c0_14 = arith.constant 0 : index
    %16 = vector.load %arg12[%c0_13, %c0_14] : memref<40x20xbf16, #tpu.memory_space<vmem>>, vector<40x20xbf16>
    %cst_15 = arith.constant dense<0.000000e+00> : vector<64x20xf32>
    %17 = tpu.matmul %15, %16, %cst_15 {dimension_numbers = #tpu.dot_dimension_numbers<[1], [0], [0], [1], [0, 0, 1, 1], [], []>} : vector<64x40xbf16>, vector<40x20xbf16>, vector<64x20xf32> -> vector<64x20xf32>
    %c0_16 = arith.constant 0 : index
    %c0_17 = arith.constant 0 : index
    %18 = vector.load %arg13[%c0_16, %c0_17] : memref<1x20xf32, #tpu.memory_space<vmem>>, vector<1x20xf32>
    %19 = vector.broadcast %18 : vector<1x20xf32> to vector<64x20xf32>
    %20 = arith.addf %17, %19 : vector<64x20xf32>
    %cst_18 = arith.constant 0.000000e+00 : f32
    %21 = vector.broadcast %cst_18 : f32 to vector<64x20xf32>
    %22 = arith.maximumf %20, %21 : vector<64x20xf32>
    %23 = arith.truncf %22 : vector<64x20xf32> to vector<64x20xbf16>
    %c0_19 = arith.constant 0 : index
    %c0_20 = arith.constant 0 : index
    %24 = vector.load %arg14[%c0_19, %c0_20] : memref<20x128xbf16, #tpu.memory_space<vmem>>, vector<20x128xbf16>
    %cst_21 = arith.constant dense<0.000000e+00> : vector<64x128xf32>
    %25 = tpu.matmul %23, %24, %cst_21 {dimension_numbers = #tpu.dot_dimension_numbers<[1], [0], [0], [1], [0, 0, 1, 1], [], []>} : vector<64x20xbf16>, vector<20x128xbf16>, vector<64x128xf32> -> vector<64x128xf32>
    %c0_22 = arith.constant 0 : index
    %c0_23 = arith.constant 0 : index
    %26 = vector.load %arg15[%c0_22, %c0_23] : memref<1x128xf32, #tpu.memory_space<vmem>>, vector<1x128xf32>
    %27 = vector.broadcast %26 : vector<1x128xf32> to vector<64x128xf32>
    %28 = arith.addf %25, %27 : vector<64x128xf32>
    %c0_24 = arith.constant 0 : index
    %c0_25 = arith.constant 0 : index
    %29 = vector.load %arg16[%c0_24, %c0_25] : memref<64x128xf32, #tpu.memory_space<vmem>>, vector<64x128xf32>
    tpu.vector_store %arg16[%c0_24, %c0_25], %28 {strides = array<i32>} : memref<64x128xf32, #tpu.memory_space<vmem>>, vector<64x128xf32>,
    return
  }
}

</mosaic_0001>

<bundles_post_ra>
// kernel: tpu_custom_call.1
= control target key start
LH: loop header
LB: loop body
LE: loop exit
PB: predicated region body
PF: predicated region fallthrough
CT: control target
= control target key end

     0   :  { %s7067_s0 = inlined_call_operand.vmem [shape: f32[64,128], index: 0, kind: input, shape index: {}]   ;;  %s7068_s1 = inlined_call_operand.vmem [shape: f32[64,64], index: 1, kind: input, shape index: {}]   ;;  %s7069_s2 = inlined_call_operand.vmem [shape: f32[1,128], index: 2, kind: input, shape index: {}]   ;;  %s7070_s3 = inlined_call_operand.vmem [shape: bf16[10,128,384], index: 3, kind: input, shape index: {}]   ;;  %s7071_s4 = inlined_call_operand.hbm [shape: bf16[10,128,128], index: 4, kind: input, shape index: {}]   ;;  %s7072_s5 = inlined_call_operand.vmem [shape: f32[10,1,128], index: 5, kind: input, shape index: {}]   ;;  %s7073_s6 = inlined_call_operand.vmem [shape: bf16[10,128,160], index: 6, kind: input, shape index: {}]   ;;  %s7074_s7 = inlined_call_operand.vmem [shape: f32[10,1,160], index: 7, kind: input, shape index: {}]   ;;  %s7075_s8 = inlined_call_operand.hbm [shape: bf16[10,160,128], index: 8, kind: input, shape index: {}]   ;;  %s7076_s9 = inlined_call_operand.vmem [shape: f32[10,1,128], index: 9, kind: input, shape index: {}]   ;;  %s7077_s10 = inlined_call_operand.vmem [shape: bf16[128,40], index: 10, kind: input, shape index: {}]   ;;  %s7078_s11 = inlined_call_operand.vmem [shape: f32[1,40], index: 11, kind: input, shape index: {}]   ;;  %s7079_s12 = inlined_call_operand.vmem [shape: bf16[40,20], index: 12, kind: input, shape index: {}]   ;;  %s7080_s13 = inlined_call_operand.vmem [shape: f32[1,20], index: 13, kind: input, shape index: {}]   ;;  %s7081_s14 = inlined_call_operand.vmem [shape: bf16[20,128], index: 14, kind: input, shape index: {}]   ;;  %s7082_s15 = inlined_call_operand.vmem [shape: f32[1,128], index: 15, kind: input, shape index: {}]   ;;  %s7083_s16 = inlined_call_operand.hbm [shape: f32[64,128], index: 16, kind: output, shape index: {}]  }
   0x1   :  { %7108 = sst [smem:[#allocation41_spill]] %s7067_s0 }
   0x2   :  { %21 = vsyncpa [#allocation5], 0 }
   0x3   :  { %22 = vsyncpa [#allocation8], 0 }
   0x4   :  { %23 = vsyncpa [#allocation6], 0  ;;  %s5472_s21 = smov [#allocation4]   ;;  %s5392_s25 = scalar_lea.hbm %s7071_s4, 10240 }
   0x5   :  { %s37_s22 = sshll.u32 %s5472_s21, 4  ;;  %p5393_p0 = scmp.ne.s32.totalorder %s7071_s4, %s5392_s25  ;;  %s38_s22 = int_to_ptr.vmem [resolvable:$true] %s37_s22 }
   0x6   :  { %p5396_p1 = scmp.lt.u32.totalorder %s5392_s25, %s7071_s4 }
   0x8   :  { %p5398_p2 = pnand %p5396_p1, %p5393_p0 }
   0xa   :  { %5401 = shalt.err (!%p5398_p2)
}
   0xb   :  { %s5402_s30 = scalar_lea.vmem %s38_s22, 10240  ;;  %p5407_p4 = scmp.lt.s32.totalorder %s38_s22, %s38_s22 }
   0xc   :  { %p5403_p3 = scmp.ne.s32.totalorder %s38_s22, %s5402_s30  ;;  %p5408_p5 = scmp.lt.s32.totalorder %s5402_s30, %s5402_s30 }
   0xe   :  { %p5409_p6 = por %p5408_p5, %p5407_p4 }
  0x10   :  { %p5410_p7 = pnand %p5409_p6, %p5403_p3 }
  0x12   :  { %5413 = shalt.err (!%p5410_p7)
}
  0x13   :  { %s5473_s0 = smov 64   ;;  %s5474_s17 = smov 4  }
  0x14   :  { %43 = dma.hbm_to_vmem [thread:$0]  %s7071_s4, 10240, %s38_s22, [#allocation5], %s5473_s0, %s5473_s0, %s5474_s17  }
  0x15   :  { %s5475_s20 = smov [#allocation7]   ;;  %s5414_s25 = scalar_lea.hbm %s7075_s8, 12800 }
  0x16   :  { %s55_s21 = sshll.u32 %s5475_s20, 4  ;;  %p5415_p8 = scmp.ne.s32.totalorder %s7075_s8, %s5414_s25  ;;  %s56_s21 = int_to_ptr.vmem [resolvable:$true] %s55_s21 }
  0x17   :  { %p5418_p9 = scmp.lt.u32.totalorder %s5414_s25, %s7075_s8 }
  0x19   :  { %p5420_p10 = pnand %p5418_p9, %p5415_p8 }
  0x1b   :  { %5423 = shalt.err (!%p5420_p10)
}
  0x1c   :  { %s5424_s30 = scalar_lea.vmem %s56_s21, 12800  ;;  %p5429_p12 = scmp.lt.s32.totalorder %s56_s21, %s56_s21 }
  0x1d   :  { %p5425_p11 = scmp.ne.s32.totalorder %s56_s21, %s5424_s30  ;;  %p5430_p13 = scmp.lt.s32.totalorder %s5424_s30, %s5424_s30 }
  0x1f   :  { %p5431_p0 = por %p5430_p13, %p5429_p12 }
  0x21   :  { %p5432_p1 = pnand %p5431_p0, %p5425_p11 }
  0x23   :  { %5435 = shalt.err (!%p5432_p1)
}
  0x24   :  { %61 = dma.hbm_to_vmem [thread:$0]  %s7075_s8, 12800, %s56_s21, [#allocation8], %s5473_s0, %s5473_s0, %s5474_s17  }
  0x25   :  { %5462 = dma.done.wait [#allocation5], 10240  }
  0x26   :  { %5463 = vsyncadd [#allocation5], 4294957056 }
  0x27   :  { %5464 = dma.done.wait [#allocation8], 12800  }
  0x28   :  { %5465 = vsyncadd [#allocation8], 4294954496  ;;  %s7109_s20 = sld [smem:[#allocation41_spill]]  ;;  %v4222_v1 = vld [vmem:[%s7069_s2] ss:$0 sm:$0xff]  ;;  %s5624_s19 = smov 0  }
  0x2e   :  { %v83_v0 = vld [vmem:[%s7109_s20] sm:$0xff]  ;;  %v84_v2 = vld [vmem:[%s7109_s20 + $0x8] sm:$0xff]  ;;  %v85_v5 = vld [vmem:[%s7109_s20 + $0x10] sm:$0xff] }
  0x2f   :  { %v98_v3 = vadd.f32 %v4222_v1, %v83_v0  ;;  %v99_v4 = vadd.f32 %v4222_v1, %v84_v2  ;;  %v86_v6 = vld [vmem:[%s7109_s20 + $0x18] sm:$0xff]  ;;  %v87_v7 = vld [vmem:[%s7109_s20 + $0x20] sm:$0xff]  ;;  %v100_v8 = vadd.f32 %v4222_v1, %v85_v5  ;;  %v88_v11 = vld [vmem:[%s7109_s20 + $0x28] sm:$0xff] }
  0x30   :  { %v101_v9 = vadd.f32 %v4222_v1, %v86_v6  ;;  %v102_v10 = vadd.f32 %v4222_v1, %v87_v7  ;;  %v89_v12 = vld [vmem:[%s7109_s20 + $0x30] sm:$0xff]  ;;  %v90_v13 = vld [vmem:[%s7109_s20 + $0x38] sm:$0xff]  ;;  %v103_v14 = vadd.f32 %v4222_v1, %v88_v11 }
  0x31   :  { %106 = vst [vmem:[#allocation2] sm:$0xff] %v98_v3  ;;  %107 = vst [vmem:[#allocation2 + $0x8] sm:$0xff] %v99_v4  ;;  %v104_v15 = vadd.f32 %v4222_v1, %v89_v12  ;;  %v105_v16 = vadd.f32 %v4222_v1, %v90_v13 }
  0x32   :  { %108 = vst [vmem:[#allocation2 + $0x10] sm:$0xff] %v100_v8  ;;  %109 = vst [vmem:[#allocation2 + $0x18] sm:$0xff] %v101_v9 }
  0x33   :  { %110 = vst [vmem:[#allocation2 + $0x20] sm:$0xff] %v102_v10  ;;  %111 = vst [vmem:[#allocation2 + $0x28] sm:$0xff] %v103_v14 }
  0x34   :  { %112 = vst [vmem:[#allocation2 + $0x30] sm:$0xff] %v104_v15  ;;  %113 = vst [vmem:[#allocation2 + $0x38] sm:$0xff] %v105_v16 }
  0x35 LB: > { %v7085_v19 = vmov 0   ;;  %s4446_s20 = smul.u32 192, %s5470_s19  ;;  %vm453_vm0 = vcmask 130048   ;;  %s5477_s26 = smov 112   ;;  %vm595_vm1 = vcmask 523264   ;;  %vm1099_vm2 = vcmask 261248   ;;  %s5470_s19 = sphi %s5624_s19, %s119_s19  }
  0x36   : > { %335 = vmatprep.mubr.bf16.mxu0 %v7085_v19  ;;  %s5478_s27 = smov 96   ;;  %s5479_s8 = smov 80   ;;  %vm1450_vm3 = vcmask 392448   ;;  %vm1801_vm4 = vcmask 523648   ;;  %vm2152_vm5 = vcmask 654848   ;;  %vm2503_vm6 = vcmask 786048  }
  0x37   : > { %s5634_s25 = scalar_lea.vmem %s7070_s3, %s4446_s20  ;;  %s5480_s0 = smov 64   ;;  %vm2854_vm7 = vcmask 917248   ;;  %vm3205_vm8 = vcmask 1048448   ;;  %vm3687_vm9 = vcmask 261120  }
  0x38   : > { %v128_v17 = vld [vmem:[#allocation2] sm:$0xff]  ;;  %v129_v18 = vld [vmem:[#allocation2 + $0x8] sm:$0xff]  ;;  %v5049_v26 = vld [vmem:[%s5634_s25 + $0x30] ss:$12 sps:$4 sm:$0xff]   ;;  %s5481_s17 = smov 48   ;;  %s5482_s21 = smov 32  }
  0x39   : > { %v136_v20 = vpack.c.bf16 %v129_v18, %v128_v17  ;;  %v5041_v21 = vld [vmem:[%s5634_s25 + $0x4] ss:$12 sps:$4 sm:$0xff]   ;;  %v5043_v22 = vld [vmem:[%s5634_s25] ss:$12 sps:$4 sm:$0xff]   ;;  %v5044_v23 = vld [vmem:[%s5634_s25 + $0x1c] ss:$12 sps:$4 sm:$0xff]   ;;  %s3374_s18 = scalar_lea.vmem %s7072_s5, %s5470_s19 }
  0x3a   : > { %303 = vmatprep.subr.bf16.mxu0 %v5041_v21  ;;  %v5046_v24 = vld [vmem:[%s5634_s25 + $0x18] ss:$12 sps:$4 sm:$0xff]   ;;  %v5047_v25 = vld [vmem:[%s5634_s25 + $0x34] ss:$12 sps:$4 sm:$0xff]   ;;  %v5056_v34 = vld [vmem:[%s5634_s25 + $0x7c] ss:$12 sps:$4 sm:$0xff]  }
  0x3b   : > { %4643 = vmatprep.mubr.bf16.mxu1 %v136_v20  ;;  %304 = vmatpush1.bf16.msra.mxu0 %v5043_v22  ;;  %v5050_v27 = vld [vmem:[%s5634_s25 + $0x4c] ss:$12 sps:$4 sm:$0xff]   ;;  %v5052_v28 = vld [vmem:[%s5634_s25 + $0x48] ss:$12 sps:$4 sm:$0xff]   ;;  %v5053_v29 = vld [vmem:[%s5634_s25 + $0x64] ss:$12 sps:$4 sm:$0xff]  }
  0x3c   : > { %305 = vmatprep.subr.bf16.mxu0 %v5044_v23  ;;  %v5065_v30 = vld [vmem:[%s5634_s25 + $0x8] ss:$12 sps:$4 sm:$0xff]   ;;  %v5066_v31 = vld [vmem:[%s5634_s25 + $0x20] ss:$12 sps:$4 sm:$0xff]   ;;  %v5067_v33 = vld [vmem:[%s5634_s25 + $0x38] ss:$12 sps:$4 sm:$0xff]  }
  0x3d   : > { %4627 = vmatprep.subr.bf16.mxu1 %v5065_v30  ;;  %v5055_v32 = vld [vmem:[%s5634_s25 + $0x60] ss:$12 sps:$4 sm:$0xff]   ;;  %v5058_v35 = vld [vmem:[%s5634_s25 + $0x78] ss:$12 sps:$4 sm:$0xff]   ;;  %v5068_v36 = vld [vmem:[%s5634_s25 + $0x50] ss:$12 sps:$4 sm:$0xff]  }
  0x3e   : > { %4628 = vmatpush3.bf16.msra.mxu1 %v5065_v30  ;;  %v5059_v37 = vld [vmem:[%s5634_s25 + $0x94] ss:$12 sps:$4 sm:$0xff]   ;;  %v5061_v38 = vld [vmem:[%s5634_s25 + $0x90] ss:$12 sps:$4 sm:$0xff]   ;;  %v5062_v40 = vld [vmem:[%s5634_s25 + $0xac] ss:$12 sps:$4 sm:$0xff]  }
  0x3f   : > { %306 = vmatpush1.bf16.msra.mxu0 %v5046_v24  ;;  %4629 = vmatprep.subr.bf16.mxu1 %v5066_v31  ;;  %v5069_v39 = vld [vmem:[%s5634_s25 + $0x68] ss:$12 sps:$4 sm:$0xff]   ;;  %v5070_v42 = vld [vmem:[%s5634_s25 + $0x80] ss:$12 sps:$4 sm:$0xff]   ;;  %v5071_v43 = vld [vmem:[%s5634_s25 + $0x98] ss:$12 sps:$4 sm:$0xff]  }
  0x40   : > { %307 = vmatprep.subr.bf16.mxu0 %v5047_v25  ;;  %v5064_v41 = vld [vmem:[%s5634_s25 + $0xa8] ss:$12 sps:$4 sm:$0xff]   ;;  %v131_v45 = vld [vmem:[#allocation2 + $0x18] sm:$0xff]  ;;  %v132_v48 = vld [vmem:[#allocation2 + $0x20] sm:$0xff]  ;;  %s5483_s28 = smov 16   ;;  %s4389_s20 = sshll.u32 %s5470_s19, 1 }
  0x41   : > { %v130_v44 = vld [vmem:[#allocation2 + $0x10] sm:$0xff]  ;;  %v133_v49 = vld [vmem:[#allocation2 + $0x28] sm:$0xff]  ;;  %v135_v52 = vld [vmem:[#allocation2 + $0x38] sm:$0xff] }
  0x42   : > { %4630 = vmatpush3.bf16.msra.mxu1 %v5066_v31  ;;  %v5072_v46 = vld [vmem:[%s5634_s25 + $0xb0] ss:$12 sps:$4 sm:$0xff]   ;;  %v137_v47 = vpack.c.bf16 %v131_v45, %v130_v44  ;;  %v138_v50 = vpack.c.bf16 %v133_v49, %v132_v48  ;;  %s3414_s25 = scalar_lea.vmem %s7074_s7, %s4389_s20 }
  0x43   : > { %308 = vmatpush1.bf16.msra.mxu0 %v5049_v26  ;;  %4631 = vmatprep.subr.bf16.mxu1 %v5067_v33  ;;  %v134_v51 = vld [vmem:[#allocation2 + $0x30] sm:$0xff] }
  0x44   : > { %309 = vmatprep.subr.bf16.mxu0 %v5050_v27  ;;  %v139_v53 = vpack.c.bf16 %v135_v52, %v134_v51 }
  0x46   : > { %4632 = vmatpush3.bf16.msra.mxu1 %v5067_v33 }
  0x47   : > { %310 = vmatpush1.bf16.msra.mxu0 %v5052_v28  ;;  %4633 = vmatprep.subr.bf16.mxu1 %v5068_v36 }
  0x48   : > { %311 = vmatprep.subr.bf16.mxu0 %v5053_v29 }
  0x4a   : > { %4634 = vmatpush3.bf16.msra.mxu1 %v5068_v36 }
  0x4b   : > { %312 = vmatpush1.bf16.msra.mxu0 %v5055_v32  ;;  %4635 = vmatprep.subr.bf16.mxu1 %v5069_v39 }
  0x4c   : > { %313 = vmatprep.subr.bf16.mxu0 %v5056_v34 }
  0x4e   : > { %4636 = vmatpush3.bf16.msra.mxu1 %v5069_v39 }
  0x4f   : > { %314 = vmatpush1.bf16.msra.mxu0 %v5058_v35  ;;  %4637 = vmatprep.subr.bf16.mxu1 %v5070_v42 }
  0x50   : > { %315 = vmatprep.subr.bf16.mxu0 %v5059_v37 }
  0x52   : > { %4638 = vmatpush3.bf16.msra.mxu1 %v5070_v42 }
  0x53   : > { %316 = vmatpush1.bf16.msra.mxu0 %v5061_v38  ;;  %4639 = vmatprep.subr.bf16.mxu1 %v5071_v43 }
  0x54   : > { %317 = vmatprep.subr.bf16.mxu0 %v5062_v40 }
  0x56   : > { %4640 = vmatpush3.bf16.msra.mxu1 %v5071_v43 }
  0x57   : > { %318 = vmatpush1.bf16.msra.mxu0 %v5064_v41  ;;  %4641 = vmatprep.subr.bf16.mxu1 %v5072_v46 }
  0x5a   : > { %336 = vmatmul.mubr.bf16.vlgmr.msra.gmra.mrb[0].mxu0 %v136_v20  ;;  %4642 = vmatpush3.bf16.msra.mxu1 %v5072_v46 }
  0x5b   : > { %345 = vmatprep.mubr.bf16.mxu0 %v7085_v19 }
  0x5d   : > { %4644 = vmatmul.mubr.bf16.vlgmr.msra.gmra.mrb[0].mxu1 %v137_v47 }
  0x5e   : > { %4647 = vmatprep.mubr.bf16.mxu1 %v138_v50 }
  0x62   : > { %346 = vmatmul.mubr.bf16.gmra.mrb[4].mxu0 %v137_v47 }
  0x63   : > { %355 = vmatprep.mubr.bf16.mxu0 %v7085_v19 }
  0x65   : > { %4648 = vmatmul.mubr.bf16.gmra.mrb[4].mxu1 %v139_v53 }
  0x6a   : > { %356 = vmatmul.mubr.bf16.gmra.mrb[8].mxu0 %v138_v50 }
  0x6b   : > { %365 = vmatprep.mubr.bf16.mxu0 %v7085_v19 }
  0x72   : > { %366 = vmatmul.mubr.bf16.gmra.mrb[12].mxu0 %v139_v53 }
 0x12d   : > { %v337_v54 = vpop.f32.mrb[0].mxu0 }
 0x12e   : > { %v339_v55 = vpop.f32.mrb[1].mxu0 }
 0x12f   : > { %v341_v56 = vpop.f32.mrb[2].mxu0 }
 0x130   : > { %v5663_v57 = vpack.c.bf16 %v341_v56, %v337_v54  ;;  %v343_v58 = vpop.f32.mrb[3].mxu0  ;;  %v4645_v2 = vpop.f32.mrb[0].mxu1 }
 0x131   : > { %v5665_v59 = vpack.c.bf16 %v343_v58, %v339_v55  ;;  %v410_v4 = vpop.f32.mrb[1].mxu1 }
 0x132   : > { %4659 = vmatprep.mubr.msk.bf16.mxu0 %vm453_vm0, %v5663_v57  ;;  %v4646_v5 = vpop.f32.mrb[2].mxu1 }
 0x133   : > { %761 = vrot.lane.b32.xlu0 %v5665_v59, %s5477_s26  ;;  %4981 = vmatprep.subr.msk.bf16.mxu0 %vm453_vm0, %v5665_v59  ;;  %v467_v60 = vsel %vm453_vm0, %v5665_v59, 0  ;;  %v5685_v7 = vpack.c.bf16 %v4646_v5, %v4645_v2  ;;  %v413_v8 = vpop.f32.mrb[3].mxu1 }
 0x134   : > { %4652 = vmatpush3.bf16.xpose.msra.mxu0 %v467_v60  ;;  %v5687_v9 = vpack.c.bf16 %v413_v8, %v410_v4 }
 0x135   : > { %v347_v61 = vpop.f32.mrb[4].mxu0 }
 0x136   : > { %v349_v62 = vpop.f32.mrb[5].mxu0  ;;  %4667 = vmatprep.subr.bf16.mxu1 %v5687_v9 }
 0x137   : > { %v351_v63 = vpop.f32.mrb[6].mxu0  ;;  %4668 = vmatpush3.bf16.msra.mxu1 %v5687_v9 }
 0x138   : > { %v5675_v0 = vpack.c.bf16 %v351_v63, %v347_v61  ;;  %v353_v1 = vpop.f32.mrb[7].mxu0  ;;  %v4649_v15 = vpop.f32.mrb[4].mxu1  ;;  %4669 = vmatprep.subr.bf16.mxu1 %v5685_v7 }
 0x139   : > { %v5677_v3 = vpack.c.bf16 %v353_v1, %v349_v62  ;;  %v426_v17 = vpop.f32.mrb[5].mxu1 }
 0x13a   : > { %v4650_v18 = vpop.f32.mrb[6].mxu1 }
 0x13b   : > { %763 = vrot.lane.b32.xlu0 %v5677_v3, %s5477_s26  ;;  %4982 = vmatprep.subr.msk.bf16.mxu0 %vm453_vm0, %v5677_v3  ;;  %v470_v6 = vsel %vm453_vm0, %v5677_v3, 0  ;;  %v5702_v21 = vpack.c.bf16 %v4650_v18, %v4649_v15  ;;  %v429_v22 = vpop.f32.mrb[7].mxu1 }
 0x13c   : > { %4654 = vmatpush3.bf16.xpose.msra.mxu0 %v470_v6  ;;  %v5704_v23 = vpack.c.bf16 %v429_v22, %v426_v17  ;;  %4670 = vmatpush3.bf16.msra.mxu1 %v5685_v7 }
 0x13d   : > { %v357_v10 = vpop.f32.mrb[8].mxu0 }
 0x13e   : > { %v359_v11 = vpop.f32.mrb[9].mxu0  ;;  %4671 = vmatprep.subr.bf16.mxu1 %v5704_v23 }
 0x13f   : > { %v361_v12 = vpop.f32.mrb[10].mxu0 }
 0x140   : > { %v5691_v13 = vpack.c.bf16 %v361_v12, %v357_v10  ;;  %v363_v14 = vpop.f32.mrb[11].mxu0  ;;  %4672 = vmatpush3.bf16.msra.mxu1 %v5704_v23 }
 0x141   : > { %v5694_v16 = vpack.c.bf16 %v363_v14, %v359_v11  ;;  %4673 = vmatprep.subr.bf16.mxu1 %v5702_v21 }
 0x143   : > { %765 = vrot.lane.b32.xlu1 %v5694_v16, %s5477_s26  ;;  %4983 = vmatprep.subr.msk.bf16.mxu0 %vm453_vm0, %v5694_v16  ;;  %v473_v20 = vsel %vm453_vm0, %v5694_v16, 0 }
 0x144   : > { %4656 = vmatpush3.bf16.xpose.msra.mxu0 %v473_v20  ;;  %4674 = vmatpush3.bf16.msra.mxu1 %v5702_v21 }
 0x145   : > { %v367_v24 = vpop.f32.mrb[12].mxu0 }
 0x146   : > { %v369_v25 = vpop.f32.mrb[13].mxu0 }
 0x147   : > { %1116 = vrot.lane.b32.xlu1 %v5665_v59, %s5478_s27  ;;  %v371_v26 = vpop.f32.mrb[14].mxu0 }
 0x148   : > { %v5710_v27 = vpack.c.bf16 %v371_v26, %v367_v24  ;;  %v373_v28 = vpop.f32.mrb[15].mxu0 }
 0x149   : > { %v5713_v29 = vpack.c.bf16 %v373_v28, %v369_v25 }
 0x14b   : > { %1118 = vrot.lane.b32.xlu1 %v5677_v3, %s5478_s27  ;;  %767 = vrot.lane.b32.xlu0 %v5713_v29, %s5477_s26  ;;  %v476_v30 = vsel %vm453_vm0, %v5713_v29, 0 }
 0x14c   : > { %4984 = vmatprep.subr.msk.bf16.mxu0 %vm453_vm0, %v5713_v29 }
 0x14d   : > { %4658 = vmatpush3.bf16.xpose.msra.mxu0 %v476_v30 }
 0x14f   : > { %751 = vrot.lane.b32.xlu1 %v5675_v0, %s5477_s26  ;;  %749 = vrot.lane.b32.xlu0 %v5663_v57, %s5477_s26 }
 0x153   : > { %753 = vrot.lane.b32.xlu1 %v5691_v13, %s5477_s26  ;;  %1120 = vrot.lane.b32.xlu0 %v5694_v16, %s5478_s27 }
 0x154   : > { %4660 = vmatmul.mubr.msk.bf16.vlgmr.msra.gmra.mrb[16].mxu0 %vm453_vm0, %v5675_v0 }
 0x155   : > { %4663 = vmatprep.mubr.msk.bf16.mxu0 %vm453_vm0, %v5691_v13 }
 0x157   : > { %1122 = vrot.lane.b32.xlu1 %v5713_v29, %s5478_s27  ;;  %755 = vrot.lane.b32.xlu0 %v5710_v27, %s5477_s26 }
 0x15b   : > { %1110 = vrot.lane.b32.xlu1 %v5675_v0, %s5478_s27  ;;  %1108 = vrot.lane.b32.xlu0 %v5663_v57, %s5478_s27 }
 0x15c   : > { %4664 = vmatmul.mubr.msk.bf16.gmra.mrb[20].mxu0 %vm453_vm0, %v5710_v27 }
 0x15f   : > { %1114 = vrot.lane.b32.xlu1 %v5710_v27, %s5478_s27  ;;  %1112 = vrot.lane.b32.xlu0 %v5691_v13, %s5478_s27 }
 0x163   : > { %916 = vrot.lane.b32.xlu1 %v5685_v7, %s5477_s26  ;;  %914 = vrot.lane.b32.xlu0 %v5687_v9, %s5477_s26 }
 0x167   : > { %920 = vrot.lane.b32.xlu1 %v5702_v21, %s5477_s26  ;;  %918 = vrot.lane.b32.xlu0 %v5704_v23, %s5477_s26 }
 0x16b   : > { %1267 = vrot.lane.b32.xlu1 %v5685_v7, %s5478_s27  ;;  %1265 = vrot.lane.b32.xlu0 %v5687_v9, %s5478_s27 }
 0x16f   : > { %1271 = vrot.lane.b32.xlu1 %v5702_v21, %s5478_s27  ;;  %1269 = vrot.lane.b32.xlu0 %v5704_v23, %s5478_s27 }
 0x173   : > { %1469 = vrot.lane.b32.xlu1 %v5677_v3, %s5479_s8  ;;  %1467 = vrot.lane.b32.xlu0 %v5665_v59, %s5479_s8 }
 0x177   : > { %1473 = vrot.lane.b32.xlu1 %v5713_v29, %s5479_s8  ;;  %1471 = vrot.lane.b32.xlu0 %v5694_v16, %s5479_s8 }
 0x17b   : > { %1461 = vrot.lane.b32.xlu1 %v5675_v0, %s5479_s8  ;;  %1459 = vrot.lane.b32.xlu0 %v5663_v57, %s5479_s8 }
 0x17f   : > { %1465 = vrot.lane.b32.xlu1 %v5710_v27, %s5479_s8  ;;  %1463 = vrot.lane.b32.xlu0 %v5691_v13, %s5479_s8 }
 0x183   : > { %1618 = vrot.lane.b32.xlu1 %v5685_v7, %s5479_s8  ;;  %1616 = vrot.lane.b32.xlu0 %v5687_v9, %s5479_s8 }
 0x187   : > { %1622 = vrot.lane.b32.xlu1 %v5702_v21, %s5479_s8  ;;  %1620 = vrot.lane.b32.xlu0 %v5704_v23, %s5479_s8 }
 0x18b   : > { %1820 = vrot.lane.b32.xlu1 %v5677_v3, %s5480_s0  ;;  %1818 = vrot.lane.b32.xlu0 %v5665_v59, %s5480_s0 }
 0x18f   : > { %1824 = vrot.lane.b32.xlu1 %v5713_v29, %s5480_s0  ;;  %1822 = vrot.lane.b32.xlu0 %v5694_v16, %s5480_s0 }
 0x193   : > { %1812 = vrot.lane.b32.xlu1 %v5675_v0, %s5480_s0  ;;  %1810 = vrot.lane.b32.xlu0 %v5663_v57, %s5480_s0 }
 0x197   : > { %1816 = vrot.lane.b32.xlu1 %v5710_v27, %s5480_s0  ;;  %1814 = vrot.lane.b32.xlu0 %v5691_v13, %s5480_s0 }
 0x19b   : > { %1969 = vrot.lane.b32.xlu1 %v5685_v7, %s5480_s0  ;;  %1967 = vrot.lane.b32.xlu0 %v5687_v9, %s5480_s0 }
 0x19f   : > { %1973 = vrot.lane.b32.xlu1 %v5702_v21, %s5480_s0  ;;  %1971 = vrot.lane.b32.xlu0 %v5704_v23, %s5480_s0 }
 0x1a3   : > { %2171 = vrot.lane.b32.xlu1 %v5677_v3, %s5481_s17  ;;  %2169 = vrot.lane.b32.xlu0 %v5665_v59, %s5481_s17 }
 0x1a5   : > { %v5819_v31 = vpop.permute.xlu0 %761 }
 0x1a6   : > { %4985 = vmatprep.subr.msk.bf16.mxu1 %vm453_vm0, %v5819_v31 }
 0x1a7   : > { %2175 = vrot.lane.b32.xlu1 %v5713_v29, %s5481_s17  ;;  %2173 = vrot.lane.b32.xlu0 %v5694_v16, %s5481_s17 }
 0x1ab   : > { %2163 = vrot.lane.b32.xlu1 %v5675_v0, %s5481_s17  ;;  %2161 = vrot.lane.b32.xlu0 %v5663_v57, %s5481_s17 }
 0x1ad   : > { %v5845_v33 = vpop.permute.xlu0 %763 }
 0x1af   : > { %2167 = vrot.lane.b32.xlu1 %v5710_v27, %s5481_s17  ;;  %2165 = vrot.lane.b32.xlu0 %v5691_v13, %s5481_s17 }
 0x1b3   : > { %2320 = vrot.lane.b32.xlu1 %v5685_v7, %s5481_s17  ;;  %2318 = vrot.lane.b32.xlu0 %v5687_v9, %s5481_s17 }
 0x1b5   : > { %v5839_v32 = vpop.permute.xlu1 %765 }
 0x1b7   : > { %2324 = vrot.lane.b32.xlu1 %v5702_v21, %s5481_s17  ;;  %2322 = vrot.lane.b32.xlu0 %v5704_v23, %s5481_s17 }
 0x1b9   : > { %v1117_v34 = vpop.permute.xlu1 %1116 }
 0x1ba   : > { %4989 = vmatprep.subr.msk.bf16.mxu0 %vm453_vm0, %v1117_v34  ;;  %v1137_v35 = vsel %vm453_vm0, %v1117_v34, 0 }
 0x1bb   : > { %2522 = vrot.lane.b32.xlu1 %v5677_v3, %s5482_s21  ;;  %2520 = vrot.lane.b32.xlu0 %v5665_v59, %s5482_s21 }
 0x1bc   : > { %4716 = vmatpush3.bf16.xpose.msra.mxu0 %v1137_v35 }
 0x1bd   : > { %v1119_v36 = vpop.permute.xlu1 %1118  ;;  %v5853_v37 = vpop.permute.xlu0 %767 }
 0x1be   : > { %4990 = vmatprep.subr.msk.bf16.mxu0 %vm453_vm0, %v1119_v36  ;;  %v1140_v40 = vsel %vm453_vm0, %v1119_v36, 0 }
 0x1bf   : > { %2526 = vrot.lane.b32.xlu1 %v5713_v29, %s5482_s21  ;;  %2524 = vrot.lane.b32.xlu0 %v5694_v16, %s5482_s21 }
 0x1c1   : > { %v5860_v38 = vpop.permute.xlu1 %751  ;;  %v5862_v39 = vpop.permute.xlu0 %749 }
 0x1c3   : > { %2514 = vrot.lane.b32.xlu1 %v5675_v0, %s5482_s21  ;;  %2512 = vrot.lane.b32.xlu0 %v5663_v57, %s5482_s21 }
 0x1c4   : > { %4718 = vmatpush3.bf16.xpose.msra.mxu0 %v1140_v40 }
 0x1c5   : > { %v5869_v41 = vpop.permute.xlu1 %753  ;;  %v1121_v42 = vpop.permute.xlu0 %1120 }
 0x1c6   : > { %4991 = vmatprep.subr.msk.bf16.mxu0 %vm453_vm0, %v1121_v42  ;;  %v1143_v45 = vsel %vm453_vm0, %v1121_v42, 0 }
 0x1c7   : > { %2518 = vrot.lane.b32.xlu1 %v5710_v27, %s5482_s21  ;;  %2516 = vrot.lane.b32.xlu0 %v5691_v13, %s5482_s21 }
 0x1c9   : > { %v1123_v43 = vpop.permute.xlu1 %1122  ;;  %v5876_v44 = vpop.permute.xlu0 %755 }
 0x1ca   : > { %v1146_v50 = vsel %vm453_vm0, %v1123_v43, 0 }
 0x1cb   : > { %2671 = vrot.lane.b32.xlu1 %v5685_v7, %s5482_s21  ;;  %2669 = vrot.lane.b32.xlu0 %v5687_v9, %s5482_s21 }
 0x1cc   : > { %4720 = vmatpush3.bf16.xpose.msra.mxu0 %v1143_v45 }
 0x1cd   : > { %4992 = vmatprep.subr.msk.bf16.mxu0 %vm453_vm0, %v1123_v43  ;;  %v1111_v46 = vpop.permute.xlu1 %1110  ;;  %v1109_v47 = vpop.permute.xlu0 %1108 }
 0x1ce   : > { %4723 = vmatprep.mubr.msk.bf16.mxu0 %vm453_vm0, %v1109_v47 }
 0x1cf   : > { %2675 = vrot.lane.b32.xlu1 %v5702_v21, %s5482_s21  ;;  %2673 = vrot.lane.b32.xlu0 %v5704_v23, %s5482_s21 }
 0x1d1   : > { %v1115_v48 = vpop.permute.xlu1 %1114  ;;  %v1113_v49 = vpop.permute.xlu0 %1112 }
 0x1d3   : > { %2873 = vrot.lane.b32.xlu1 %v5677_v3, %s5483_s28  ;;  %2871 = vrot.lane.b32.xlu0 %v5665_v59, %s5483_s28 }
 0x1d4   : > { %4722 = vmatpush3.bf16.xpose.msra.mxu0 %v1146_v50  ;;  %v5956_v50 = vld [vmem:[%s7068_s1 + $0x10] sm:$0xff] }
 0x1d5   : > { %v5894_v51 = vpop.permute.xlu1 %916  ;;  %v5896_v52 = vpop.permute.xlu0 %914 }
 0x1d7   : > { %2877 = vrot.lane.b32.xlu1 %v5713_v29, %s5483_s28  ;;  %2875 = vrot.lane.b32.xlu0 %v5694_v16, %s5483_s28 }
 0x1d9   : > { %v5902_v53 = vpop.permute.xlu1 %920  ;;  %v5904_v54 = vpop.permute.xlu0 %918 }
 0x1db   : > { %4724 = vmatmul.mubr.msk.bf16.vlgmr.msra.gmra.mrb[24].mxu0 %vm453_vm0, %v1111_v46  ;;  %2865 = vrot.lane.b32.xlu1 %v5675_v0, %s5483_s28 }
 0x1dc   : > { %2863 = vrot.lane.b32.xlu0 %v5663_v57, %s5483_s28  ;;  %4727 = vmatprep.mubr.msk.bf16.mxu0 %vm453_vm0, %v1113_v49 }
 0x1dd   : > { %v5912_v55 = vpop.permute.xlu1 %1267  ;;  %v5914_v56 = vpop.permute.xlu0 %1265 }
 0x1df   : > { %2869 = vrot.lane.b32.xlu1 %v5710_v27, %s5483_s28 }
 0x1e0   : > { %2867 = vrot.lane.b32.xlu0 %v5691_v13, %s5483_s28 }
 0x1e1   : > { %v5920_v58 = vpop.permute.xlu1 %1271  ;;  %v5922_v59 = vpop.permute.xlu0 %1269 }
 0x1e3   : > { %4728 = vmatmul.mubr.msk.bf16.gmra.mrb[28].mxu0 %vm453_vm0, %v1115_v48  ;;  %3022 = vrot.lane.b32.xlu1 %v5685_v7, %s5483_s28 }
 0x1e4   : > { %3020 = vrot.lane.b32.xlu0 %v5687_v9, %s5483_s28 }
 0x1e5   : > { %v5929_v57 = vpop.permute.xlu1 %1469  ;;  %v5931_v60 = vpop.permute.xlu0 %1467 }
 0x1e7   : > { %3026 = vrot.lane.b32.xlu1 %v5702_v21, %s5483_s28 }
 0x1e8   : > { %3024 = vrot.lane.b32.xlu0 %v5704_v23, %s5483_s28 }
 0x1e9   : > { %v5937_v61 = vpop.permute.xlu1 %1473  ;;  %v5939_v62 = vpop.permute.xlu0 %1471 }
 0x1ed   : > { %v5941_v63 = vpop.permute.xlu1 %1461  ;;  %v5943_v0 = vpop.permute.xlu0 %1459 }
 0x1f1   : > { %v5945_v1 = vpop.permute.xlu1 %1465  ;;  %v5947_v2 = vpop.permute.xlu0 %1463 }
 0x1f5   : > { %v1617_v3 = vpop.permute.xlu0 %1616  ;;  %v1619_v4 = vpop.permute.xlu1 %1618 }
 0x1f6   : > { %4763 = vmatprep.subr.bf16.mxu0 %v1617_v3 }
 0x1f7   : > { %4764 = vmatpush3.bf16.msra.mxu0 %v1617_v3  ;;  %v5961_v3 = vld [vmem:[%s7068_s1 + $0x18] sm:$0xff] }
 0x1f8   : > { %4765 = vmatprep.subr.bf16.mxu0 %v1619_v4 }
 0x1f9   : > { %v1621_v5 = vpop.permute.xlu0 %1620  ;;  %v1623_v6 = vpop.permute.xlu1 %1622 }
 0x1fb   : > { %4766 = vmatpush3.bf16.msra.mxu0 %v1619_v4 }
 0x1fc   : > { %4767 = vmatprep.subr.bf16.mxu0 %v1621_v5 }
 0x1fd   : > { %v5949_v7 = vpop.permute.xlu0 %1818 }
 0x1ff   : > { %4768 = vmatpush3.bf16.msra.mxu0 %v1621_v5  ;;  %v5966_v5 = vld [vmem:[%s7068_s1] sm:$0xff] }
 0x200   : > { %4769 = vmatprep.subr.bf16.mxu0 %v1623_v6 }
 0x203   : > { %4770 = vmatpush3.bf16.msra.mxu0 %v1623_v6  ;;  %v5971_v6 = vld [vmem:[%s7068_s1 + $0x8] sm:$0xff] }
 0x204   : > { %4997 = vmatprep.subr.msk.bf16.mxu0 %vm453_vm0, %v5949_v7 }
 0x227   : > { %v4661_v8 = vpop.f32.mrb[16].mxu0 }
 0x228   : > { %v545_v9 = vmul.f32 0.31622776, %v4661_v8  ;;  %v512_v10 = vpop.f32.mrb[17].mxu0 }
 0x229   : > { %v543_v11 = vmul.f32 0.31622776, %v512_v10  ;;  %v4662_v12 = vpop.f32.mrb[18].mxu0 }
 0x22a   : > { %v4254_v13 = vclamps-f32 %v545_v9, 5.0  ;;  %v546_v14 = vmul.f32 0.31622776, %v4662_v12  ;;  %v515_v15 = vpop.f32.mrb[19].mxu0 }
 0x22b   : > { %v4252_v16 = vclamps-f32 %v543_v11, 5.0  ;;  %v544_v17 = vmul.f32 0.31622776, %v515_v15 }
 0x22c   : > { %v571_v18 = vmul.f32 1.442695, %v4254_v13  ;;  %v4255_v20 = vclamps-f32 %v546_v14, 5.0 }
 0x22d   : > { %v567_v21 = vmul.f32 1.442695, %v4252_v16  ;;  %v4253_v22 = vclamps-f32 %v544_v17, 5.0  ;;  %v5981_v17 = vld [vmem:[%s7068_s1 + $0x30] sm:$0xff] }
 0x22e   : > { %5115 = vpow2.f32 %v571_v18  ;;  %v573_v23 = vmul.f32 1.442695, %v4255_v20  ;;  %v5986_v18 = vld [vmem:[%s7068_s1 + $0x38] sm:$0xff] }
 0x22f   : > { %5117 = vpow2.f32 %v567_v21  ;;  %v569_v24 = vmul.f32 1.442695, %v4253_v22  ;;  %v4665_v25 = vpop.f32.mrb[20].mxu0  ;;  %v782_v21 = vsel %vm453_vm0, %v5819_v31, 0  ;;  %v5994_v22 = vld [vmem:[%s7068_s1 + $0x20] sm:$0xff] }
 0x230   : > { %5119 = vpow2.f32 %v573_v23  ;;  %v549_v26 = vmul.f32 0.31622776, %v4665_v25  ;;  %v528_v27 = vpop.f32.mrb[21].mxu0  ;;  %v5999_v23 = vld [vmem:[%s7068_s1 + $0x28] sm:$0xff] }
 0x231   : > { %5121 = vpow2.f32 %v569_v24  ;;  %v547_v28 = vmul.f32 0.31622776, %v528_v27  ;;  %v4666_v29 = vpop.f32.mrb[22].mxu0 }
 0x232   : > { %v4258_v30 = vclamps-f32 %v549_v26, 5.0  ;;  %v550_v34 = vmul.f32 0.31622776, %v4666_v29  ;;  %v531_v35 = vpop.f32.mrb[23].mxu0 }
 0x233   : > { %v4256_v36 = vclamps-f32 %v547_v28, 5.0  ;;  %v548_v40 = vmul.f32 0.31622776, %v531_v35  ;;  %v788_v35 = vsel %vm453_vm0, %v5839_v32, 0 }
 0x234   : > { %v579_v42 = vmul.f32 1.442695, %v4258_v30  ;;  %v4259_v43 = vclamps-f32 %v550_v34, 5.0  ;;  %v785_v34 = vsel %vm453_vm0, %v5845_v33, 0 }
 0x235   : > { %v575_v45 = vmul.f32 1.442695, %v4256_v36  ;;  %v4257_v46 = vclamps-f32 %v548_v40, 5.0  ;;  %v791_v36 = vsel %vm453_vm0, %v5853_v37, 0 }
 0x236   : > { %5123 = vpow2.f32 %v579_v42  ;;  %v581_v47 = vmul.f32 1.442695, %v4259_v43 }
 0x237   : > { %5125 = vpow2.f32 %v575_v45  ;;  %v577_v48 = vmul.f32 1.442695, %v4257_v46 }
 0x238   : > { %v5116_v49 = vpop.eup %5115  ;;  %5127 = vpow2.f32 %v581_v47 }
 0x239   : > { %v5118_v4 = vpop.eup %5117  ;;  %5129 = vpow2.f32 %v577_v48  ;;  %v585_v10 = vmul.f32 %v5116_v49, %v5956_v50 }
 0x23a   : > { %v5120_v8 = vpop.eup %5119  ;;  %v583_v12 = vmul.f32 %v5118_v4, %v5966_v5 }
 0x23b   : > { %v5122_v9 = vpop.eup %5121  ;;  %v586_v11 = vmul.f32 %v5120_v8, %v5961_v3 }
 0x23c   : > { %v584_v13 = vmul.f32 %v5122_v9, %v5971_v6 }
 0x23d   : > { %v592_v14 = vpack.c.bf16 %v586_v11, %v585_v10 }
 0x23e   : > { %v591_v15 = vpack.c.bf16 %v584_v13, %v583_v12 }
 0x240   : > { %v5124_v16 = vpop.eup %5123  ;;  %4675 = vmatprep.mubr.msk.bf16.mxu1 %vm595_vm1, %v591_v15 }
 0x241   : > { %v5126_v20 = vpop.eup %5125  ;;  %4676 = vmatmul.mubr.msk.bf16.vlgmr.msra.gmra.mrb[8].mxu1 %vm595_vm1, %v592_v14  ;;  %v589_v26 = vmul.f32 %v5124_v16, %v5981_v17 }
 0x242   : > { %v5128_v24 = vpop.eup %5127  ;;  %4684 = vmatpush3.bf16.xpose.msra.mxu1 %v782_v21  ;;  %v587_v27 = vmul.f32 %v5126_v20, %v5994_v22 }
 0x243   : > { %v5130_v25 = vpop.eup %5129  ;;  %4986 = vmatprep.subr.msk.bf16.mxu1 %vm453_vm0, %v5845_v33  ;;  %v590_v31 = vmul.f32 %v5128_v24, %v5986_v18 }
 0x244   : > { %v588_v28 = vmul.f32 %v5130_v25, %v5999_v23 }
 0x245   : > { %v594_v29 = vpack.c.bf16 %v590_v31, %v589_v26 }
 0x246   : > { %v593_v30 = vpack.c.bf16 %v588_v28, %v587_v27 }
 0x248   : > { %4679 = vmatprep.mubr.msk.bf16.mxu1 %vm595_vm1, %v593_v30 }
 0x249   : > { %4680 = vmatmul.mubr.msk.bf16.gmra.mrb[12].mxu1 %vm595_vm1, %v594_v29 }
 0x24a   : > { %4686 = vmatpush3.bf16.xpose.msra.mxu1 %v785_v34  ;;  %4691 = vmatprep.mubr.msk.bf16.mxu1 %vm453_vm0, %v5862_v39 }
 0x24b   : > { %4987 = vmatprep.subr.msk.bf16.mxu1 %vm453_vm0, %v5839_v32  ;;  %v5484_v32 = vmov 10  }
 0x24c   : > { %5039 = vset.pattern.permute.xlu1 %v5484_v32  ;;  %5040 = vset.pattern.permute.xlu0 %v5484_v32 }
 0x252   : > { %4688 = vmatpush3.bf16.xpose.msra.mxu1 %v788_v35 }
 0x253   : > { %4988 = vmatprep.subr.msk.bf16.mxu1 %vm453_vm0, %v5853_v37 }
 0x25a   : > { %4690 = vmatpush3.bf16.xpose.msra.mxu1 %v791_v36 }
 0x25b   : > { %4699 = vmatprep.subr.bf16.mxu1 %v5896_v52 }
 0x261   : > { %4692 = vmatmul.mubr.msk.bf16.vlgmr.msra.gmra.mrb[16].mxu1 %vm453_vm0, %v5860_v38 }
 0x262   : > { %4695 = vmatprep.mubr.msk.bf16.mxu1 %vm453_vm0, %v5869_v41  ;;  %4700 = vmatpush3.bf16.msra.mxu1 %v5896_v52 }
 0x263   : > { %4701 = vmatprep.subr.bf16.mxu1 %v5894_v51 }
 0x266   : > { %4702 = vmatpush3.bf16.msra.mxu1 %v5894_v51 }
 0x267   : > { %4703 = vmatprep.subr.bf16.mxu1 %v5904_v54 }
 0x269   : > { %4696 = vmatmul.mubr.msk.bf16.gmra.mrb[20].mxu1 %vm453_vm0, %v5876_v44 }
 0x26a   : > { %4704 = vmatpush3.bf16.msra.mxu1 %v5904_v54 }
 0x26b   : > { %4705 = vmatprep.subr.bf16.mxu1 %v5902_v53 }
 0x26e   : > { %4706 = vmatpush3.bf16.msra.mxu1 %v5902_v53 }
 0x26f   : > { %4731 = vmatprep.subr.bf16.mxu1 %v5914_v56 }
 0x2ae   : > { %v4725_v33 = vpop.f32.mrb[24].mxu0 }
 0x2af   : > { %v1215_v37 = vmul.f32 0.31622776, %v4725_v33  ;;  %v1182_v38 = vpop.f32.mrb[25].mxu0 }
 0x2b0   : > { %v1213_v39 = vmul.f32 0.31622776, %v1182_v38  ;;  %v4726_v41 = vpop.f32.mrb[26].mxu0 }
 0x2b1   : > { %v4286_v51 = vclamps-f32 %v1215_v37, 5.0  ;;  %v1216_v52 = vmul.f32 0.31622776, %v4726_v41  ;;  %v1185_v40 = vpop.f32.mrb[27].mxu0 }
 0x2b2   : > { %v4284_v44 = vclamps-f32 %v1213_v39, 5.0  ;;  %v1214_v42 = vmul.f32 0.31622776, %v1185_v40 }
 0x2b3   : > { %v1241_v54 = vmul.f32 1.442695, %v4286_v51  ;;  %v4287_v43 = vclamps-f32 %v1216_v52, 5.0 }
 0x2b4   : > { %v1237_v45 = vmul.f32 1.442695, %v4284_v44  ;;  %v4285_v46 = vclamps-f32 %v1214_v42, 5.0 }
 0x2b5   : > { %5131 = vpow2.f32 %v1241_v54  ;;  %v1243_v53 = vmul.f32 1.442695, %v4287_v43 }
 0x2b6   : > { %5133 = vpow2.f32 %v1237_v45  ;;  %v1239_v47 = vmul.f32 1.442695, %v4285_v46  ;;  %v4729_v48 = vpop.f32.mrb[28].mxu0 }
 0x2b7   : > { %5135 = vpow2.f32 %v1243_v53  ;;  %v1219_v49 = vmul.f32 0.31622776, %v4729_v48  ;;  %v1198_v4 = vpop.f32.mrb[29].mxu0  ;;  %v6075_v53 = vpop.permute.xlu1 %1820 }
 0x2b8   : > { %5137 = vpow2.f32 %v1239_v47  ;;  %v1217_v8 = vmul.f32 0.31622776, %v1198_v4  ;;  %v4730_v9 = vpop.f32.mrb[30].mxu0 }
 0x2b9   : > { %v4290_v10 = vclamps-f32 %v1219_v49, 5.0  ;;  %v1220_v11 = vmul.f32 0.31622776, %v4730_v9  ;;  %v1201_v12 = vpop.f32.mrb[31].mxu0 }
 0x2ba   : > { %v4288_v13 = vclamps-f32 %v1217_v8, 5.0  ;;  %v1218_v14 = vmul.f32 0.31622776, %v1201_v12  ;;  %v6090_v12 = vpop.permute.xlu0 %1822 }
 0x2bb   : > { %v1249_v15 = vmul.f32 1.442695, %v4290_v10  ;;  %v4291_v16 = vclamps-f32 %v1220_v11, 5.0  ;;  %v6084_v9 = vpop.permute.xlu1 %1824 }
 0x2bc   : > { %v1245_v20 = vmul.f32 1.442695, %v4288_v13  ;;  %v4289_v21 = vclamps-f32 %v1218_v14, 5.0 }
 0x2bd   : > { %5139 = vpow2.f32 %v1249_v15  ;;  %v1251_v24 = vmul.f32 1.442695, %v4291_v16 }
 0x2be   : > { %5141 = vpow2.f32 %v1245_v20  ;;  %v1247_v25 = vmul.f32 1.442695, %v4289_v21  ;;  %v6096_v21 = vpop.permute.xlu0 %1810 }
 0x2bf   : > { %v5132_v26 = vpop.eup %5131  ;;  %5143 = vpow2.f32 %v1251_v24  ;;  %v6094_v16 = vpop.permute.xlu1 %1812 }
 0x2c0   : > { %v5134_v31 = vpop.eup %5133  ;;  %5145 = vpow2.f32 %v1247_v25  ;;  %v6037_v29 = vmul.f32 %v5132_v26, %v5956_v50 }
 0x2c1   : > { %v5136_v27 = vpop.eup %5135  ;;  %v6043_v34 = vmul.f32 %v5134_v31, %v5966_v5 }
 0x2c2   : > { %v5138_v28 = vpop.eup %5137  ;;  %v6040_v30 = vmul.f32 %v5136_v27, %v5961_v3  ;;  %v6100_v26 = vpop.permute.xlu0 %1814 }
 0x2c3   : > { %v6046_v35 = vmul.f32 %v5138_v28, %v5971_v6  ;;  %v6098_v25 = vpop.permute.xlu1 %1816 }
 0x2c6   : > { %v6104_v27 = vpop.permute.xlu0 %1967 }
 0x2c7   : > { %v5140_v33 = vpop.eup %5139  ;;  %v6102_v31 = vpop.permute.xlu1 %1969 }
 0x2c8   : > { %v5142_v37 = vpop.eup %5141  ;;  %v6053_v41 = vmul.f32 %v5140_v33, %v5981_v17 }
 0x2c9   : > { %v5144_v38 = vpop.eup %5143  ;;  %v6059_v52 = vmul.f32 %v5142_v37, %v5994_v22 }
 0x2ca   : > { %v5146_v39 = vpop.eup %5145  ;;  %v6056_v51 = vmul.f32 %v5144_v38, %v5986_v18 }
 0x2cb   : > { %v6062_v40 = vmul.f32 %v5146_v39, %v5999_v23  ;;  %v6106_v33 = vpop.permute.xlu1 %1973 }
 0x2cf   : > { %v6110_v36 = vpop.permute.xlu1 %2171 }
 0x314   : > { %v6068_v54 = vpop.f32.mrb[8].mxu1 }
 0x315   : > { %v675_v43 = vadd.f32 1e-06, %v6068_v54  ;;  %v6071_v45 = vpop.f32.mrb[9].mxu1 }
 0x316   : > { %v6073_v46 = vpop.f32.mrb[10].mxu1  ;;  %v673_v47 = vadd.f32 1e-06, %v6071_v45 }
 0x317   : > { %5147 = vrcp.f32 %v675_v43  ;;  %v676_v48 = vadd.f32 1e-06, %v6073_v46  ;;  %v6079_v49 = vpop.f32.mrb[11].mxu1 }
 0x318   : > { %v674_v4 = vadd.f32 1e-06, %v6079_v49 }
 0x319   : > { %5149 = vrcp.f32 %v676_v48 }
 0x31a   : > { %5151 = vrcp.f32 %v673_v47  ;;  %v6108_v47 = vpop.permute.xlu0 %1971 }
 0x31b   : > { %5153 = vrcp.f32 %v674_v4 }
 0x31c   : > { %v6082_v8 = vpop.f32.mrb[12].mxu1 }
 0x31d   : > { %7110 = vst [vmem:[#allocation13_spill] sm:$0xff] %v6082_v8  ;;  %v6086_v10 = vpop.f32.mrb[13].mxu1 }
 0x31e   : > { %7111 = vst [vmem:[#allocation14_spill] sm:$0xff] %v6086_v10  ;;  %v6088_v11 = vpop.f32.mrb[14].mxu1  ;;  %v6114_v10 = vpop.permute.xlu1 %2175 }
 0x31f   : > { %7112 = vst [vmem:[#allocation15_spill] sm:$0xff] %v6088_v11  ;;  %v6092_v13 = vpop.f32.mrb[15].mxu1 }
 0x320   : > { %7113 = vst [vmem:[#allocation16_spill] sm:$0xff] %v6092_v13 }
 0x321   : > { %v5148_v14 = vpop.eup %5147 }
 0x322   : > { %701 = vperm.xlu1 %5039, %v5148_v14  }
 0x323   : > { %v5150_v15 = vpop.eup %5149 }
 0x324   : > { %706 = vperm.xlu0 %5040, %v5150_v15   ;;  %v5152_v20 = vpop.eup %5151 }
 0x325   : > { %v5154_v24 = vpop.eup %5153 }
 0x326   : > { %691 = vperm.xlu1 %5039, %v5152_v20  }
 0x328   : > { %696 = vperm.xlu0 %5040, %v5154_v24  }
 0x334   : > { %v4693_v28 = vpop.f32.mrb[16].mxu1 }
 0x335   : > { %v860_v37 = vmul.f32 0.31622776, %v4693_v28  ;;  %v827_v38 = vpop.f32.mrb[17].mxu1 }
 0x336   : > { %v858_v39 = vmul.f32 0.31622776, %v827_v38  ;;  %v4694_v43 = vpop.f32.mrb[18].mxu1  ;;  %v6112_v38 = vpop.permute.xlu0 %2169 }
 0x337   : > { %v4270_v48 = vclamps-f32 %v860_v37, 5.0  ;;  %v861_v4 = vmul.f32 0.31622776, %v4694_v43  ;;  %v830_v14 = vpop.f32.mrb[19].mxu1 }
 0x338   : > { %v4268_v15 = vclamps-f32 %v858_v39, 5.0  ;;  %v859_v20 = vmul.f32 0.31622776, %v830_v14 }
 0x339   : > { %v886_v24 = vmul.f32 1.442695, %v4270_v48  ;;  %v4271_v19 = vclamps-f32 %v861_v4, 5.0 }
 0x33a   : > { %v882_v44 = vmul.f32 1.442695, %v4268_v15  ;;  %v4269_v42 = vclamps-f32 %v859_v20, 5.0  ;;  %v6116_v13 = vpop.permute.xlu0 %2173 }
 0x33b   : > { %5155 = vpow2.f32 %v886_v24  ;;  %v888_v32 = vmul.f32 1.442695, %v4271_v19 }
 0x33c   : > { %5157 = vpow2.f32 %v882_v44  ;;  %v884_v28 = vmul.f32 1.442695, %v4269_v42  ;;  %v4697_v8 = vpop.f32.mrb[20].mxu1 }
 0x33d   : > { %5159 = vpow2.f32 %v888_v32  ;;  %v864_v11 = vmul.f32 0.31622776, %v4697_v8  ;;  %v843_v37 = vpop.f32.mrb[21].mxu1 }
 0x33e   : > { %5161 = vpow2.f32 %v884_v28  ;;  %v862_v43 = vmul.f32 0.31622776, %v843_v37  ;;  %v4698_v39 = vpop.f32.mrb[22].mxu1 }
 0x33f   : > { %v4274_v14 = vclamps-f32 %v864_v11, 5.0  ;;  %v865_v48 = vmul.f32 0.31622776, %v4698_v39  ;;  %v846_v4 = vpop.f32.mrb[23].mxu1  ;;  %v6118_v39 = vpop.permute.xlu1 %2163 }
 0x340   : > { %v4272_v15 = vclamps-f32 %v862_v43, 5.0  ;;  %v863_v20 = vmul.f32 0.31622776, %v846_v4 }
 0x341   : > { %v894_v24 = vmul.f32 1.442695, %v4274_v14  ;;  %v4275_v19 = vclamps-f32 %v865_v48, 5.0  ;;  %v6122_v48 = vpop.permute.xlu0 %2161 }
 0x342   : > { %v890_v44 = vmul.f32 1.442695, %v4272_v15  ;;  %v4273_v42 = vclamps-f32 %v863_v20, 5.0 }
 0x343   : > { %5163 = vpow2.f32 %v894_v24  ;;  %v896_v32 = vmul.f32 1.442695, %v4275_v19 }
 0x344   : > { %5165 = vpow2.f32 %v890_v44  ;;  %v892_v8 = vmul.f32 1.442695, %v4273_v42  ;;  %v6126_v42 = vpop.permute.xlu1 %2167 }
 0x345   : > { %v5156_v28 = vpop.eup %5155  ;;  %5167 = vpow2.f32 %v896_v32 }
 0x346   : > { %v5158_v37 = vpop.eup %5157  ;;  %5169 = vpow2.f32 %v892_v8  ;;  %v900_v4 = vmul.f32 %v5156_v28, %v5956_v50  ;;  %v6130_v28 = vpop.permute.xlu0 %2165 }
 0x347   : > { %v5160_v11 = vpop.eup %5159  ;;  %v898_v15 = vmul.f32 %v5158_v37, %v5966_v5 }
 0x348   : > { %v5162_v43 = vpop.eup %5161  ;;  %v901_v14 = vmul.f32 %v5160_v11, %v5961_v3 }
 0x349   : > { %v899_v20 = vmul.f32 %v5162_v43, %v5971_v6 }
 0x34a   : > { %v907_v24 = vpack.c.bf16 %v901_v14, %v900_v4 }
 0x34b   : > { %v906_v19 = vpack.c.bf16 %v899_v20, %v898_v15  ;;  %v6138_v20 = vpop.permute.xlu1 %2320 }
 0x34d   : > { %v5164_v44 = vpop.eup %5163  ;;  %4707 = vmatprep.mubr.msk.bf16.mxu1 %vm595_vm1, %v906_v19  ;;  %v7114_v19 = vpack.c.bf16 %v6046_v35, %v6043_v34  ;;  %v7116_v34 = vpack.c.bf16 %v6062_v40, %v6059_v52 }
 0x34e   : > { %v5166_v32 = vpop.eup %5165  ;;  %4708 = vmatmul.mubr.msk.bf16.vlgmr.msra.gmra.mrb[24].mxu1 %vm595_vm1, %v907_v24  ;;  %v904_v37 = vmul.f32 %v5164_v44, %v5981_v17 }
 0x34f   : > { %v5168_v8 = vpop.eup %5167  ;;  %4732 = vmatpush3.bf16.msra.mxu1 %v5914_v56  ;;  %v902_v4 = vmul.f32 %v5166_v32, %v5994_v22  ;;  %v6142_v56 = vpop.permute.xlu0 %2318  ;;  %v7115_v32 = vpack.c.bf16 %v6040_v30, %v6037_v29  ;;  %v7118_v29 = vpack.c.bf16 %v6056_v51, %v6053_v41  ;;  %v1494_v51 = vsel %vm453_vm0, %v5939_v62, 0 }
 0x350   : > { %v5170_v11 = vpop.eup %5169  ;;  %4733 = vmatprep.subr.bf16.mxu1 %v5912_v55  ;;  %v905_v43 = vmul.f32 %v5168_v8, %v5986_v18  ;;  %v6152_v44 = vpop.permute.xlu1 %2324 }
 0x351   : > { %v903_v14 = vmul.f32 %v5170_v11, %v5999_v23 }
 0x352   : > { %v909_v15 = vpack.c.bf16 %v905_v43, %v904_v37  ;;  %v1497_v37 = vsel %vm453_vm0, %v5937_v61, 0 }
 0x353   : > { %4734 = vmatpush3.bf16.msra.mxu1 %v5912_v55  ;;  %v908_v24 = vpack.c.bf16 %v903_v14, %v902_v4  ;;  %v6154_v55 = vpop.permute.xlu0 %2322 }
 0x354   : > { %4735 = vmatprep.subr.bf16.mxu1 %v5922_v59 }
 0x355   : > { %4711 = vmatprep.mubr.msk.bf16.mxu1 %vm595_vm1, %v908_v24 }
 0x356   : > { %4712 = vmatmul.mubr.msk.bf16.gmra.mrb[28].mxu1 %vm595_vm1, %v909_v15 }
 0x357   : > { %4736 = vmatpush3.bf16.msra.mxu1 %v5922_v59  ;;  %4739 = vmatprep.mubr.msk.bf16.mxu1 %vm595_vm1, %v7114_v19  ;;  %v6163_v59 = vpop.permute.xlu1 %2522  ;;  %v6169_v35 = vpop.permute.xlu0 %2520 }
 0x358   : > { %4737 = vmatprep.subr.bf16.mxu1 %v5920_v58 }
 0x35b   : > { %4738 = vmatpush3.bf16.msra.mxu1 %v5920_v58  ;;  %v1488_v58 = vsel %vm453_vm0, %v5931_v60, 0  ;;  %v6173_v8 = vpop.permute.xlu1 %2526  ;;  %v6181_v30 = vpop.permute.xlu0 %2524 }
 0x35c   : > { %4993 = vmatprep.subr.msk.bf16.mxu1 %vm453_vm0, %v5931_v60  ;;  %7117 = vst [vmem:[#allocation17_spill] sm:$0xff] %v6173_v8  ;;  %7119 = vst [vmem:[#allocation18_spill] sm:$0xff] %v6181_v30  ;;  %v1491_v60 = vsel %vm453_vm0, %v5929_v57, 0 }
 0x35e   : > { %4740 = vmatmul.mubr.msk.bf16.vlgmr.msra.gmra.mrb[32].mxu1 %vm595_vm1, %v7115_v32 }
 0x35f   : > { %4743 = vmatprep.mubr.msk.bf16.mxu1 %vm595_vm1, %v7116_v34  ;;  %v6185_v52 = vpop.permute.xlu1 %2514  ;;  %v6189_v40 = vpop.permute.xlu0 %2512 }
 0x360   : > { %7120 = vst [vmem:[#allocation19_spill] sm:$0xff] %v6185_v52 }
 0x363   : > { %v6193_v11 = vpop.permute.xlu1 %2518  ;;  %v6195_v41 = vpop.permute.xlu0 %2516 }
 0x364   : > { %4748 = vmatpush3.bf16.xpose.msra.mxu1 %v1488_v58  ;;  %7121 = vst [vmem:[#allocation20_spill] sm:$0xff] %v6193_v11  ;;  %7122 = vst [vmem:[#allocation21_spill] sm:$0xff] %v6195_v41 }
 0x365   : > { %4994 = vmatprep.subr.msk.bf16.mxu1 %vm453_vm0, %v5929_v57 }
 0x366   : > { %4744 = vmatmul.mubr.msk.bf16.gmra.mrb[36].mxu1 %vm595_vm1, %v7118_v29 }
 0x367   : > { %4755 = vmatprep.mubr.msk.bf16.mxu1 %vm453_vm0, %v5943_v0  ;;  %v6201_v0 = vpop.permute.xlu1 %2671  ;;  %v6203_v57 = vpop.permute.xlu0 %2669 }
 0x36b   : > { %v6207_v43 = vpop.permute.xlu1 %2675  ;;  %v6210_v4 = vpop.permute.xlu0 %2673 }
 0x36c   : > { %4750 = vmatpush3.bf16.xpose.msra.mxu1 %v1491_v60 }
 0x36d   : > { %4995 = vmatprep.subr.msk.bf16.mxu1 %vm453_vm0, %v5939_v62 }
 0x36f   : > { %v6212_v14 = vpop.permute.xlu1 %2873  ;;  %v6219_v62 = vpop.permute.xlu0 %2871 }
 0x370   : > { %7123 = vst [vmem:[#allocation22_spill] sm:$0xff] %v6212_v14 }
 0x373   : > { %v6226_v15 = vpop.permute.xlu0 %2875 }
 0x374   : > { %4752 = vmatpush3.bf16.xpose.msra.mxu1 %v1494_v51  ;;  %7125 = vst [vmem:[#allocation24_spill] sm:$0xff] %v6226_v15 }
 0x375   : > { %4996 = vmatprep.subr.msk.bf16.mxu1 %vm453_vm0, %v5937_v61  ;;  %v6223_v61 = vpop.permute.xlu1 %2877 }
 0x376   : > { %7124 = vst [vmem:[#allocation23_spill] sm:$0xff] %v6223_v61 }
 0x37c   : > { %4754 = vmatpush3.bf16.xpose.msra.mxu1 %v1497_v37 }
 0x37d   : > { %4795 = vmatprep.subr.bf16.mxu1 %v6104_v27 }
 0x383   : > { %4756 = vmatmul.mubr.msk.bf16.vlgmr.msra.gmra.mrb[40].mxu1 %vm453_vm0, %v5941_v63  ;;  %v6232_v63 = vpop.permute.xlu1 %2865 }
 0x384   : > { %4759 = vmatprep.mubr.msk.bf16.mxu1 %vm453_vm0, %v5947_v2  ;;  %4796 = vmatpush3.bf16.msra.mxu1 %v6104_v27  ;;  %7126 = vst [vmem:[#allocation25_spill] sm:$0xff] %v6232_v63  ;;  %v6235_v2 = vpop.permute.xlu0 %2863 }
 0x385   : > { %4797 = vmatprep.subr.bf16.mxu1 %v6102_v31  ;;  %7127 = vst [vmem:[#allocation26_spill] sm:$0xff] %v6235_v2 }
 0x388   : > { %4798 = vmatpush3.bf16.msra.mxu1 %v6102_v31  ;;  %v6239_v31 = vpop.permute.xlu1 %2869  ;;  %v6241_v27 = vpop.permute.xlu0 %2867 }
 0x389   : > { %4799 = vmatprep.subr.bf16.mxu1 %v6108_v47  ;;  %7128 = vst [vmem:[#allocation27_spill] sm:$0xff] %v6239_v31  ;;  %7129 = vst [vmem:[#allocation28_spill] sm:$0xff] %v6241_v27 }
 0x38b   : > { %4760 = vmatmul.mubr.msk.bf16.gmra.mrb[44].mxu1 %vm453_vm0, %v5945_v1 }
 0x38c   : > { %4800 = vmatpush3.bf16.msra.mxu1 %v6108_v47  ;;  %v6243_v24 = vpop.permute.xlu1 %3022  ;;  %v6245_v1 = vpop.permute.xlu0 %3020 }
 0x38d   : > { %4801 = vmatprep.subr.bf16.mxu1 %v6106_v33  ;;  %7130 = vst [vmem:[#allocation29_spill] sm:$0xff] %v6243_v24  ;;  %7131 = vst [vmem:[#allocation30_spill] sm:$0xff] %v6245_v1 }
 0x390   : > { %4802 = vmatpush3.bf16.msra.mxu1 %v6106_v33  ;;  %v6247_v47 = vpop.permute.xlu1 %3026  ;;  %v6249_v19 = vpop.permute.xlu0 %3024 }
 0x391   : > { %5001 = vmatprep.subr.msk.bf16.mxu1 %vm453_vm0, %v6112_v38  ;;  %7132 = vst [vmem:[#allocation31_spill] sm:$0xff] %v6247_v47  ;;  %7133 = vst [vmem:[#allocation32_spill] sm:$0xff] %v6249_v19 }
 0x3a1   : > { %v702_v32 = vpop.permute.xlu1 %701 }
 0x3a2   : > { %v731_v33 = vmul.f32 %v6068_v54, %v702_v32 }
 0x3a3   : > { %v707_v34 = vpop.permute.xlu0 %706 }
 0x3a4   : > { %739 = vst.msk [vmem:[#allocation3 + $0x10] sm:$0xff] %vm453_vm0, %v731_v33  ;;  %v732_v58 = vmul.f32 %v6073_v46, %v707_v34 }
 0x3a5   : > { %v692_v29 = vpop.permute.xlu1 %691 }
 0x3a6   : > { %740 = vst.msk [vmem:[#allocation3 + $0x18] sm:$0xff] %vm453_vm0, %v732_v58  ;;  %v729_v60 = vmul.f32 %v692_v29, %v6071_v45 }
 0x3a7   : > { %v697_v51 = vpop.permute.xlu0 %696 }
 0x3a8   : > { %737 = vst.msk [vmem:[#allocation3] sm:$0xff] %vm453_vm0, %v729_v60  ;;  %v730_v37 = vmul.f32 %v697_v51, %v6079_v49 }
 0x3aa   : > { %738 = vst.msk [vmem:[#allocation3 + $0x8] sm:$0xff] %vm453_vm0, %v730_v37 }
 0x421   : > { %v6259_v31 = vpop.f32.mrb[24].mxu1 }
 0x422   : > { %v1005_v54 = vadd.f32 1e-06, %v6259_v31  ;;  %v6262_v32 = vpop.f32.mrb[25].mxu1 }
 0x423   : > { %v1003_v46 = vadd.f32 1e-06, %v6262_v32  ;;  %v6265_v33 = vpop.f32.mrb[26].mxu1 }
 0x424   : > { %5171 = vrcp.f32 %v1005_v54  ;;  %v6267_v34 = vpop.f32.mrb[27].mxu1  ;;  %v1006_v45 = vadd.f32 1e-06, %v6265_v33 }
 0x425   : > { %5173 = vrcp.f32 %v1003_v46  ;;  %v1004_v49 = vadd.f32 1e-06, %v6267_v34 }
 0x427   : > { %5175 = vrcp.f32 %v1004_v49 }
 0x428   : > { %5177 = vrcp.f32 %v1006_v45 }
 0x429   : > { %v6271_v58 = vpop.f32.mrb[28].mxu1 }
 0x42a   : > { %7134 = vst [vmem:[#allocation33_spill] sm:$0xff] %v6271_v58  ;;  %v1009_v29 = vadd.f32 1e-06, %v6271_v58  ;;  %v6274_v60 = vpop.f32.mrb[29].mxu1 }
 0x42b   : > { %7135 = vst [vmem:[#allocation34_spill] sm:$0xff] %v6274_v60  ;;  %v6276_v51 = vpop.f32.mrb[30].mxu1  ;;  %v1007_v37 = vadd.f32 1e-06, %v6274_v60 }
 0x42c   : > { %7136 = vst [vmem:[#allocation35_spill] sm:$0xff] %v6276_v51  ;;  %5179 = vrcp.f32 %v1009_v29  ;;  %v1010_v54 = vadd.f32 1e-06, %v6276_v51  ;;  %v6280_v46 = vpop.f32.mrb[31].mxu1 }
 0x42d   : > { %7137 = vst [vmem:[#allocation36_spill] sm:$0xff] %v6280_v46  ;;  %v1008_v49 = vadd.f32 1e-06, %v6280_v46 }
 0x42e   : > { %v5172_v27 = vpop.eup %5171  ;;  %5181 = vrcp.f32 %v1010_v54 }
 0x42f   : > { %v5174_v45 = vpop.eup %5173  ;;  %1031 = vperm.xlu1 %5039, %v5172_v27   ;;  %5183 = vrcp.f32 %v1007_v37 }
 0x430   : > { %1021 = vperm.xlu0 %5040, %v5174_v45   ;;  %5185 = vrcp.f32 %v1008_v49 }
 0x431   : > { %v5176_v58 = vpop.eup %5175  ;;  %v6283_v63 = vpop.f32.mrb[32].mxu1 }
 0x432   : > { %v1356_v29 = vadd.f32 1e-06, %v6283_v63  ;;  %v6286_v61 = vpop.f32.mrb[33].mxu1  ;;  %v5178_v60 = vpop.eup %5177 }
 0x433   : > { %1026 = vperm.xlu1 %5039, %v5176_v58   ;;  %v6288_v51 = vpop.f32.mrb[34].mxu1  ;;  %v1354_v54 = vadd.f32 1e-06, %v6286_v61 }
 0x434   : > { %5187 = vrcp.f32 %v1356_v29  ;;  %v1357_v46 = vadd.f32 1e-06, %v6288_v51  ;;  %1036 = vperm.xlu0 %5040, %v5178_v60   ;;  %v6292_v27 = vpop.f32.mrb[35].mxu1 }
 0x435   : > { %v1355_v49 = vadd.f32 1e-06, %v6292_v27 }
 0x436   : > { %v5180_v37 = vpop.eup %5179  ;;  %5189 = vrcp.f32 %v1357_v46 }
 0x437   : > { %1051 = vperm.xlu1 %5039, %v5180_v37   ;;  %5191 = vrcp.f32 %v1354_v54 }
 0x438   : > { %v5182_v45 = vpop.eup %5181  ;;  %5193 = vrcp.f32 %v1355_v49 }
 0x439   : > { %1056 = vperm.xlu0 %5040, %v5182_v45   ;;  %v6295_v15 = vpop.f32.mrb[36].mxu1  ;;  %v5184_v58 = vpop.eup %5183 }
 0x43a   : > { %7138 = vst [vmem:[#allocation37_spill] sm:$0xff] %v6295_v15  ;;  %v1360_v29 = vadd.f32 1e-06, %v6295_v15  ;;  %v6298_v2 = vpop.f32.mrb[37].mxu1  ;;  %v5186_v14 = vpop.eup %5185 }
 0x43b   : > { %7139 = vst [vmem:[#allocation38_spill] sm:$0xff] %v6298_v2  ;;  %1041 = vperm.xlu1 %5039, %v5184_v58   ;;  %v6300_v60 = vpop.f32.mrb[38].mxu1  ;;  %v1358_v46 = vadd.f32 1e-06, %v6298_v2 }
 0x43c   : > { %7140 = vst [vmem:[#allocation39_spill] sm:$0xff] %v6300_v60  ;;  %5195 = vrcp.f32 %v1360_v29  ;;  %v1361_v37 = vadd.f32 1e-06, %v6300_v60  ;;  %v6304_v47 = vpop.f32.mrb[39].mxu1 }
 0x43d   : > { %7141 = vst [vmem:[#allocation40_spill] sm:$0xff] %v6304_v47  ;;  %1046 = vperm.xlu0 %5040, %v5186_v14   ;;  %v1359_v49 = vadd.f32 1e-06, %v6304_v47 }
 0x43e   : > { %v5188_v54 = vpop.eup %5187  ;;  %5197 = vrcp.f32 %v1361_v37 }
 0x43f   : > { %1382 = vperm.xlu1 %5039, %v5188_v54   ;;  %5199 = vrcp.f32 %v1358_v46 }
 0x440   : > { %v5190_v45 = vpop.eup %5189  ;;  %5201 = vrcp.f32 %v1359_v49 }
 0x441   : > { %1387 = vperm.xlu0 %5040, %v5190_v45   ;;  %v5192_v58 = vpop.eup %5191 }
 0x442   : > { %v5194_v15 = vpop.eup %5193 }
 0x443   : > { %1372 = vperm.xlu1 %5039, %v5192_v58  }
 0x445   : > { %1377 = vperm.xlu0 %5040, %v5194_v15  }
 0x446   : > { %v5196_v29 = vpop.eup %5195 }
 0x447   : > { %1402 = vperm.xlu1 %5039, %v5196_v29  }
 0x448   : > { %v5198_v2 = vpop.eup %5197 }
 0x449   : > { %1407 = vperm.xlu0 %5040, %v5198_v2   ;;  %v5200_v60 = vpop.eup %5199 }
 0x44a   : > { %v5202_v14 = vpop.eup %5201 }
 0x44b   : > { %1392 = vperm.xlu1 %5039, %v5200_v60  }
 0x44d   : > { %1397 = vperm.xlu0 %5040, %v5202_v14  }
 0x456   : > { %v4757_v37 = vpop.f32.mrb[40].mxu1 }
 0x457   : > { %v1566_v11 = vmul.f32 0.31622776, %v4757_v37  ;;  %v1533_v47 = vpop.f32.mrb[41].mxu1 }
 0x458   : > { %v1564_v54 = vmul.f32 0.31622776, %v1533_v47  ;;  %v4758_v19 = vpop.f32.mrb[42].mxu1 }
 0x459   : > { %v4302_v46 = vclamps-f32 %v1566_v11, 5.0  ;;  %v1567_v45 = vmul.f32 0.31622776, %v4758_v19  ;;  %v1536_v24 = vpop.f32.mrb[43].mxu1 }
 0x45a   : > { %v4300_v49 = vclamps-f32 %v1564_v54, 5.0  ;;  %v1565_v58 = vmul.f32 0.31622776, %v1536_v24 }
 0x45b   : > { %v1592_v41 = vmul.f32 1.442695, %v4302_v46  ;;  %v4303_v15 = vclamps-f32 %v1567_v45, 5.0 }
 0x45c   : > { %v1588_v52 = vmul.f32 1.442695, %v4300_v49  ;;  %v4301_v29 = vclamps-f32 %v1565_v58, 5.0 }
 0x45d   : > { %5203 = vpow2.f32 %v1592_v41  ;;  %v1594_v2 = vmul.f32 1.442695, %v4303_v15 }
 0x45e   : > { %5205 = vpow2.f32 %v1588_v52  ;;  %v1590_v60 = vmul.f32 1.442695, %v4301_v29  ;;  %v4761_v1 = vpop.f32.mrb[44].mxu1 }
 0x45f   : > { %5207 = vpow2.f32 %v1594_v2  ;;  %v1570_v14 = vmul.f32 0.31622776, %v4761_v1  ;;  %v1549_v37 = vpop.f32.mrb[45].mxu1 }
 0x460   : > { %5209 = vpow2.f32 %v1590_v60  ;;  %v1568_v47 = vmul.f32 0.31622776, %v1549_v37  ;;  %v4762_v8 = vpop.f32.mrb[46].mxu1 }
 0x461   : > { %v4306_v11 = vclamps-f32 %v1570_v14, 5.0  ;;  %v1571_v19 = vmul.f32 0.31622776, %v4762_v8  ;;  %v1552_v30 = vpop.f32.mrb[47].mxu1 }
 0x462   : > { %v4304_v54 = vclamps-f32 %v1568_v47, 5.0  ;;  %v1569_v24 = vmul.f32 0.31622776, %v1552_v30 }
 0x463   : > { %v1600_v46 = vmul.f32 1.442695, %v4306_v11  ;;  %v4307_v45 = vclamps-f32 %v1571_v19, 5.0 }
 0x464   : > { %v1596_v49 = vmul.f32 1.442695, %v4304_v54  ;;  %v4305_v58 = vclamps-f32 %v1569_v24, 5.0  ;;  %v1839_v54 = vsel %vm453_vm0, %v5949_v7, 0  ;;  %v1842_v7 = vsel %vm453_vm0, %v6075_v53, 0 }
 0x465   : > { %5211 = vpow2.f32 %v1600_v46  ;;  %v1602_v41 = vmul.f32 1.442695, %v4307_v45 }
 0x466   : > { %5213 = vpow2.f32 %v1596_v49  ;;  %v1598_v52 = vmul.f32 1.442695, %v4305_v58 }
 0x467   : > { %v5204_v15 = vpop.eup %5203  ;;  %5215 = vpow2.f32 %v1602_v41 }
 0x468   : > { %v5206_v1 = vpop.eup %5205  ;;  %5217 = vpow2.f32 %v1598_v52  ;;  %v1606_v60 = vmul.f32 %v5204_v15, %v5956_v50 }
 0x469   : > { %v5208_v29 = vpop.eup %5207  ;;  %v1604_v30 = vmul.f32 %v5206_v1, %v5966_v5 }
 0x46a   : > { %v5210_v2 = vpop.eup %5209  ;;  %v1607_v8 = vmul.f32 %v5208_v29, %v5961_v3 }
 0x46b   : > { %v1605_v14 = vmul.f32 %v5210_v2, %v5971_v6 }
 0x46c   : > { %v1613_v37 = vpack.c.bf16 %v1607_v8, %v1606_v60 }
 0x46d   : > { %v1612_v47 = vpack.c.bf16 %v1605_v14, %v1604_v30 }
 0x46f   : > { %v5212_v11 = vpop.eup %5211  ;;  %4771 = vmatprep.mubr.msk.bf16.mxu0 %vm595_vm1, %v1612_v47 }
 0x470   : > { %v5214_v19 = vpop.eup %5213  ;;  %4772 = vmatmul.mubr.msk.bf16.vlgmr.msra.gmra.mrb[32].mxu0 %vm595_vm1, %v1613_v37  ;;  %v1610_v3 = vmul.f32 %v5212_v11, %v5981_v17  ;;  %v1845_v17 = vsel %vm453_vm0, %v6090_v12, 0 }
 0x471   : > { %v5216_v24 = vpop.eup %5215  ;;  %4780 = vmatpush3.bf16.xpose.msra.mxu0 %v1839_v54  ;;  %v1608_v6 = vmul.f32 %v5214_v19, %v5994_v22 }
 0x472   : > { %v5218_v50 = vpop.eup %5217  ;;  %4998 = vmatprep.subr.msk.bf16.mxu0 %vm453_vm0, %v6075_v53  ;;  %v1611_v5 = vmul.f32 %v5216_v24, %v5986_v18  ;;  %v1848_v18 = vsel %vm453_vm0, %v6084_v9, 0 }
 0x473   : > { %v1609_v46 = vmul.f32 %v5218_v50, %v5999_v23 }
 0x474   : > { %v1615_v45 = vpack.c.bf16 %v1611_v5, %v1610_v3 }
 0x475   : > { %v1614_v49 = vpack.c.bf16 %v1609_v46, %v1608_v6 }
 0x477   : > { %4775 = vmatprep.mubr.msk.bf16.mxu0 %vm595_vm1, %v1614_v49 }
 0x478   : > { %4776 = vmatmul.mubr.msk.bf16.gmra.mrb[36].mxu0 %vm595_vm1, %v1615_v45 }
 0x479   : > { %4782 = vmatpush3.bf16.xpose.msra.mxu0 %v1842_v7  ;;  %4787 = vmatprep.mubr.msk.bf16.mxu0 %vm453_vm0, %v6096_v21 }
 0x47a   : > { %4999 = vmatprep.subr.msk.bf16.mxu0 %vm453_vm0, %v6090_v12 }
 0x481   : > { %4784 = vmatpush3.bf16.xpose.msra.mxu0 %v1845_v17 }
 0x482   : > { %5000 = vmatprep.subr.msk.bf16.mxu0 %vm453_vm0, %v6084_v9 }
 0x489   : > { %4786 = vmatpush3.bf16.xpose.msra.mxu0 %v1848_v18 }
 0x48a   : > { %4827 = vmatprep.subr.bf16.mxu0 %v6142_v56 }
 0x490   : > { %4788 = vmatmul.mubr.msk.bf16.vlgmr.msra.gmra.mrb[40].mxu0 %vm453_vm0, %v6094_v16 }
 0x491   : > { %4791 = vmatprep.mubr.msk.bf16.mxu0 %vm453_vm0, %v6100_v26  ;;  %4828 = vmatpush3.bf16.msra.mxu0 %v6142_v56 }
 0x492   : > { %4829 = vmatprep.subr.bf16.mxu0 %v6138_v20 }
 0x495   : > { %4830 = vmatpush3.bf16.msra.mxu0 %v6138_v20 }
 0x496   : > { %4831 = vmatprep.subr.bf16.mxu0 %v6154_v55 }
 0x498   : > { %4792 = vmatmul.mubr.msk.bf16.gmra.mrb[44].mxu0 %vm453_vm0, %v6098_v25 }
 0x499   : > { %4832 = vmatpush3.bf16.msra.mxu0 %v6154_v55 }
 0x49a   : > { %4833 = vmatprep.subr.bf16.mxu0 %v6152_v44 }
 0x49d   : > { %4834 = vmatpush3.bf16.msra.mxu0 %v6152_v44 }
 0x49e   : > { %5005 = vmatprep.subr.msk.bf16.mxu0 %vm453_vm0, %v6169_v35 }
 0x4ae   : > { %v1032_v22 = vpop.permute.xlu1 %1031 }
 0x4af   : > { %v1061_v23 = vmul.f32 %v6259_v31, %v1032_v22  ;;  %v1022_v53 = vpop.permute.xlu0 %1021 }
 0x4b0   : > { %v1059_v12 = vmul.f32 %v1022_v53, %v6262_v32 }
 0x4b1   : > { %1079 = vrot.lane.b32.xlu1 %v1061_v23, %s5483_s28 }
 0x4b2   : > { %v1027_v9 = vpop.permute.xlu1 %1026 }
 0x4b3   : > { %v1037_v16 = vpop.permute.xlu0 %1036  ;;  %v1060_v26 = vmul.f32 %v1027_v9, %v6267_v34 }
 0x4b4   : > { %v1062_v21 = vmul.f32 %v6265_v33, %v1037_v16 }
 0x4b5   : > { %1075 = vrot.lane.b32.xlu1 %v1059_v12, %s5483_s28 }
 0x4b6   : > { %v6356_v25 = vpop.permute.xlu1 %1051  ;;  %1081 = vrot.lane.b32.xlu0 %v1062_v21, %s5483_s28 }
 0x4b8   : > { %v6360_v20 = vpop.permute.xlu0 %1056 }
 0x4ba   : > { %v6362_v56 = vpop.permute.xlu1 %1041  ;;  %1077 = vrot.lane.b32.xlu0 %v1060_v26, %s5483_s28 }
 0x4bc   : > { %v6365_v44 = vpop.permute.xlu0 %1046 }
 0x4be   : > { %v1383_v55 = vpop.permute.xlu1 %1382 }
 0x4bf   : > { %v1412_v31 = vmul.f32 %v6283_v63, %v1383_v55 }
 0x4c0   : > { %v1388_v32 = vpop.permute.xlu0 %1387 }
 0x4c1   : > { %v1413_v33 = vmul.f32 %v6288_v51, %v1388_v32  ;;  %1430 = vrot.lane.b32.xlu1 %v1412_v31, %s5482_s21 }
 0x4c2   : > { %v1373_v58 = vpop.permute.xlu1 %1372 }
 0x4c3   : > { %v1410_v41 = vmul.f32 %v1373_v58, %v6286_v61  ;;  %1432 = vrot.lane.b32.xlu0 %v1413_v33, %s5482_s21 }
 0x4c4   : > { %v1378_v34 = vpop.permute.xlu0 %1377 }
 0x4c5   : > { %v1411_v52 = vmul.f32 %v1378_v34, %v6292_v27  ;;  %1426 = vrot.lane.b32.xlu1 %v1410_v41, %s5482_s21 }
 0x4c6   : > { %v6375_v15 = vpop.permute.xlu1 %1402 }
 0x4c7   : > { %1428 = vrot.lane.b32.xlu0 %v1411_v52, %s5482_s21 }
 0x4c8   : > { %v6377_v63 = vpop.permute.xlu0 %1407 }
 0x4ca   : > { %v6379_v1 = vpop.permute.xlu1 %1392 }
 0x4cc   : > { %v6381_v29 = vpop.permute.xlu0 %1397 }
 0x523   : > { %v1080_v51 = vpop.permute.xlu1 %1079 }
 0x524   : > { %1102 = vst.msk [vmem:[#allocation3 + $0x10] sm:$0xff] %vm1099_vm2, %v1080_v51 }
 0x527   : > { %v1076_v61 = vpop.permute.xlu1 %1075 }
 0x528   : > { %1100 = vst.msk [vmem:[#allocation3] sm:$0xff] %vm1099_vm2, %v1076_v61  ;;  %v1082_v27 = vpop.permute.xlu0 %1081 }
 0x529   : > { %1103 = vst.msk [vmem:[#allocation3 + $0x18] sm:$0xff] %vm1099_vm2, %v1082_v27 }
 0x52c   : > { %v1078_v2 = vpop.permute.xlu0 %1077 }
 0x52d   : > { %1101 = vst.msk [vmem:[#allocation3 + $0x8] sm:$0xff] %vm1099_vm2, %v1078_v2 }
 0x533   : > { %v1431_v60 = vpop.permute.xlu1 %1430 }
 0x534   : > { %1453 = vst.msk [vmem:[#allocation3 + $0x10] sm:$0xff] %vm1450_vm3, %v1431_v60 }
 0x535   : > { %v1433_v8 = vpop.permute.xlu0 %1432 }
 0x536   : > { %1454 = vst.msk [vmem:[#allocation3 + $0x18] sm:$0xff] %vm1450_vm3, %v1433_v8 }
 0x537   : > { %v1427_v30 = vpop.permute.xlu1 %1426 }
 0x538   : > { %1451 = vst.msk [vmem:[#allocation3] sm:$0xff] %vm1450_vm3, %v1427_v30 }
 0x539   : > { %v1429_v14 = vpop.permute.xlu0 %1428 }
 0x53a   : > { %1452 = vst.msk [vmem:[#allocation3 + $0x8] sm:$0xff] %vm1450_vm3, %v1429_v14 }
 0x543   : > { %v6391_v37 = vpop.f32.mrb[32].mxu0 }
 0x544   : > { %v1707_v47 = vadd.f32 1e-06, %v6391_v37  ;;  %v6394_v11 = vpop.f32.mrb[33].mxu0 }
 0x545   : > { %v6396_v19 = vpop.f32.mrb[34].mxu0  ;;  %v1705_v54 = vadd.f32 1e-06, %v6394_v11 }
 0x546   : > { %5219 = vrcp.f32 %v1707_v47  ;;  %v1708_v24 = vadd.f32 1e-06, %v6396_v19  ;;  %v6400_v50 = vpop.f32.mrb[35].mxu0 }
 0x547   : > { %v1706_v3 = vadd.f32 1e-06, %v6400_v50 }
 0x548   : > { %5221 = vrcp.f32 %v1708_v24 }
 0x549   : > { %5223 = vrcp.f32 %v1705_v54 }
 0x54a   : > { %5225 = vrcp.f32 %v1706_v3 }
 0x54b   : > { %v6403_v5 = vpop.f32.mrb[36].mxu0 }
 0x54c   : > { %v1711_v6 = vadd.f32 1e-06, %v6403_v5  ;;  %v6406_v46 = vpop.f32.mrb[37].mxu0 }
 0x54d   : > { %v6408_v45 = vpop.f32.mrb[38].mxu0  ;;  %v1709_v49 = vadd.f32 1e-06, %v6406_v46 }
 0x54e   : > { %5227 = vrcp.f32 %v1711_v6  ;;  %v1712_v7 = vadd.f32 1e-06, %v6408_v45  ;;  %v6412_v17 = vpop.f32.mrb[39].mxu0 }
 0x54f   : > { %v1710_v22 = vadd.f32 1e-06, %v6412_v17 }
 0x550   : > { %v5220_v18 = vpop.eup %5219  ;;  %5229 = vrcp.f32 %v1712_v7 }
 0x551   : > { %1733 = vperm.xlu1 %5039, %v5220_v18   ;;  %5231 = vrcp.f32 %v1709_v49 }
 0x552   : > { %v5222_v23 = vpop.eup %5221  ;;  %5233 = vrcp.f32 %v1710_v22 }
 0x553   : > { %1738 = vperm.xlu0 %5040, %v5222_v23   ;;  %v5224_v53 = vpop.eup %5223 }
 0x554   : > { %v5226_v9 = vpop.eup %5225 }
 0x555   : > { %1723 = vperm.xlu1 %5039, %v5224_v53  }
 0x557   : > { %1728 = vperm.xlu0 %5040, %v5226_v9  }
 0x558   : > { %v5228_v12 = vpop.eup %5227 }
 0x559   : > { %1753 = vperm.xlu1 %5039, %v5228_v12  }
 0x55a   : > { %v5230_v16 = vpop.eup %5229 }
 0x55b   : > { %1758 = vperm.xlu0 %5040, %v5230_v16   ;;  %v5232_v21 = vpop.eup %5231 }
 0x55c   : > { %v5234_v26 = vpop.eup %5233 }
 0x55d   : > { %1743 = vperm.xlu1 %5039, %v5232_v21  }
 0x55f   : > { %1748 = vperm.xlu0 %5040, %v5234_v26  }
 0x563   : > { %v4789_v55 = vpop.f32.mrb[40].mxu0 }
 0x564   : > { %v1917_v31 = vmul.f32 0.31622776, %v4789_v55  ;;  %v1884_v32 = vpop.f32.mrb[41].mxu0 }
 0x565   : > { %v1915_v33 = vmul.f32 0.31622776, %v1884_v32  ;;  %v4790_v58 = vpop.f32.mrb[42].mxu0 }
 0x566   : > { %v4318_v41 = vclamps-f32 %v1917_v31, 5.0  ;;  %v1918_v34 = vmul.f32 0.31622776, %v4790_v58  ;;  %v1887_v52 = vpop.f32.mrb[43].mxu0  ;;  %v6418_v58 = vld [vmem:[%s7068_s1 + $0x10] sm:$0xff] }
 0x567   : > { %v4316_v51 = vclamps-f32 %v1915_v33, 5.0  ;;  %v1916_v61 = vmul.f32 0.31622776, %v1887_v52 }
 0x568   : > { %v1943_v27 = vmul.f32 1.442695, %v4318_v41  ;;  %v4319_v2 = vclamps-f32 %v1918_v34, 5.0  ;;  %v6424_v34 = vld [vmem:[%s7068_s1 + $0x18] sm:$0xff] }
 0x569   : > { %v1939_v60 = vmul.f32 1.442695, %v4316_v51  ;;  %v4317_v8 = vclamps-f32 %v1916_v61, 5.0  ;;  %v6430_v51 = vld [vmem:[%s7068_s1] sm:$0xff] }
 0x56a   : > { %5235 = vpow2.f32 %v1943_v27  ;;  %v1945_v30 = vmul.f32 1.442695, %v4319_v2  ;;  %v6436_v27 = vld [vmem:[%s7068_s1 + $0x8] sm:$0xff] }
 0x56b   : > { %5237 = vpow2.f32 %v1939_v60  ;;  %v1941_v14 = vmul.f32 1.442695, %v4317_v8  ;;  %v4793_v47 = vpop.f32.mrb[44].mxu0 }
 0x56c   : > { %5239 = vpow2.f32 %v1945_v30  ;;  %v1921_v54 = vmul.f32 0.31622776, %v4793_v47  ;;  %v1900_v24 = vpop.f32.mrb[45].mxu0  ;;  %v2190_v47 = vsel %vm453_vm0, %v6112_v38, 0 }
 0x56d   : > { %5241 = vpow2.f32 %v1941_v14  ;;  %v1919_v3 = vmul.f32 0.31622776, %v1900_v24  ;;  %v4794_v6 = vpop.f32.mrb[46].mxu0 }
 0x56e   : > { %v4322_v49 = vclamps-f32 %v1921_v54, 5.0  ;;  %v1922_v7 = vmul.f32 0.31622776, %v4794_v6  ;;  %v1903_v18 = vpop.f32.mrb[47].mxu0 }
 0x56f   : > { %v4320_v22 = vclamps-f32 %v1919_v3, 5.0  ;;  %v1920_v23 = vmul.f32 0.31622776, %v1903_v18  ;;  %v6448_v3 = vld [vmem:[%s7068_s1 + $0x30] sm:$0xff] }
 0x570   : > { %v1951_v53 = vmul.f32 1.442695, %v4322_v49  ;;  %v4323_v9 = vclamps-f32 %v1922_v7, 5.0  ;;  %v6454_v49 = vld [vmem:[%s7068_s1 + $0x38] sm:$0xff]  ;;  %v6460_v7 = vld [vmem:[%s7068_s1 + $0x20] sm:$0xff] }
 0x571   : > { %v1947_v12 = vmul.f32 1.442695, %v4320_v22  ;;  %v4321_v16 = vclamps-f32 %v1920_v23, 5.0  ;;  %v6466_v22 = vld [vmem:[%s7068_s1 + $0x28] sm:$0xff] }
 0x572   : > { %5243 = vpow2.f32 %v1951_v53  ;;  %v1953_v21 = vmul.f32 1.442695, %v4323_v9 }
 0x573   : > { %5245 = vpow2.f32 %v1947_v12  ;;  %v1949_v26 = vmul.f32 1.442695, %v4321_v16  ;;  %v2193_v12 = vsel %vm453_vm0, %v6110_v36, 0  ;;  %v2196_v16 = vsel %vm453_vm0, %v6116_v13, 0 }
 0x574   : > { %v5236_v55 = vpop.eup %5235  ;;  %5247 = vpow2.f32 %v1953_v21  ;;  %v2199_v21 = vsel %vm453_vm0, %v6114_v10, 0 }
 0x575   : > { %v5238_v31 = vpop.eup %5237  ;;  %5249 = vpow2.f32 %v1949_v26  ;;  %v1957_v41 = vmul.f32 %v6418_v58, %v5236_v55 }
 0x576   : > { %v5240_v32 = vpop.eup %5239  ;;  %v1955_v61 = vmul.f32 %v6430_v51, %v5238_v31 }
 0x577   : > { %v5242_v33 = vpop.eup %5241  ;;  %v1958_v52 = vmul.f32 %v6424_v34, %v5240_v32 }
 0x578   : > { %v1956_v2 = vmul.f32 %v6436_v27, %v5242_v33 }
 0x579   : > { %v1964_v60 = vpack.c.bf16 %v1958_v52, %v1957_v41 }
 0x57a   : > { %v1963_v8 = vpack.c.bf16 %v1956_v2, %v1955_v61 }
 0x57c   : > { %v5244_v30 = vpop.eup %5243  ;;  %4803 = vmatprep.mubr.msk.bf16.mxu1 %vm595_vm1, %v1963_v8 }
 0x57d   : > { %v5246_v14 = vpop.eup %5245  ;;  %4804 = vmatmul.mubr.msk.bf16.vlgmr.msra.gmra.mrb[48].mxu1 %vm595_vm1, %v1964_v60  ;;  %v1961_v6 = vmul.f32 %v6448_v3, %v5244_v30 }
 0x57e   : > { %v5248_v54 = vpop.eup %5247  ;;  %4812 = vmatpush3.bf16.xpose.msra.mxu1 %v2190_v47  ;;  %v1959_v18 = vmul.f32 %v6460_v7, %v5246_v14 }
 0x57f   : > { %v5250_v24 = vpop.eup %5249  ;;  %5002 = vmatprep.subr.msk.bf16.mxu1 %vm453_vm0, %v6110_v36  ;;  %v1962_v38 = vmul.f32 %v6454_v49, %v5248_v54 }
 0x580   : > { %v1960_v23 = vmul.f32 %v6466_v22, %v5250_v24 }
 0x581   : > { %v1966_v53 = vpack.c.bf16 %v1962_v38, %v1961_v6 }
 0x582   : > { %v1965_v9 = vpack.c.bf16 %v1960_v23, %v1959_v18 }
 0x584   : > { %4807 = vmatprep.mubr.msk.bf16.mxu1 %vm595_vm1, %v1965_v9 }
 0x585   : > { %4808 = vmatmul.mubr.msk.bf16.gmra.mrb[52].mxu1 %vm595_vm1, %v1966_v53 }
 0x586   : > { %4814 = vmatpush3.bf16.xpose.msra.mxu1 %v2193_v12  ;;  %4819 = vmatprep.mubr.msk.bf16.mxu1 %vm453_vm0, %v6122_v48 }
 0x587   : > { %5003 = vmatprep.subr.msk.bf16.mxu1 %vm453_vm0, %v6116_v13 }
 0x58e   : > { %4816 = vmatpush3.bf16.xpose.msra.mxu1 %v2196_v16 }
 0x58f   : > { %5004 = vmatprep.subr.msk.bf16.mxu1 %vm453_vm0, %v6114_v10 }
 0x596   : > { %4818 = vmatpush3.bf16.xpose.msra.mxu1 %v2199_v21 }
 0x597   : > { %4859 = vmatprep.subr.bf16.mxu1 %v6203_v57 }
 0x59d   : > { %4820 = vmatmul.mubr.msk.bf16.vlgmr.msra.gmra.mrb[56].mxu1 %vm453_vm0, %v6118_v39 }
 0x59e   : > { %4823 = vmatprep.mubr.msk.bf16.mxu1 %vm453_vm0, %v6130_v28  ;;  %4860 = vmatpush3.bf16.msra.mxu1 %v6203_v57 }
 0x59f   : > { %4861 = vmatprep.subr.bf16.mxu1 %v6201_v0 }
 0x5a2   : > { %4862 = vmatpush3.bf16.msra.mxu1 %v6201_v0 }
 0x5a3   : > { %4863 = vmatprep.subr.bf16.mxu1 %v6210_v4 }
 0x5a5   : > { %4824 = vmatmul.mubr.msk.bf16.gmra.mrb[60].mxu1 %vm453_vm0, %v6126_v42 }
 0x5a6   : > { %4864 = vmatpush3.bf16.msra.mxu1 %v6210_v4 }
 0x5a7   : > { %4865 = vmatprep.subr.bf16.mxu1 %v6207_v43 }
 0x5aa   : > { %4866 = vmatpush3.bf16.msra.mxu1 %v6207_v43 }
 0x5ab   : > { %5009 = vmatprep.subr.msk.bf16.mxu1 %vm453_vm0, %v6219_v62 }
 0x5d0   : > { %v1734_v36 = vpop.permute.xlu1 %1733 }
 0x5d1   : > { %v1763_v10 = vmul.f32 %v6391_v37, %v1734_v36 }
 0x5d2   : > { %v1739_v13 = vpop.permute.xlu0 %1738 }
 0x5d3   : > { %v1764_v39 = vmul.f32 %v6396_v19, %v1739_v13  ;;  %1781 = vrot.lane.b32.xlu1 %v1763_v10, %s5481_s17 }
 0x5d4   : > { %v1724_v48 = vpop.permute.xlu1 %1723 }
 0x5d5   : > { %v1761_v42 = vmul.f32 %v1724_v48, %v6394_v11  ;;  %1783 = vrot.lane.b32.xlu0 %v1764_v39, %s5481_s17 }
 0x5d6   : > { %v1729_v28 = vpop.permute.xlu0 %1728 }
 0x5d7   : > { %v1762_v0 = vmul.f32 %v1729_v28, %v6400_v50  ;;  %1777 = vrot.lane.b32.xlu1 %v1761_v42, %s5481_s17 }
 0x5d8   : > { %v1754_v57 = vpop.permute.xlu1 %1753 }
 0x5d9   : > { %v6507_v43 = vmul.f32 %v6403_v5, %v1754_v57  ;;  %1779 = vrot.lane.b32.xlu0 %v1762_v0, %s5481_s17 }
 0x5da   : > { %v1759_v4 = vpop.permute.xlu0 %1758 }
 0x5db   : > { %v6511_v37 = vmul.f32 %v6408_v45, %v1759_v4 }
 0x5dc   : > { %v6513_v19 = vpop.permute.xlu1 %1743 }
 0x5de   : > { %v6515_v11 = vpop.permute.xlu0 %1748 }
 0x645   : > { %v1782_v26 = vpop.permute.xlu1 %1781 }
 0x646   : > { %1804 = vst.msk [vmem:[#allocation3 + $0x10] sm:$0xff] %vm1801_vm4, %v1782_v26 }
 0x647   : > { %v1784_v50 = vpop.permute.xlu0 %1783 }
 0x648   : > { %1805 = vst.msk [vmem:[#allocation3 + $0x18] sm:$0xff] %vm1801_vm4, %v1784_v50 }
 0x649   : > { %v1778_v55 = vpop.permute.xlu1 %1777 }
 0x64a   : > { %1802 = vst.msk [vmem:[#allocation3] sm:$0xff] %vm1801_vm4, %v1778_v55 }
 0x64b   : > { %v1780_v5 = vpop.permute.xlu0 %1779 }
 0x64c   : > { %1803 = vst.msk [vmem:[#allocation3 + $0x8] sm:$0xff] %vm1801_vm4, %v1780_v5 }
 0x650   : > { %v6521_v31 = vpop.f32.mrb[48].mxu1 }
 0x651   : > { %v2058_v45 = vadd.f32 1e-06, %v6521_v31  ;;  %v6524_v32 = vpop.f32.mrb[49].mxu1 }
 0x652   : > { %v6526_v33 = vpop.f32.mrb[50].mxu1  ;;  %v2056_v41 = vadd.f32 1e-06, %v6524_v32 }
 0x653   : > { %5251 = vrcp.f32 %v2058_v45  ;;  %v2059_v52 = vadd.f32 1e-06, %v6526_v33  ;;  %v6530_v61 = vpop.f32.mrb[51].mxu1 }
 0x654   : > { %v2057_v2 = vadd.f32 1e-06, %v6530_v61 }
 0x655   : > { %5253 = vrcp.f32 %v2059_v52 }
 0x656   : > { %5255 = vrcp.f32 %v2056_v41 }
 0x657   : > { %5257 = vrcp.f32 %v2057_v2 }
 0x658   : > { %v6533_v60 = vpop.f32.mrb[52].mxu1 }
 0x659   : > { %v2062_v8 = vadd.f32 1e-06, %v6533_v60  ;;  %v6536_v30 = vpop.f32.mrb[53].mxu1 }
 0x65a   : > { %v6538_v14 = vpop.f32.mrb[54].mxu1  ;;  %v2060_v47 = vadd.f32 1e-06, %v6536_v30 }
 0x65b   : > { %5259 = vrcp.f32 %v2062_v8  ;;  %v2063_v54 = vadd.f32 1e-06, %v6538_v14  ;;  %v6542_v24 = vpop.f32.mrb[55].mxu1 }
 0x65c   : > { %v2061_v38 = vadd.f32 1e-06, %v6542_v24 }
 0x65d   : > { %v5252_v6 = vpop.eup %5251  ;;  %5261 = vrcp.f32 %v2063_v54 }
 0x65e   : > { %2084 = vperm.xlu1 %5039, %v5252_v6   ;;  %5263 = vrcp.f32 %v2060_v47 }
 0x65f   : > { %v5254_v18 = vpop.eup %5253  ;;  %5265 = vrcp.f32 %v2061_v38 }
 0x660   : > { %2089 = vperm.xlu0 %5040, %v5254_v18   ;;  %v5256_v23 = vpop.eup %5255 }
 0x661   : > { %v5258_v53 = vpop.eup %5257 }
 0x662   : > { %2074 = vperm.xlu1 %5039, %v5256_v23  }
 0x664   : > { %2079 = vperm.xlu0 %5040, %v5258_v53  }
 0x665   : > { %v5260_v9 = vpop.eup %5259 }
 0x666   : > { %2104 = vperm.xlu1 %5039, %v5260_v9  }
 0x667   : > { %v5262_v12 = vpop.eup %5261 }
 0x668   : > { %2109 = vperm.xlu0 %5040, %v5262_v12   ;;  %v5264_v16 = vpop.eup %5263 }
 0x669   : > { %v5266_v21 = vpop.eup %5265 }
 0x66a   : > { %2094 = vperm.xlu1 %5039, %v5264_v16  }
 0x66c   : > { %2099 = vperm.xlu0 %5040, %v5266_v21  }
 0x670   : > { %v4821_v36 = vpop.f32.mrb[56].mxu1 }
 0x671   : > { %v2268_v10 = vmul.f32 0.31622776, %v4821_v36  ;;  %v2235_v13 = vpop.f32.mrb[57].mxu1 }
 0x672   : > { %v2266_v39 = vmul.f32 0.31622776, %v2235_v13  ;;  %v4822_v48 = vpop.f32.mrb[58].mxu1 }
 0x673   : > { %v4334_v42 = vclamps-f32 %v2268_v10, 5.0  ;;  %v2269_v28 = vmul.f32 0.31622776, %v4822_v48  ;;  %v2238_v0 = vpop.f32.mrb[59].mxu1 }
 0x674   : > { %v4332_v57 = vclamps-f32 %v2266_v39, 5.0  ;;  %v2267_v4 = vmul.f32 0.31622776, %v2238_v0 }
 0x675   : > { %v2294_v26 = vmul.f32 1.442695, %v4334_v42  ;;  %v4335_v50 = vclamps-f32 %v2269_v28, 5.0 }
 0x676   : > { %v2290_v55 = vmul.f32 1.442695, %v4332_v57  ;;  %v4333_v5 = vclamps-f32 %v2267_v4, 5.0 }
 0x677   : > { %5267 = vpow2.f32 %v2294_v26  ;;  %v2296_v45 = vmul.f32 1.442695, %v4335_v50 }
 0x678   : > { %5269 = vpow2.f32 %v2290_v55  ;;  %v2292_v41 = vmul.f32 1.442695, %v4333_v5  ;;  %v4825_v52 = vpop.f32.mrb[60].mxu1 }
 0x679   : > { %5271 = vpow2.f32 %v2296_v45  ;;  %v2272_v2 = vmul.f32 0.31622776, %v4825_v52  ;;  %v2251_v8 = vpop.f32.mrb[61].mxu1  ;;  %v2541_v45 = vsel %vm453_vm0, %v6169_v35, 0  ;;  %v2544_v35 = vsel %vm453_vm0, %v6163_v59, 0 }
 0x67a   : > { %5273 = vpow2.f32 %v2292_v41  ;;  %v2270_v47 = vmul.f32 0.31622776, %v2251_v8  ;;  %v4826_v54 = vpop.f32.mrb[62].mxu1 }
 0x67b   : > { %v4338_v6 = vclamps-f32 %v2272_v2, 5.0  ;;  %v2273_v38 = vmul.f32 0.31622776, %v4826_v54  ;;  %v2254_v18 = vpop.f32.mrb[63].mxu1 }
 0x67c   : > { %v4336_v23 = vclamps-f32 %v2270_v47, 5.0  ;;  %v2271_v53 = vmul.f32 0.31622776, %v2254_v18  ;;  %v7142_v18 = vld [vmem:[#allocation18_spill] sm:$0xff] }
 0x67d   : > { %v2302_v9 = vmul.f32 1.442695, %v4338_v6  ;;  %v4339_v12 = vclamps-f32 %v2273_v38, 5.0 }
 0x67e   : > { %v2298_v16 = vmul.f32 1.442695, %v4336_v23  ;;  %v4337_v21 = vclamps-f32 %v2271_v53, 5.0  ;;  %v2547_v23 = vsel %vm453_vm0, %v7142_v18, 0  ;;  %v7143_v53 = vld [vmem:[#allocation17_spill] sm:$0xff] }
 0x67f   : > { %5275 = vpow2.f32 %v2302_v9  ;;  %v2304_v36 = vmul.f32 1.442695, %v4339_v12  ;;  %v2550_v9 = vsel %vm453_vm0, %v7143_v53, 0  ;;  %v7144_v12 = vld [vmem:[#allocation30_spill] sm:$0xff] }
 0x680   : > { %5277 = vpow2.f32 %v2298_v16  ;;  %v2300_v10 = vmul.f32 1.442695, %v4337_v21  ;;  %v7147_v16 = vld [vmem:[#allocation29_spill] sm:$0xff]  ;;  %v7148_v21 = vld [vmem:[#allocation32_spill] sm:$0xff] }
 0x681   : > { %v5268_v13 = vpop.eup %5267  ;;  %5279 = vpow2.f32 %v2304_v36  ;;  %v7149_v36 = vld [vmem:[#allocation20_spill] sm:$0xff] }
 0x682   : > { %v5270_v39 = vpop.eup %5269  ;;  %5281 = vpow2.f32 %v2300_v10  ;;  %v2308_v28 = vmul.f32 %v6418_v58, %v5268_v13  ;;  %v7150_v10 = vld [vmem:[#allocation31_spill] sm:$0xff] }
 0x683   : > { %v5272_v48 = vpop.eup %5271  ;;  %v2306_v57 = vmul.f32 %v6430_v51, %v5270_v39 }
 0x684   : > { %v5274_v42 = vpop.eup %5273  ;;  %v2309_v0 = vmul.f32 %v6424_v34, %v5272_v48 }
 0x685   : > { %v2307_v4 = vmul.f32 %v6436_v27, %v5274_v42 }
 0x686   : > { %v2315_v26 = vpack.c.bf16 %v2309_v0, %v2308_v28 }
 0x687   : > { %v2314_v50 = vpack.c.bf16 %v2307_v4, %v2306_v57 }
 0x689   : > { %v5276_v55 = vpop.eup %5275  ;;  %4835 = vmatprep.mubr.msk.bf16.mxu0 %vm595_vm1, %v2314_v50 }
 0x68a   : > { %v5278_v5 = vpop.eup %5277  ;;  %4836 = vmatmul.mubr.msk.bf16.vlgmr.msra.gmra.mrb[48].mxu0 %vm595_vm1, %v2315_v26  ;;  %v2312_v2 = vmul.f32 %v6448_v3, %v5276_v55 }
 0x68b   : > { %v5280_v41 = vpop.eup %5279  ;;  %4844 = vmatpush3.bf16.xpose.msra.mxu0 %v2541_v45  ;;  %v2310_v47 = vmul.f32 %v6460_v7, %v5278_v5 }
 0x68c   : > { %v5282_v52 = vpop.eup %5281  ;;  %5006 = vmatprep.subr.msk.bf16.mxu0 %vm453_vm0, %v6163_v59  ;;  %v2313_v8 = vmul.f32 %v6454_v49, %v5280_v41  ;;  %v7145_v59 = vld [vmem:[#allocation19_spill] sm:$0xff] }
 0x68d   : > { %v2311_v54 = vmul.f32 %v6466_v22, %v5282_v52 }
 0x68e   : > { %v2317_v6 = vpack.c.bf16 %v2313_v8, %v2312_v2 }
 0x68f   : > { %v2316_v38 = vpack.c.bf16 %v2311_v54, %v2310_v47 }
 0x691   : > { %4839 = vmatprep.mubr.msk.bf16.mxu0 %vm595_vm1, %v2316_v38 }
 0x692   : > { %4840 = vmatmul.mubr.msk.bf16.gmra.mrb[52].mxu0 %vm595_vm1, %v2317_v6 }
 0x693   : > { %4846 = vmatpush3.bf16.xpose.msra.mxu0 %v2544_v35  ;;  %4851 = vmatprep.mubr.msk.bf16.mxu0 %vm453_vm0, %v6189_v40  ;;  %v7146_v40 = vld [vmem:[#allocation21_spill] sm:$0xff] }
 0x694   : > { %5007 = vmatprep.subr.msk.bf16.mxu0 %vm453_vm0, %v7142_v18 }
 0x69b   : > { %4848 = vmatpush3.bf16.xpose.msra.mxu0 %v2547_v23 }
 0x69c   : > { %5008 = vmatprep.subr.msk.bf16.mxu0 %vm453_vm0, %v7143_v53 }
 0x6a3   : > { %4850 = vmatpush3.bf16.xpose.msra.mxu0 %v2550_v9 }
 0x6a4   : > { %4891 = vmatprep.subr.bf16.mxu0 %v7144_v12 }
 0x6aa   : > { %4852 = vmatmul.mubr.msk.bf16.vlgmr.msra.gmra.mrb[56].mxu0 %vm453_vm0, %v7145_v59 }
 0x6ab   : > { %4855 = vmatprep.mubr.msk.bf16.mxu0 %vm453_vm0, %v7146_v40  ;;  %4892 = vmatpush3.bf16.msra.mxu0 %v7144_v12 }
 0x6ac   : > { %4893 = vmatprep.subr.bf16.mxu0 %v7147_v16 }
 0x6af   : > { %4894 = vmatpush3.bf16.msra.mxu0 %v7147_v16 }
 0x6b0   : > { %4895 = vmatprep.subr.bf16.mxu0 %v7148_v21 }
 0x6b2   : > { %4856 = vmatmul.mubr.msk.bf16.gmra.mrb[60].mxu0 %vm453_vm0, %v7149_v36 }
 0x6b3   : > { %4896 = vmatpush3.bf16.msra.mxu0 %v7148_v21 }
 0x6b4   : > { %4897 = vmatprep.subr.bf16.mxu0 %v7150_v10 }
 0x6b7   : > { %4898 = vmatpush3.bf16.msra.mxu0 %v7150_v10 }
 0x6dd   : > { %v2085_v13 = vpop.permute.xlu1 %2084 }
 0x6de   : > { %v2114_v39 = vmul.f32 %v6521_v31, %v2085_v13 }
 0x6df   : > { %v2090_v48 = vpop.permute.xlu0 %2089 }
 0x6e0   : > { %v2115_v42 = vmul.f32 %v6526_v33, %v2090_v48  ;;  %2132 = vrot.lane.b32.xlu1 %v2114_v39, %s5480_s0 }
 0x6e1   : > { %v2075_v28 = vpop.permute.xlu1 %2074 }
 0x6e2   : > { %v2112_v0 = vmul.f32 %v2075_v28, %v6524_v32  ;;  %2134 = vrot.lane.b32.xlu0 %v2115_v42, %s5480_s0 }
 0x6e3   : > { %v2080_v57 = vpop.permute.xlu0 %2079 }
 0x6e4   : > { %v2113_v4 = vmul.f32 %v2080_v57, %v6530_v61  ;;  %2128 = vrot.lane.b32.xlu1 %v2112_v0, %s5480_s0 }
 0x6e5   : > { %v2105_v26 = vpop.permute.xlu1 %2104 }
 0x6e6   : > { %v6595_v50 = vmul.f32 %v6533_v60, %v2105_v26  ;;  %2130 = vrot.lane.b32.xlu0 %v2113_v4, %s5480_s0 }
 0x6e7   : > { %v2110_v31 = vpop.permute.xlu0 %2109 }
 0x6e8   : > { %v6599_v33 = vmul.f32 %v6538_v14, %v2110_v31 }
 0x6e9   : > { %v6601_v55 = vpop.permute.xlu1 %2094 }
 0x6eb   : > { %v6603_v32 = vpop.permute.xlu0 %2099 }
 0x752   : > { %v2133_v5 = vpop.permute.xlu1 %2132 }
 0x753   : > { %2155 = vst.msk [vmem:[#allocation3 + $0x10] sm:$0xff] %vm2152_vm5, %v2133_v5 }
 0x754   : > { %v2135_v61 = vpop.permute.xlu0 %2134 }
 0x755   : > { %2156 = vst.msk [vmem:[#allocation3 + $0x18] sm:$0xff] %vm2152_vm5, %v2135_v61 }
 0x756   : > { %v2129_v45 = vpop.permute.xlu1 %2128 }
 0x757   : > { %2153 = vst.msk [vmem:[#allocation3] sm:$0xff] %vm2152_vm5, %v2129_v45 }
 0x758   : > { %v2131_v60 = vpop.permute.xlu0 %2130 }
 0x759   : > { %2154 = vst.msk [vmem:[#allocation3 + $0x8] sm:$0xff] %vm2152_vm5, %v2131_v60 }
 0x75d   : > { %v6609_v41 = vpop.f32.mrb[48].mxu0 }
 0x75e   : > { %v2409_v14 = vadd.f32 1e-06, %v6609_v41  ;;  %v6612_v52 = vpop.f32.mrb[49].mxu0 }
 0x75f   : > { %v6614_v2 = vpop.f32.mrb[50].mxu0  ;;  %v2407_v8 = vadd.f32 1e-06, %v6612_v52 }
 0x760   : > { %5283 = vrcp.f32 %v2409_v14  ;;  %v2410_v47 = vadd.f32 1e-06, %v6614_v2  ;;  %v6618_v54 = vpop.f32.mrb[51].mxu0 }
 0x761   : > { %v2408_v6 = vadd.f32 1e-06, %v6618_v54 }
 0x762   : > { %5285 = vrcp.f32 %v2410_v47 }
 0x763   : > { %5287 = vrcp.f32 %v2407_v8 }
 0x764   : > { %5289 = vrcp.f32 %v2408_v6 }
 0x765   : > { %v6621_v38 = vpop.f32.mrb[52].mxu0 }
 0x766   : > { %v2413_v35 = vadd.f32 1e-06, %v6621_v38  ;;  %v6624_v18 = vpop.f32.mrb[53].mxu0 }
 0x767   : > { %v6626_v23 = vpop.f32.mrb[54].mxu0  ;;  %v2411_v53 = vadd.f32 1e-06, %v6624_v18 }
 0x768   : > { %5291 = vrcp.f32 %v2413_v35  ;;  %v2414_v9 = vadd.f32 1e-06, %v6626_v23  ;;  %v6630_v12 = vpop.f32.mrb[55].mxu0 }
 0x769   : > { %v2412_v40 = vadd.f32 1e-06, %v6630_v12 }
 0x76a   : > { %v5284_v59 = vpop.eup %5283  ;;  %5293 = vrcp.f32 %v2414_v9 }
 0x76b   : > { %2435 = vperm.xlu1 %5039, %v5284_v59   ;;  %5295 = vrcp.f32 %v2411_v53 }
 0x76c   : > { %v5286_v16 = vpop.eup %5285  ;;  %5297 = vrcp.f32 %v2412_v40 }
 0x76d   : > { %2440 = vperm.xlu0 %5040, %v5286_v16   ;;  %v5288_v21 = vpop.eup %5287 }
 0x76e   : > { %v5290_v36 = vpop.eup %5289 }
 0x76f   : > { %2425 = vperm.xlu1 %5039, %v5288_v21  }
 0x771   : > { %2430 = vperm.xlu0 %5040, %v5290_v36  }
 0x772   : > { %v5292_v10 = vpop.eup %5291 }
 0x773   : > { %2455 = vperm.xlu1 %5039, %v5292_v10  }
 0x774   : > { %v5294_v13 = vpop.eup %5293 }
 0x775   : > { %2460 = vperm.xlu0 %5040, %v5294_v13   ;;  %v5296_v39 = vpop.eup %5295 }
 0x776   : > { %v5298_v48 = vpop.eup %5297 }
 0x777   : > { %2445 = vperm.xlu1 %5039, %v5296_v39  }
 0x779   : > { %2450 = vperm.xlu0 %5040, %v5298_v48  }
 0x77d   : > { %v4853_v42 = vpop.f32.mrb[56].mxu0 }
 0x77e   : > { %v2619_v28 = vmul.f32 0.31622776, %v4853_v42  ;;  %v2586_v0 = vpop.f32.mrb[57].mxu0 }
 0x77f   : > { %v2617_v57 = vmul.f32 0.31622776, %v2586_v0  ;;  %v4854_v4 = vpop.f32.mrb[58].mxu0 }
 0x780   : > { %v4350_v26 = vclamps-f32 %v2619_v28, 5.0  ;;  %v2620_v31 = vmul.f32 0.31622776, %v4854_v4  ;;  %v2589_v5 = vpop.f32.mrb[59].mxu0 }
 0x781   : > { %v4348_v61 = vclamps-f32 %v2617_v57, 5.0  ;;  %v2618_v45 = vmul.f32 0.31622776, %v2589_v5 }
 0x782   : > { %v2645_v60 = vmul.f32 1.442695, %v4350_v26  ;;  %v4351_v14 = vclamps-f32 %v2620_v31, 5.0 }
 0x783   : > { %v2641_v8 = vmul.f32 1.442695, %v4348_v61  ;;  %v4349_v47 = vclamps-f32 %v2618_v45, 5.0 }
 0x784   : > { %5299 = vpow2.f32 %v2645_v60  ;;  %v2647_v6 = vmul.f32 1.442695, %v4351_v14 }
 0x785   : > { %5301 = vpow2.f32 %v2641_v8  ;;  %v2643_v35 = vmul.f32 1.442695, %v4349_v47  ;;  %v4857_v53 = vpop.f32.mrb[60].mxu0 }
 0x786   : > { %5303 = vpow2.f32 %v2647_v6  ;;  %v2623_v9 = vmul.f32 0.31622776, %v4857_v53  ;;  %v2602_v59 = vpop.f32.mrb[61].mxu0 }
 0x787   : > { %5305 = vpow2.f32 %v2643_v35  ;;  %v2621_v40 = vmul.f32 0.31622776, %v2602_v59  ;;  %v4858_v16 = vpop.f32.mrb[62].mxu0 }
 0x788   : > { %v4354_v21 = vclamps-f32 %v2623_v9, 5.0  ;;  %v2624_v36 = vmul.f32 0.31622776, %v4858_v16  ;;  %v2605_v10 = vpop.f32.mrb[63].mxu0  ;;  %v2892_v9 = vsel %vm453_vm0, %v6219_v62, 0  ;;  %v7151_v16 = vld [vmem:[#allocation22_spill] sm:$0xff] }
 0x789   : > { %v4352_v13 = vclamps-f32 %v2621_v40, 5.0  ;;  %v2622_v39 = vmul.f32 0.31622776, %v2605_v10  ;;  %v2895_v62 = vsel %vm453_vm0, %v7151_v16, 0 }
 0x78a   : > { %v2653_v48 = vmul.f32 1.442695, %v4354_v21  ;;  %v4355_v42 = vclamps-f32 %v2624_v36, 5.0 }
 0x78b   : > { %v2649_v28 = vmul.f32 1.442695, %v4352_v13  ;;  %v4353_v0 = vclamps-f32 %v2622_v39, 5.0 }
 0x78c   : > { %5307 = vpow2.f32 %v2653_v48  ;;  %v2655_v57 = vmul.f32 1.442695, %v4355_v42  ;;  %v7152_v42 = vld [vmem:[#allocation26_spill] sm:$0xff] }
 0x78d   : > { %5309 = vpow2.f32 %v2649_v28  ;;  %v2651_v4 = vmul.f32 1.442695, %v4353_v0  ;;  %v7153_v28 = vld [vmem:[#allocation24_spill] sm:$0xff] }
 0x78e   : > { %v5300_v26 = vpop.eup %5299  ;;  %5311 = vpow2.f32 %v2655_v57  ;;  %v2898_v0 = vsel %vm453_vm0, %v7153_v28, 0  ;;  %v7154_v57 = vld [vmem:[#allocation23_spill] sm:$0xff] }
 0x78f   : > { %v5302_v31 = vpop.eup %5301  ;;  %5313 = vpow2.f32 %v2651_v4  ;;  %v2659_v45 = vmul.f32 %v6418_v58, %v5300_v26  ;;  %v2901_v4 = vsel %vm453_vm0, %v7154_v57, 0  ;;  %v7155_v26 = vld [vmem:[#allocation25_spill] sm:$0xff] }
 0x790   : > { %v5304_v5 = vpop.eup %5303  ;;  %v2657_v14 = vmul.f32 %v6430_v51, %v5302_v31  ;;  %v7156_v31 = vld [vmem:[#allocation28_spill] sm:$0xff] }
 0x791   : > { %v5306_v61 = vpop.eup %5305  ;;  %v2660_v60 = vmul.f32 %v6424_v34, %v5304_v5  ;;  %v7157_v5 = vld [vmem:[#allocation27_spill] sm:$0xff] }
 0x792   : > { %v2658_v8 = vmul.f32 %v6436_v27, %v5306_v61  ;;  %v7158_v61 = vmov 0  }
 0x793   : > { %v2666_v47 = vpack.c.bf16 %v2660_v60, %v2659_v45 }
 0x794   : > { %v2665_v6 = vpack.c.bf16 %v2658_v8, %v2657_v14 }
 0x796   : > { %v5308_v35 = vpop.eup %5307  ;;  %4867 = vmatprep.mubr.msk.bf16.mxu1 %vm595_vm1, %v2665_v6 }
 0x797   : > { %v5310_v53 = vpop.eup %5309  ;;  %4868 = vmatmul.mubr.msk.bf16.vlgmr.msra.gmra.mrb[64].mxu1 %vm595_vm1, %v2666_v47  ;;  %v2663_v21 = vmul.f32 %v6448_v3, %v5308_v35 }
 0x798   : > { %v5312_v59 = vpop.eup %5311  ;;  %4876 = vmatpush3.bf16.xpose.msra.mxu1 %v2892_v9  ;;  %v2661_v10 = vmul.f32 %v6460_v7, %v5310_v53 }
 0x799   : > { %v5314_v40 = vpop.eup %5313  ;;  %5010 = vmatprep.subr.msk.bf16.mxu1 %vm453_vm0, %v7151_v16  ;;  %v2664_v36 = vmul.f32 %v6454_v49, %v5312_v59 }
 0x79a   : > { %v2662_v13 = vmul.f32 %v6466_v22, %v5314_v40 }
 0x79b   : > { %v2668_v39 = vpack.c.bf16 %v2664_v36, %v2663_v21 }
 0x79c   : > { %v2667_v48 = vpack.c.bf16 %v2662_v13, %v2661_v10 }
 0x79e   : > { %4871 = vmatprep.mubr.msk.bf16.mxu1 %vm595_vm1, %v2667_v48 }
 0x79f   : > { %4872 = vmatmul.mubr.msk.bf16.gmra.mrb[68].mxu1 %vm595_vm1, %v2668_v39 }
 0x7a0   : > { %4878 = vmatpush3.bf16.xpose.msra.mxu1 %v2895_v62  ;;  %4883 = vmatprep.mubr.msk.bf16.mxu1 %vm453_vm0, %v7152_v42 }
 0x7a1   : > { %5011 = vmatprep.subr.msk.bf16.mxu1 %vm453_vm0, %v7153_v28 }
 0x7a8   : > { %4880 = vmatpush3.bf16.xpose.msra.mxu1 %v2898_v0 }
 0x7a9   : > { %5012 = vmatprep.subr.msk.bf16.mxu1 %vm453_vm0, %v7154_v57 }
 0x7b0   : > { %4882 = vmatpush3.bf16.xpose.msra.mxu1 %v2901_v4 }
 0x7b7   : > { %4884 = vmatmul.mubr.msk.bf16.vlgmr.msra.gmra.mrb[72].mxu1 %vm453_vm0, %v7155_v26 }
 0x7b8   : > { %4887 = vmatprep.mubr.msk.bf16.mxu1 %vm453_vm0, %v7156_v31 }
 0x7bf   : > { %4888 = vmatmul.mubr.msk.bf16.gmra.mrb[76].mxu1 %vm453_vm0, %v7157_v5 }
 0x7c0   : > { %3539 = vmatprep.mubr.bf16.mxu1 %v7158_v61 }
 0x7ea   : > { %v2436_v45 = vpop.permute.xlu1 %2435 }
 0x7eb   : > { %v2465_v60 = vmul.f32 %v6609_v41, %v2436_v45 }
 0x7ec   : > { %v2441_v14 = vpop.permute.xlu0 %2440 }
 0x7ed   : > { %v2466_v8 = vmul.f32 %v6614_v2, %v2441_v14  ;;  %2483 = vrot.lane.b32.xlu1 %v2465_v60, %s5479_s8 }
 0x7ee   : > { %v2426_v47 = vpop.permute.xlu1 %2425 }
 0x7ef   : > { %v2463_v6 = vmul.f32 %v2426_v47, %v6612_v52  ;;  %2485 = vrot.lane.b32.xlu0 %v2466_v8, %s5479_s8 }
 0x7f0   : > { %v2431_v35 = vpop.permute.xlu0 %2430 }
 0x7f1   : > { %v2464_v53 = vmul.f32 %v2431_v35, %v6618_v54  ;;  %2479 = vrot.lane.b32.xlu1 %v2463_v6, %s5479_s8 }
 0x7f2   : > { %v2456_v9 = vpop.permute.xlu1 %2455 }
 0x7f3   : > { %v6676_v59 = vmul.f32 %v6621_v38, %v2456_v9  ;;  %2481 = vrot.lane.b32.xlu0 %v2464_v53, %s5479_s8 }
 0x7f4   : > { %v2461_v41 = vpop.permute.xlu0 %2460 }
 0x7f5   : > { %v6680_v2 = vmul.f32 %v6626_v23, %v2461_v41 }
 0x7f6   : > { %v6682_v40 = vpop.permute.xlu1 %2445 }
 0x7f8   : > { %v6684_v52 = vpop.permute.xlu0 %2450 }
 0x85f   : > { %v2484_v16 = vpop.permute.xlu1 %2483 }
 0x860   : > { %2506 = vst.msk [vmem:[#allocation3 + $0x10] sm:$0xff] %vm2503_vm6, %v2484_v16 }
 0x861   : > { %v2486_v54 = vpop.permute.xlu0 %2485 }
 0x862   : > { %2507 = vst.msk [vmem:[#allocation3 + $0x18] sm:$0xff] %vm2503_vm6, %v2486_v54 }
 0x863   : > { %v2480_v21 = vpop.permute.xlu1 %2479 }
 0x864   : > { %2504 = vst.msk [vmem:[#allocation3] sm:$0xff] %vm2503_vm6, %v2480_v21 }
 0x865   : > { %v2482_v38 = vpop.permute.xlu0 %2481 }
 0x866   : > { %2505 = vst.msk [vmem:[#allocation3 + $0x8] sm:$0xff] %vm2503_vm6, %v2482_v38 }
 0x86a   : > { %v6690_v36 = vpop.f32.mrb[64].mxu1 }
 0x86b   : > { %v2760_v23 = vadd.f32 1e-06, %v6690_v36  ;;  %v6693_v10 = vpop.f32.mrb[65].mxu1 }
 0x86c   : > { %v6695_v13 = vpop.f32.mrb[66].mxu1  ;;  %v2758_v39 = vadd.f32 1e-06, %v6693_v10 }
 0x86d   : > { %5315 = vrcp.f32 %v2760_v23  ;;  %v2761_v48 = vadd.f32 1e-06, %v6695_v13  ;;  %v6699_v62 = vpop.f32.mrb[67].mxu1 }
 0x86e   : > { %v2759_v42 = vadd.f32 1e-06, %v6699_v62 }
 0x86f   : > { %5317 = vrcp.f32 %v2761_v48 }
 0x870   : > { %5319 = vrcp.f32 %v2758_v39 }
 0x871   : > { %5321 = vrcp.f32 %v2759_v42 }
 0x872   : > { %v6702_v28 = vpop.f32.mrb[68].mxu1 }
 0x873   : > { %v2764_v0 = vadd.f32 1e-06, %v6702_v28  ;;  %v6705_v57 = vpop.f32.mrb[69].mxu1 }
 0x874   : > { %v6707_v4 = vpop.f32.mrb[70].mxu1  ;;  %v2762_v26 = vadd.f32 1e-06, %v6705_v57 }
 0x875   : > { %5323 = vrcp.f32 %v2764_v0  ;;  %v2765_v31 = vadd.f32 1e-06, %v6707_v4  ;;  %v6711_v5 = vpop.f32.mrb[71].mxu1 }
 0x876   : > { %v2763_v60 = vadd.f32 1e-06, %v6711_v5 }
 0x877   : > { %v5316_v45 = vpop.eup %5315  ;;  %5325 = vrcp.f32 %v2765_v31 }
 0x878   : > { %2786 = vperm.xlu1 %5039, %v5316_v45   ;;  %5327 = vrcp.f32 %v2762_v26 }
 0x879   : > { %v5318_v14 = vpop.eup %5317  ;;  %5329 = vrcp.f32 %v2763_v60 }
 0x87a   : > { %2791 = vperm.xlu0 %5040, %v5318_v14   ;;  %v5320_v8 = vpop.eup %5319 }
 0x87b   : > { %v5322_v47 = vpop.eup %5321 }
 0x87c   : > { %2776 = vperm.xlu1 %5039, %v5320_v8  }
 0x87e   : > { %2781 = vperm.xlu0 %5040, %v5322_v47  }
 0x87f   : > { %v5324_v6 = vpop.eup %5323 }
 0x880   : > { %2806 = vperm.xlu1 %5039, %v5324_v6  }
 0x881   : > { %v5326_v35 = vpop.eup %5325 }
 0x882   : > { %2811 = vperm.xlu0 %5040, %v5326_v35   ;;  %v5328_v53 = vpop.eup %5327 }
 0x883   : > { %v5330_v9 = vpop.eup %5329 }
 0x884   : > { %2796 = vperm.xlu1 %5039, %v5328_v53  }
 0x886   : > { %2801 = vperm.xlu0 %5040, %v5330_v9  }
 0x88a   : > { %v4885_v41 = vpop.f32.mrb[72].mxu1 }
 0x88b   : > { %v2970_v16 = vmul.f32 0.31622776, %v4885_v41  ;;  %v2937_v54 = vpop.f32.mrb[73].mxu1 }
 0x88c   : > { %v2968_v21 = vmul.f32 0.31622776, %v2937_v54  ;;  %v4886_v38 = vpop.f32.mrb[74].mxu1 }
 0x88d   : > { %v4366_v23 = vclamps-f32 %v2970_v16, 5.0  ;;  %v2971_v39 = vmul.f32 0.31622776, %v4886_v38  ;;  %v2940_v48 = vpop.f32.mrb[75].mxu1 }
 0x88e   : > { %v4364_v42 = vclamps-f32 %v2968_v21, 5.0  ;;  %v2969_v0 = vmul.f32 0.31622776, %v2940_v48 }
 0x88f   : > { %v2996_v26 = vmul.f32 1.442695, %v4366_v23  ;;  %v4367_v31 = vclamps-f32 %v2971_v39, 5.0 }
 0x890   : > { %v2992_v45 = vmul.f32 1.442695, %v4364_v42  ;;  %v4365_v60 = vclamps-f32 %v2969_v0, 5.0 }
 0x891   : > { %5331 = vpow2.f32 %v2996_v26  ;;  %v2998_v14 = vmul.f32 1.442695, %v4367_v31 }
 0x892   : > { %5333 = vpow2.f32 %v2992_v45  ;;  %v2994_v8 = vmul.f32 1.442695, %v4365_v60  ;;  %v4889_v47 = vpop.f32.mrb[76].mxu1 }
 0x893   : > { %5335 = vpow2.f32 %v2998_v14  ;;  %v2974_v6 = vmul.f32 0.31622776, %v4889_v47  ;;  %v2953_v35 = vpop.f32.mrb[77].mxu1 }
 0x894   : > { %5337 = vpow2.f32 %v2994_v8  ;;  %v2972_v53 = vmul.f32 0.31622776, %v2953_v35  ;;  %v4890_v9 = vpop.f32.mrb[78].mxu1 }
 0x895   : > { %v4370_v41 = vclamps-f32 %v2974_v6, 5.0  ;;  %v2975_v16 = vmul.f32 0.31622776, %v4890_v9  ;;  %v2956_v54 = vpop.f32.mrb[79].mxu1 }
 0x896   : > { %v4368_v21 = vclamps-f32 %v2972_v53, 5.0  ;;  %v2973_v38 = vmul.f32 0.31622776, %v2956_v54 }
 0x897   : > { %v3004_v23 = vmul.f32 1.442695, %v4370_v41  ;;  %v4371_v39 = vclamps-f32 %v2975_v16, 5.0 }
 0x898   : > { %v3000_v48 = vmul.f32 1.442695, %v4368_v21  ;;  %v4369_v42 = vclamps-f32 %v2973_v38, 5.0 }
 0x899   : > { %5339 = vpow2.f32 %v3004_v23  ;;  %v3006_v0 = vmul.f32 1.442695, %v4371_v39  ;;  %v7159_v39 = vld [vmem:[#allocation16_spill] sm:$0xff] }
 0x89a   : > { %5341 = vpow2.f32 %v3000_v48  ;;  %v3002_v26 = vmul.f32 1.442695, %v4369_v42  ;;  %v678_v48 = vadd.f32 1e-06, %v7159_v39 }
 0x89b   : > { %v5332_v31 = vpop.eup %5331  ;;  %5343 = vpow2.f32 %v3006_v0 }
 0x89c   : > { %v5334_v45 = vpop.eup %5333  ;;  %5345 = vpow2.f32 %v3002_v26  ;;  %v3010_v8 = vmul.f32 %v6418_v58, %v5332_v31 }
 0x89d   : > { %v5336_v60 = vpop.eup %5335  ;;  %v3008_v6 = vmul.f32 %v6430_v51, %v5334_v45  ;;  %5347 = vrcp.f32 %v678_v48  ;;  %v7161_v48 = vld [vmem:[#allocation15_spill] sm:$0xff] }
 0x89e   : > { %v5338_v14 = vpop.eup %5337  ;;  %v3011_v47 = vmul.f32 %v6424_v34, %v5336_v60 }
 0x89f   : > { %v3009_v35 = vmul.f32 %v6436_v27, %v5338_v14 }
 0x8a0   : > { %v3017_v53 = vpack.c.bf16 %v3011_v47, %v3010_v8 }
 0x8a1   : > { %v3016_v9 = vpack.c.bf16 %v3009_v35, %v3008_v6 }
 0x8a3   : > { %v5340_v41 = vpop.eup %5339  ;;  %4899 = vmatprep.mubr.msk.bf16.mxu0 %vm595_vm1, %v3016_v9 }
 0x8a4   : > { %v5342_v16 = vpop.eup %5341  ;;  %4900 = vmatmul.mubr.msk.bf16.vlgmr.msra.gmra.mrb[64].mxu0 %vm595_vm1, %v3017_v53  ;;  %v3014_v38 = vmul.f32 %v6448_v3, %v5340_v41 }
 0x8a5   : > { %v5344_v54 = vpop.eup %5343  ;;  %v3012_v34 = vmul.f32 %v6460_v7, %v5342_v16 }
 0x8a6   : > { %v5346_v21 = vpop.eup %5345  ;;  %v3015_v58 = vmul.f32 %v6454_v49, %v5344_v54  ;;  %v7160_v54 = vld [vmem:[#allocation14_spill] sm:$0xff] }
 0x8a7   : > { %v3013_v51 = vmul.f32 %v6466_v22, %v5346_v21  ;;  %v5348_v8 = vpop.eup %5347  ;;  %v677_v21 = vadd.f32 1e-06, %v7160_v54 }
 0x8a8   : > { %v3019_v23 = vpack.c.bf16 %v3015_v58, %v3014_v38 }
 0x8a9   : > { %v3018_v27 = vpack.c.bf16 %v3013_v51, %v3012_v34 }
 0x8ab   : > { %4903 = vmatprep.mubr.msk.bf16.mxu0 %vm595_vm1, %v3018_v27 }
 0x8ac   : > { %4904 = vmatmul.mubr.msk.bf16.gmra.mrb[68].mxu0 %vm595_vm1, %v3019_v23 }
 0x8f7   : > { %v2787_v42 = vpop.permute.xlu1 %2786 }
 0x8f8   : > { %v6728_v0 = vmul.f32 %v6690_v36, %v2787_v42  ;;  %v680_v42 = vadd.f32 1e-06, %v7161_v48 }
 0x8f9   : > { %v2792_v3 = vpop.permute.xlu0 %2791 }
 0x8fa   : > { %v2817_v49 = vmul.f32 %v6695_v13, %v2792_v3 }
 0x8fb   : > { %v2777_v26 = vpop.permute.xlu1 %2776 }
 0x8fc   : > { %v2814_v7 = vmul.f32 %v2777_v26, %v6693_v10 }
 0x8fd   : > { %v2782_v22 = vpop.permute.xlu0 %2781 }
 0x8fe   : > { %v2815_v31 = vmul.f32 %v2782_v22, %v6699_v62  ;;  %2830 = vrot.lane.b32.xlu1 %v2814_v7, %s5478_s27 }
 0x8ff   : > { %v2807_v45 = vpop.permute.xlu1 %2806 }
 0x900   : > { %v6735_v60 = vmul.f32 %v6702_v28, %v2807_v45  ;;  %2832 = vrot.lane.b32.xlu0 %v2815_v31, %s5478_s27 }
 0x901   : > { %v2812_v36 = vpop.permute.xlu0 %2811 }
 0x902   : > { %v6739_v14 = vmul.f32 %v6707_v4, %v2812_v36 }
 0x903   : > { %v6741_v13 = vpop.permute.xlu1 %2796 }
 0x904   : > { %716 = vperm.xlu0 %5040, %v5348_v8  }
 0x905   : > { %v6743_v10 = vpop.permute.xlu0 %2801 }
 0x970   : > { %v2831_v62 = vpop.permute.xlu1 %2830 }
 0x971   : > { %2855 = vst.msk [vmem:[#allocation3] sm:$0xff] %vm2854_vm7, %v2831_v62  ;;  %v7162_v62 = vld [vmem:[#allocation13_spill] sm:$0xff] }
 0x972   : > { %v2833_v47 = vpop.permute.xlu0 %2832 }
 0x973   : > { %2856 = vst.msk [vmem:[#allocation3 + $0x8] sm:$0xff] %vm2854_vm7, %v2833_v47  ;;  %v679_v47 = vadd.f32 1e-06, %v7162_v62 }
 0x977   : > { %v6747_v28 = vpop.f32.mrb[64].mxu0 }
 0x978   : > { %v3111_v6 = vadd.f32 1e-06, %v6747_v28  ;;  %v6750_v35 = vpop.f32.mrb[65].mxu0 }
 0x979   : > { %v6752_v4 = vpop.f32.mrb[66].mxu0  ;;  %v3109_v53 = vadd.f32 1e-06, %v6750_v35 }
 0x97a   : > { %5349 = vrcp.f32 %v3111_v6  ;;  %v3112_v9 = vadd.f32 1e-06, %v6752_v4  ;;  %v6756_v41 = vpop.f32.mrb[67].mxu0 }
 0x97b   : > { %v3110_v16 = vadd.f32 1e-06, %v6756_v41 }
 0x97c   : > { %5351 = vrcp.f32 %v3112_v9 }
 0x97d   : > { %5353 = vrcp.f32 %v3109_v53 }
 0x97e   : > { %5355 = vrcp.f32 %v3110_v16 }
 0x97f   : > { %v6760_v38 = vpop.f32.mrb[68].mxu0  ;;  %5357 = vrcp.f32 %v677_v21 }
 0x980   : > { %v6762_v58 = vpop.f32.mrb[69].mxu0  ;;  %v3115_v7 = vadd.f32 1e-06, %v6760_v38  ;;  %5359 = vrcp.f32 %v680_v42 }
 0x981   : > { %v6764_v34 = vpop.f32.mrb[70].mxu0  ;;  %v3113_v36 = vadd.f32 1e-06, %v6762_v58 }
 0x982   : > { %v6766_v51 = vpop.f32.mrb[71].mxu0  ;;  %v3116_v31 = vadd.f32 1e-06, %v6764_v34  ;;  %5361 = vrcp.f32 %v3115_v7  ;;  %v7166_v7 = vld [vmem:[#allocation33_spill] sm:$0xff] }
 0x983   : > { %v717_v23 = vpop.permute.xlu0 %716 }
 0x984   : > { %v5350_v27 = vpop.eup %5349  ;;  %v734_v3 = vmul.f32 %v717_v23, %v7159_v39  ;;  %5363 = vrcp.f32 %v3116_v31  ;;  %v3114_v39 = vadd.f32 1e-06, %v6766_v51  ;;  %v7167_v31 = vld [vmem:[#allocation40_spill] sm:$0xff] }
 0x985   : > { %3137 = vperm.xlu1 %5039, %v5350_v27   ;;  %5365 = vrcp.f32 %v3113_v36  ;;  %v7163_v27 = vld [vmem:[#allocation36_spill] sm:$0xff]  ;;  %v7169_v36 = vld [vmem:[#allocation39_spill] sm:$0xff] }
 0x986   : > { %v5352_v26 = vpop.eup %5351  ;;  %742 = vst.msk [vmem:[#allocation3 + $0x28] sm:$0xff] %vm453_vm0, %v734_v3  ;;  %5367 = vrcp.f32 %v3114_v39  ;;  %v1064_v42 = vmul.f32 %v6365_v44, %v7163_v27  ;;  %v7168_v44 = vld [vmem:[#allocation38_spill] sm:$0xff] }
 0x987   : > { %3142 = vperm.xlu0 %5040, %v5352_v26   ;;  %v5354_v22 = vpop.eup %5353  ;;  %5369 = vrcp.f32 %v679_v47 }
 0x988   : > { %v5356_v45 = vpop.eup %5355 }
 0x989   : > { %3127 = vperm.xlu1 %5039, %v5354_v22   ;;  %v5358_v8 = vpop.eup %5357  ;;  %v1065_v22 = vmul.f32 %v7166_v7, %v6356_v25 }
 0x98a   : > { %v5360_v6 = vpop.eup %5359 }
 0x98b   : > { %3132 = vperm.xlu0 %5040, %v5356_v45   ;;  %v1415_v45 = vmul.f32 %v6381_v29, %v7167_v31  ;;  %v1766_v29 = vmul.f32 %v6515_v11, %v6412_v17  ;;  %v2467_v17 = vmul.f32 %v6682_v40, %v6624_v18 }
 0x98c   : > { %v5362_v53 = vpop.eup %5361 }
 0x98d   : > { %711 = vperm.xlu1 %5039, %v5358_v8   ;;  %v7170_v8 = vld [vmem:[#allocation37_spill] sm:$0xff] }
 0x98e   : > { %v5364_v9 = vpop.eup %5363  ;;  %v1416_v25 = vmul.f32 %v7170_v8, %v6375_v15  ;;  %v2117_v15 = vmul.f32 %v6603_v32, %v6542_v24 }
 0x98f   : > { %2836 = vrot.lane.b32.xlu0 %v2817_v49, %s5478_s27  ;;  %v5366_v16 = vpop.eup %5365  ;;  %v7164_v49 = vld [vmem:[#allocation34_spill] sm:$0xff] }
 0x990   : > { %v5368_v21 = vpop.eup %5367  ;;  %v1063_v3 = vmul.f32 %v6362_v56, %v7164_v49  ;;  %v1414_v56 = vmul.f32 %v6379_v1, %v7168_v44  ;;  %v1765_v1 = vmul.f32 %v6513_v19, %v6406_v46  ;;  %v2468_v46 = vmul.f32 %v6684_v52, %v6630_v12 }
 0x991   : > { %2834 = vrot.lane.b32.xlu1 %v6728_v0, %s5478_s27  ;;  %v5370_v23 = vpop.eup %5369  ;;  %v7165_v0 = vld [vmem:[#allocation35_spill] sm:$0xff] }
 0x992   : > { %v1066_v26 = vmul.f32 %v7165_v0, %v6360_v20  ;;  %v1417_v20 = vmul.f32 %v7169_v36, %v6377_v63  ;;  %v2116_v63 = vmul.f32 %v6601_v55, %v6536_v30 }
 0x993   : > { %726 = vperm.xlu0 %5040, %v5360_v6  }
 0x995   : > { %3157 = vperm.xlu1 %5039, %v5362_v53   ;;  %v2818_v53 = vmul.f32 %v6741_v13, %v6705_v57 }
 0x997   : > { %3162 = vperm.xlu0 %5040, %v5364_v9  }
 0x999   : > { %3147 = vperm.xlu1 %5039, %v5366_v16  }
 0x99b   : > { %3152 = vperm.xlu0 %5040, %v5368_v21  }
 0x99d   : > { %721 = vperm.xlu1 %5039, %v5370_v23  }
 0x99f   : > { %1085 = vrot.lane.b32.xlu0 %v1064_v42, %s5483_s28 }
 0x9a1   : > { %1083 = vrot.lane.b32.xlu1 %v1063_v3, %s5483_s28 }
 0x9a3   : > { %1089 = vrot.lane.b32.xlu0 %v1066_v26, %s5483_s28 }
 0x9a5   : > { %1087 = vrot.lane.b32.xlu1 %v1065_v22, %s5483_s28 }
 0x9a7   : > { %1436 = vrot.lane.b32.xlu0 %v1415_v45, %s5482_s21 }
 0x9a9   : > { %1434 = vrot.lane.b32.xlu1 %v1414_v56, %s5482_s21 }
 0x9ab   : > { %1440 = vrot.lane.b32.xlu0 %v1417_v20, %s5482_s21 }
 0x9ad   : > { %1438 = vrot.lane.b32.xlu1 %v1416_v25, %s5482_s21 }
 0x9af   : > { %1787 = vrot.lane.b32.xlu0 %v1766_v29, %s5481_s17 }
 0x9b1   : > { %1785 = vrot.lane.b32.xlu1 %v1765_v1, %s5481_s17 }
 0x9b3   : > { %1791 = vrot.lane.b32.xlu0 %v6511_v37, %s5481_s17 }
 0x9b5   : > { %1789 = vrot.lane.b32.xlu1 %v6507_v43, %s5481_s17  ;;  %s4447_s17 = sshll.u32 %s5470_s19, 6 }
 0x9b6   : > { %s3228_s21 = scalar_lea.vmem [#allocation4], %s4447_s17  ;;  %s3773_s17 = scalar_lea.vmem %s7076_s9, %s5470_s19 }
 0x9b7   : > { %2138 = vrot.lane.b32.xlu0 %v2117_v15, %s5480_s0  ;;  %v5073_v43 = vld [vmem:[%s3228_s21] sm:$0xff]   ;;  %v5074_v37 = vld [vmem:[%s3228_s21 + $0x8] sm:$0xff]   ;;  %v5075_v19 = vld [vmem:[%s3228_s21 + $0x10] sm:$0xff]  }
 0x9b8   : > { %4907 = vmatprep.subr.bf16.mxu0 %v5073_v43  ;;  %v5076_v11 = vld [vmem:[%s3228_s21 + $0x18] sm:$0xff]   ;;  %v5077_v30 = vld [vmem:[%s3228_s21 + $0x20] sm:$0xff]   ;;  %v5078_v24 = vld [vmem:[%s3228_s21 + $0x28] sm:$0xff]  }
 0x9b9   : > { %2136 = vrot.lane.b32.xlu1 %v2116_v63, %s5480_s0  ;;  %4908 = vmatpush3.bf16.msra.mxu0 %v5073_v43  ;;  %v5080_v32 = vld [vmem:[%s3228_s21 + $0x38] sm:$0xff]  }
 0x9ba   : > { %4909 = vmatprep.subr.bf16.mxu0 %v5074_v37 }
 0x9bb   : > { %2142 = vrot.lane.b32.xlu0 %v6599_v33, %s5480_s0 }
 0x9bd   : > { %2140 = vrot.lane.b32.xlu1 %v6595_v50, %s5480_s0  ;;  %4910 = vmatpush3.bf16.msra.mxu0 %v5074_v37  ;;  %v5079_v50 = vld [vmem:[%s3228_s21 + $0x30] sm:$0xff]  }
 0x9be   : > { %4911 = vmatprep.subr.bf16.mxu0 %v5075_v19 }
 0x9bf   : > { %2489 = vrot.lane.b32.xlu0 %v2468_v46, %s5479_s8 }
 0x9c1   : > { %2487 = vrot.lane.b32.xlu1 %v2467_v17, %s5479_s8  ;;  %4912 = vmatpush3.bf16.msra.mxu0 %v5075_v19 }
 0x9c2   : > { %4913 = vmatprep.subr.bf16.mxu0 %v5076_v11 }
 0x9c5   : > { %4914 = vmatpush3.bf16.msra.mxu0 %v5076_v11 }
 0x9c6   : > { %4915 = vmatprep.subr.bf16.mxu0 %v5077_v30 }
 0x9c9   : > { %4916 = vmatpush3.bf16.msra.mxu0 %v5077_v30 }
 0x9ca   : > { %4917 = vmatprep.subr.bf16.mxu0 %v5078_v24 }
 0x9cd   : > { %4918 = vmatpush3.bf16.msra.mxu0 %v5078_v24 }
 0x9ce   : > { %4919 = vmatprep.subr.bf16.mxu0 %v5079_v50 }
 0x9d1   : > { %4920 = vmatpush3.bf16.msra.mxu0 %v5079_v50 }
 0x9d2   : > { %4921 = vmatprep.subr.bf16.mxu0 %v5080_v32 }
 0x9d5   : > { %4922 = vmatpush3.bf16.msra.mxu0 %v5080_v32 }
 0x9d6   : > { %3700 = vmatprep.subr.bf16.mxu0 %v7158_v61 }
 0xa04   : > { %v3138_v33 = vpop.permute.xlu1 %3137 }
 0xa05   : > { %v3167_v55 = vmul.f32 %v6747_v28, %v3138_v33 }
 0xa06   : > { %v3143_v18 = vpop.permute.xlu0 %3142 }
 0xa07   : > { %v3168_v12 = vmul.f32 %v6752_v4, %v3143_v18  ;;  %3185 = vrot.lane.b32.xlu1 %v3167_v55, %s5477_s26 }
 0xa08   : > { %v3128_v40 = vpop.permute.xlu1 %3127 }
 0xa09   : > { %v3165_v52 = vmul.f32 %v3128_v40, %v6750_v35  ;;  %3187 = vrot.lane.b32.xlu0 %v3168_v12, %s5477_s26 }
 0xa0a   : > { %v3133_v39 = vpop.permute.xlu0 %3132 }
 0xa0b   : > { %v3166_v47 = vmul.f32 %v3133_v39, %v6756_v41  ;;  %3181 = vrot.lane.b32.xlu1 %v3165_v52, %s5477_s26 }
 0xa0c   : > { %v712_v28 = vpop.permute.xlu1 %711 }
 0xa0d   : > { %v733_v6 = vmul.f32 %v712_v28, %v7160_v54  ;;  %3183 = vrot.lane.b32.xlu0 %v3166_v47, %s5477_s26  ;;  %v2819_v54 = vmul.f32 %v6743_v10, %v6711_v5 }
 0xa0e   : > { %v2837_v4 = vpop.permute.xlu0 %2836 }
 0xa0f   : > { %741 = vst.msk [vmem:[#allocation3 + $0x20] sm:$0xff] %vm453_vm0, %v733_v6  ;;  %2491 = vrot.lane.b32.xlu1 %v6676_v59, %s5479_s8 }
 0xa10   : > { %2858 = vst.msk [vmem:[#allocation3 + $0x18] sm:$0xff] %vm2854_vm7, %v2837_v4  ;;  %v2835_v35 = vpop.permute.xlu1 %2834 }
 0xa11   : > { %2857 = vst.msk [vmem:[#allocation3 + $0x10] sm:$0xff] %vm2854_vm7, %v2835_v35  ;;  %2493 = vrot.lane.b32.xlu0 %v6680_v2, %s5479_s8  ;;  %s4448_s8 = sshll.u32 %s5470_s19, 7 }
 0xa12   : > { %v727_v41 = vpop.permute.xlu0 %726  ;;  %s6873_s28 = scalar_lea.vmem %s7073_s6, %s4448_s8 }
 0xa13   : > { %v736_v9 = vmul.f32 %v7161_v48, %v727_v41  ;;  %2838 = vrot.lane.b32.xlu1 %v2818_v53, %s5478_s27  ;;  %v5084_v27 = vld [vmem:[%s6873_s28 + $0x10] ss:$8 sps:$4 sm:$0xff]   ;;  %v5089_v42 = vld [vmem:[%s6873_s28 + $0x24] ss:$8 sps:$4 sm:$0xff]   ;;  %v5087_v3 = vld [vmem:[%s6873_s28 + $0x20] ss:$8 sps:$4 sm:$0xff]  }
 0xa14   : > { %v3158_v16 = vpop.permute.xlu1 %3157  ;;  %v5092_v26 = vld [vmem:[%s6873_s28 + $0x34] ss:$8 sps:$4 sm:$0xff]   ;;  %v5090_v31 = vld [vmem:[%s6873_s28 + $0x30] ss:$8 sps:$4 sm:$0xff]   ;;  %v5095_v45 = vld [vmem:[%s6873_s28 + $0x44] ss:$8 sps:$4 sm:$0xff]  }
 0xa15   : > { %744 = vst.msk [vmem:[#allocation3 + $0x38] sm:$0xff] %vm453_vm0, %v736_v9  ;;  %2840 = vrot.lane.b32.xlu0 %v2819_v54, %s5478_s27  ;;  %v3171_v48 = vmul.f32 %v6760_v38, %v3158_v16  ;;  %v5081_v38 = vld [vmem:[%s6873_s28] ss:$8 sps:$4 sm:$0xff]   ;;  %v5098_v20 = vld [vmem:[%s6873_s28 + $0x54] ss:$8 sps:$4 sm:$0xff]  }
 0xa16   : > { %v3163_v59 = vpop.permute.xlu0 %3162  ;;  %v5093_v36 = vld [vmem:[%s6873_s28 + $0x40] ss:$8 sps:$4 sm:$0xff]   ;;  %v5096_v29 = vld [vmem:[%s6873_s28 + $0x50] ss:$8 sps:$4 sm:$0xff]  }
 0xa17   : > { %2842 = vrot.lane.b32.xlu1 %v6735_v60, %s5478_s27  ;;  %v3172_v60 = vmul.f32 %v6764_v34, %v3163_v59 }
 0xa18   : > { %v3148_v57 = vpop.permute.xlu1 %3147 }
 0xa19   : > { %v3169_v2 = vmul.f32 %v3148_v57, %v6762_v58  ;;  %2844 = vrot.lane.b32.xlu0 %v6739_v14, %s5478_s27  ;;  %v5083_v58 = vld [vmem:[%s6873_s28 + $0x4] ss:$8 sps:$4 sm:$0xff]  }
 0xa1a   : > { %v3153_v5 = vpop.permute.xlu0 %3152  ;;  %3507 = vmatprep.subr.bf16.mxu1 %v5083_v58 }
 0xa1b   : > { %v3170_v13 = vmul.f32 %v3153_v5, %v6766_v51  ;;  %3189 = vrot.lane.b32.xlu1 %v3169_v2, %s5477_s26  ;;  %v5086_v51 = vld [vmem:[%s6873_s28 + $0x14] ss:$8 sps:$4 sm:$0xff]   ;;  %3508 = vmatpush1.bf16.msra.mxu1 %v5081_v38  ;;  %v5101_v2 = vld [vmem:[%s6873_s28 + $0x64] ss:$8 sps:$4 sm:$0xff]   ;;  %v5099_v5 = vld [vmem:[%s6873_s28 + $0x60] ss:$8 sps:$4 sm:$0xff]  }
 0xa1c   : > { %v722_v10 = vpop.permute.xlu1 %721  ;;  %3509 = vmatprep.subr.bf16.mxu1 %v5086_v51 }
 0xa1d   : > { %v735_v21 = vmul.f32 %v7162_v62, %v722_v10  ;;  %3191 = vrot.lane.b32.xlu0 %v3170_v13, %s5477_s26  ;;  %v5104_v13 = vld [vmem:[%s6873_s28 + $0x74] ss:$8 sps:$4 sm:$0xff]   ;;  %v5102_v10 = vld [vmem:[%s6873_s28 + $0x70] ss:$8 sps:$4 sm:$0xff]  }
 0xa1e   : > { %v1086_v23 = vpop.permute.xlu0 %1085 }
 0xa1f   : > { %743 = vst.msk [vmem:[#allocation3 + $0x30] sm:$0xff] %vm453_vm0, %v735_v21  ;;  %3193 = vrot.lane.b32.xlu1 %v3171_v48, %s5477_s26  ;;  %3510 = vmatpush1.bf16.msra.mxu1 %v5084_v27  ;;  %v3359_v27 = vld [vmem:[#allocation2 + $0x8] sm:$0xff] }
 0xa20   : > { %1105 = vst.msk [vmem:[#allocation3 + $0x28] sm:$0xff] %vm1099_vm2, %v1086_v23  ;;  %v1084_v14 = vpop.permute.xlu1 %1083  ;;  %3511 = vmatprep.subr.bf16.mxu1 %v5089_v42 }
 0xa21   : > { %1104 = vst.msk [vmem:[#allocation3 + $0x20] sm:$0xff] %vm1099_vm2, %v1084_v14  ;;  %3195 = vrot.lane.b32.xlu0 %v3172_v60, %s5477_s26  ;;  %s4449_s26 = smul.u32 80, %s5470_s19  ;;  %s119_s19 = sadd.s32 1, %s5470_s19  }
 0xa22   : > { %v1090_v34 = vpop.permute.xlu0 %1089  ;;  %p116_p2 = scmp.ge.s32.totalorder %s119_s19, 10  }
 0xa23   : > { %1107 = vst.msk [vmem:[#allocation3 + $0x38] sm:$0xff] %vm1099_vm2, %v1090_v34  ;;  %3512 = vmatpush1.bf16.msra.mxu1 %v5087_v3  ;;  %s6924_s30 = scalar_lea.vmem [#allocation7], %s4449_s26  ;;  %v3358_v34 = vld [vmem:[#allocation2] sm:$0xff]  ;;  %vm3997_vm10 = vcmask (%p116_p2), 1043456   ;;  %vm3984_vm11 = vcmask (%p116_p2), 326656   ;;  %vm4110_vm12 = vcmask (%p116_p2), 1041408  }
 0xa24   : > { %v1088_v62 = vpop.permute.xlu1 %1087  ;;  %3513 = vmatprep.subr.bf16.mxu1 %v5092_v26  ;;  %v5105_v48 = vld [vmem:[%s6924_s30] sm:$0xff]   ;;  %v5106_v21 = vld [vmem:[%s6924_s30 + $0x8] sm:$0xff]   ;;  %v5107_v23 = vld [vmem:[%s6924_s30 + $0x10] sm:$0xff]   ;;  %vm4097_vm13 = vcmask (%p116_p2), 162816   ;;  %s5485_s0 = smov (%p116_p2), [#allocation9]  }
 0xa25   : > { %1106 = vst.msk [vmem:[#allocation3 + $0x30] sm:$0xff] %vm1099_vm2, %v1088_v62  ;;  %v5108_v60 = vld [vmem:[%s6924_s30 + $0x18] sm:$0xff]   ;;  %v5109_v14 = vld [vmem:[%s6924_s30 + $0x20] sm:$0xff]   ;;  %v5110_v38 = vld [vmem:[%s6924_s30 + $0x28] sm:$0xff]   ;;  %s4192_s28 = sshll.u32 (%p116_p2), %s5485_s0, 4  ;;  %s4193_s28 = int_to_ptr.vmem [resolvable:$true] %s4192_s28 }
 0xa26   : > { %v1437_v49 = vpop.permute.xlu0 %1436  ;;  %v5111_v58 = vld [vmem:[%s6924_s30 + $0x30] sm:$0xff]   ;;  %v4386_v3 = vld [vmem:[%s3374_s18] ss:$0 sm:$0xff]  ;;  %p5441_p4 = scmp.lt.s32.totalorder (%p116_p2), %s4193_s28, %s4193_s28 }
 0xa27   : > { %1456 = vst.msk [vmem:[#allocation3 + $0x28] sm:$0xff] %vm1450_vm3, %v1437_v49  ;;  %3514 = vmatpush1.bf16.msra.mxu1 %v5090_v31 }
 0xa28   : > { %v1435_v0 = vpop.permute.xlu1 %1434  ;;  %3515 = vmatprep.subr.bf16.mxu1 %v5095_v45  ;;  %v3360_v45 = vld [vmem:[#allocation2 + $0x10] sm:$0xff] }
 0xa29   : > { %1455 = vst.msk [vmem:[#allocation3 + $0x20] sm:$0xff] %vm1450_vm3, %v1435_v0 }
 0xa2a   : > { %v1441_v7 = vpop.permute.xlu0 %1440 }
 0xa2b   : > { %1458 = vst.msk [vmem:[#allocation3 + $0x38] sm:$0xff] %vm1450_vm3, %v1441_v7  ;;  %3516 = vmatpush1.bf16.msra.mxu1 %v5093_v36  ;;  %v3361_v7 = vld [vmem:[#allocation2 + $0x18] sm:$0xff] }
 0xa2c   : > { %v1439_v22 = vpop.permute.xlu1 %1438  ;;  %3517 = vmatprep.subr.bf16.mxu1 %v5098_v20 }
 0xa2d   : > { %1457 = vst.msk [vmem:[#allocation3 + $0x30] sm:$0xff] %vm1450_vm3, %v1439_v22 }
 0xa2e   : > { %v1788_v44 = vpop.permute.xlu0 %1787 }
 0xa2f   : > { %1807 = vst.msk [vmem:[#allocation3 + $0x28] sm:$0xff] %vm1801_vm4, %v1788_v44  ;;  %3518 = vmatpush1.bf16.msra.mxu1 %v5096_v29  ;;  %v3362_v29 = vld [vmem:[#allocation2 + $0x20] sm:$0xff] }
 0xa30   : > { %v1786_v56 = vpop.permute.xlu1 %1785  ;;  %3519 = vmatprep.subr.bf16.mxu1 %v5101_v2 }
 0xa31   : > { %1806 = vst.msk [vmem:[#allocation3 + $0x20] sm:$0xff] %vm1801_vm4, %v1786_v56 }
 0xa32   : > { %v1792_v8 = vpop.permute.xlu0 %1791 }
 0xa33   : > { %1809 = vst.msk [vmem:[#allocation3 + $0x38] sm:$0xff] %vm1801_vm4, %v1792_v8  ;;  %3520 = vmatpush1.bf16.msra.mxu1 %v5099_v5 }
 0xa34   : > { %v1790_v25 = vpop.permute.xlu1 %1789  ;;  %3521 = vmatprep.subr.bf16.mxu1 %v5104_v13 }
 0xa35   : > { %1808 = vst.msk [vmem:[#allocation3 + $0x30] sm:$0xff] %vm1801_vm4, %v1790_v25 }
 0xa36   : > { %v2139_v1 = vpop.permute.xlu0 %2138 }
 0xa37   : > { %2158 = vst.msk [vmem:[#allocation3 + $0x28] sm:$0xff] %vm2152_vm5, %v2139_v1  ;;  %3522 = vmatpush1.bf16.msra.mxu1 %v5102_v10 }
 0xa38   : > { %v2137_v15 = vpop.permute.xlu1 %2136 }
 0xa39   : > { %2157 = vst.msk [vmem:[#allocation3 + $0x20] sm:$0xff] %vm2152_vm5, %v2137_v15 }
 0xa3a   : > { %v2143_v63 = vpop.permute.xlu0 %2142 }
 0xa3b   : > { %2160 = vst.msk [vmem:[#allocation3 + $0x38] sm:$0xff] %vm2152_vm5, %v2143_v63  ;;  %v3363_v63 = vld [vmem:[#allocation2 + $0x28] sm:$0xff] }
 0xa3c   : > { %v2141_v46 = vpop.permute.xlu1 %2140 }
 0xa3d   : > { %2159 = vst.msk [vmem:[#allocation3 + $0x30] sm:$0xff] %vm2152_vm5, %v2141_v46 }
 0xa3e   : > { %v2490_v17 = vpop.permute.xlu0 %2489 }
 0xa3f   : > { %2509 = vst.msk [vmem:[#allocation3 + $0x28] sm:$0xff] %vm2503_vm6, %v2490_v17 }
 0xa40   : > { %v2488_v43 = vpop.permute.xlu1 %2487 }
 0xa41   : > { %2508 = vst.msk [vmem:[#allocation3 + $0x20] sm:$0xff] %vm2503_vm6, %v2488_v43 }
 0xa79   : > { %v3186_v37 = vpop.permute.xlu1 %3185 }
 0xa7a   : > { %3208 = vst.msk [vmem:[#allocation3 + $0x10] sm:$0xff] %vm3205_vm8, %v3186_v37 }
 0xa7b   : > { %v3188_v19 = vpop.permute.xlu0 %3187 }
 0xa7c   : > { %3209 = vst.msk [vmem:[#allocation3 + $0x18] sm:$0xff] %vm3205_vm8, %v3188_v19  ;;  %v3365_v19 = vld [vmem:[#allocation2 + $0x38] sm:$0xff] }
 0xa7d   : > { %v3182_v11 = vpop.permute.xlu1 %3181 }
 0xa7e   : > { %3206 = vst.msk [vmem:[#allocation3] sm:$0xff] %vm3205_vm8, %v3182_v11 }
 0xa7f   : > { %v3184_v30 = vpop.permute.xlu0 %3183 }
 0xa80   : > { %3207 = vst.msk [vmem:[#allocation3 + $0x8] sm:$0xff] %vm3205_vm8, %v3184_v30 }
 0xa81   : > { %v2492_v24 = vpop.permute.xlu1 %2491  ;;  %v3216_v52 = vld [vmem:[#allocation3 + $0x10] sm:$0xff] }
 0xa82   : > { %2510 = vst.msk [vmem:[#allocation3 + $0x30] sm:$0xff] %vm2503_vm6, %v2492_v24  ;;  %v3364_v24 = vld [vmem:[#allocation2 + $0x30] sm:$0xff] }
 0xa83   : > { %v2494_v50 = vpop.permute.xlu0 %2493  ;;  %v3217_v55 = vld [vmem:[#allocation3 + $0x18] sm:$0xff] }
 0xa84   : > { %2511 = vst.msk [vmem:[#allocation3 + $0x38] sm:$0xff] %vm2503_vm6, %v2494_v50  ;;  %v3223_v47 = vpack.c.bf16 %v3217_v55, %v3216_v52  ;;  %v5113_v52 = vld [vmem:[%s6924_s30 + $0x40] sm:$0xff]  }
 0xa85   : > { %v2839_v33 = vpop.permute.xlu1 %2838  ;;  %v3214_v18 = vld [vmem:[#allocation3] sm:$0xff] }
 0xa86   : > { %2859 = vst.msk [vmem:[#allocation3 + $0x20] sm:$0xff] %vm2854_vm7, %v2839_v33 }
 0xa87   : > { %v2841_v32 = vpop.permute.xlu0 %2840  ;;  %v3215_v12 = vld [vmem:[#allocation3 + $0x8] sm:$0xff] }
 0xa88   : > { %2860 = vst.msk [vmem:[#allocation3 + $0x28] sm:$0xff] %vm2854_vm7, %v2841_v32  ;;  %v3222_v40 = vpack.c.bf16 %v3215_v12, %v3214_v18 }
 0xa89   : > { %v2843_v39 = vpop.permute.xlu1 %2842 }
 0xa8a   : > { %2861 = vst.msk [vmem:[#allocation3 + $0x30] sm:$0xff] %vm2854_vm7, %v2843_v39  ;;  %4923 = vmatprep.mubr.bf16.mxu0 %v3222_v40  ;;  %v5112_v40 = vld [vmem:[%s6924_s30 + $0x38] sm:$0xff]   ;;  %v5114_v39 = vld [vmem:[%s6924_s30 + $0x48] sm:$0xff]  }
 0xa8b   : > { %4924 = vmatmul.mubr.bf16.vlgmr.msra.gmra.mrb[72].mxu0 %v3223_v47  ;;  %v2845_v28 = vpop.permute.xlu0 %2844  ;;  %v3417_v47 = vlaneseq }
 0xa8c   : > { %2862 = vst.msk [vmem:[#allocation3 + $0x38] sm:$0xff] %vm2854_vm7, %v2845_v28  ;;  %3701 = vmatpush1.bf16.msra.mxu0 %v5105_v48 }
 0xa8d   : > { %v3190_v6 = vpop.permute.xlu1 %3189  ;;  %3702 = vmatprep.subr.bf16.mxu0 %v7158_v61  ;;  %v3418_v28 = vshrl.u32 %v3417_v47, 7 }
 0xa8e   : > { %3210 = vst.msk [vmem:[#allocation3 + $0x20] sm:$0xff] %vm3205_vm8, %v3190_v6 }
 0xa8f   : > { %v3192_v4 = vpop.permute.xlu0 %3191  ;;  %v3419_v6 = vsub.s32 0, %v3418_v28 }
 0xa90   : > { %3211 = vst.msk [vmem:[#allocation3 + $0x28] sm:$0xff] %vm3205_vm8, %v3192_v4  ;;  %3703 = vmatpush1.bf16.msra.mxu0 %v5106_v21  ;;  %v3415_v4 = vld [vmem:[%s3414_s25] sm:$0x3] }
 0xa91   : > { %v3194_v35 = vpop.permute.xlu1 %3193  ;;  %3704 = vmatprep.subr.bf16.mxu0 %v7158_v61 }
 0xa92   : > { %3212 = vst.msk [vmem:[#allocation3 + $0x30] sm:$0xff] %vm3205_vm8, %v3194_v35  ;;  %v3423_v35 = vsub.s32 1, %v3418_v28 }
 0xa93   : > { %v3196_v53 = vpop.permute.xlu0 %3195 }
 0xa94   : > { %3213 = vst.msk [vmem:[#allocation3 + $0x38] sm:$0xff] %vm3205_vm8, %v3196_v53  ;;  %3705 = vmatpush1.bf16.msra.mxu0 %v5107_v23  ;;  %v3420_v53 = vrot.slane %v3415_v4, %v3419_v6 }
 0xa95   : > { %v3218_v41 = vld [vmem:[#allocation3 + $0x20] sm:$0xff]  ;;  %3706 = vmatprep.subr.bf16.mxu0 %v7158_v61 }
 0xa97   : > { %v3219_v54 = vld [vmem:[#allocation3 + $0x28] sm:$0xff] }
 0xa98   : > { %v3224_v9 = vpack.c.bf16 %v3219_v54, %v3218_v41  ;;  %3707 = vmatpush1.bf16.msra.mxu0 %v5108_v60  ;;  %v3424_v41 = vrot.slane %v3415_v4, %v3423_v35 }
 0xa99   : > { %v3220_v16 = vld [vmem:[#allocation3 + $0x30] sm:$0xff]  ;;  %3708 = vmatprep.subr.bf16.mxu0 %v7158_v61 }
 0xa9a   : > { %4927 = vmatprep.mubr.bf16.mxu0 %v3224_v9 }
 0xa9b   : > { %v3221_v59 = vld [vmem:[#allocation3 + $0x38] sm:$0xff] }
 0xa9c   : > { %v3225_v57 = vpack.c.bf16 %v3221_v59, %v3220_v16  ;;  %3709 = vmatpush1.bf16.msra.mxu0 %v5109_v14 }
 0xa9d   : > { %3710 = vmatprep.subr.bf16.mxu0 %v7158_v61 }
 0xa9e   : > { %4928 = vmatmul.mubr.bf16.gmra.mrb[76].mxu0 %v3225_v57 }
 0xaa0   : > { %3711 = vmatpush1.bf16.msra.mxu0 %v5110_v38 }
 0xaa1   : > { %3712 = vmatprep.subr.bf16.mxu0 %v7158_v61 }
 0xaa4   : > { %3713 = vmatpush1.bf16.msra.mxu0 %v5111_v58 }
 0xaa5   : > { %3714 = vmatprep.subr.bf16.mxu0 %v7158_v61 }
 0xaa8   : > { %3715 = vmatpush1.bf16.msra.mxu0 %v5112_v40 }
 0xaa9   : > { %3716 = vmatprep.subr.bf16.mxu0 %v7158_v61 }
 0xaac   : > { %3717 = vmatpush1.bf16.msra.mxu0 %v5113_v52 }
 0xaad   : > { %3718 = vmatprep.subr.bf16.mxu0 %v7158_v61 }
 0xab0   : > { %3719 = vmatpush1.bf16.msra.mxu0 %v5114_v39 }
 0xb5e   : > { %v4925_v51 = vpop.f32.mrb[72].mxu0 }
 0xb5f   : > { %v3327_v62 = vpop.f32.mrb[73].mxu0  ;;  %v3368_v36 = vadd.f32 %v4925_v51, %v3360_v45 }
 0xb60   : > { %v3366_v42 = vadd.f32 %v3358_v34, %v3327_v62  ;;  %v4926_v49 = vpop.f32.mrb[74].mxu0 }
 0xb61   : > { %v3330_v0 = vpop.f32.mrb[75].mxu0  ;;  %v3369_v44 = vadd.f32 %v4926_v49, %v3361_v7  ;;  %v6953_v8 = vadd.f32 %v4386_v3, %v3368_v36 }
 0xb62   : > { %v3367_v26 = vadd.f32 %v3359_v27, %v3330_v0  ;;  %v6944_v22 = vadd.f32 %v4386_v3, %v3366_v42 }
 0xb63   : > { %v6951_v20 = vadd.f32 %v4386_v3, %v3369_v44 }
 0xb64   : > { %v6946_v31 = vadd.f32 %v4386_v3, %v3367_v26 }
 0xb65   : > { %v3391_v25 = vpack.c.bf16 %v6951_v20, %v6953_v8 }
 0xb66   : > { %v3390_v56 = vpack.c.bf16 %v6946_v31, %v6944_v22 }
 0xb68   : > { %3540 = vmatmul.mubr.bf16.vlgmr.msra.gmra.mrb[80].mxu1 %v3390_v56 }
 0xb69   : > { %3549 = vmatprep.mubr.bf16.mxu1 %v7158_v61 }
 0xb70   : > { %3550 = vmatmul.mubr.bf16.gmra.mrb[84].mxu1 %v3391_v25 }
 0xb71   : > { %v4929_v1 = vpop.f32.mrb[76].mxu0  ;;  %3559 = vmatprep.mubr.bf16.mxu1 %v7158_v61 }
 0xb72   : > { %v3343_v15 = vpop.f32.mrb[77].mxu0  ;;  %v3372_v55 = vadd.f32 %v4929_v1, %v3364_v24 }
 0xb73   : > { %v3370_v46 = vadd.f32 %v3362_v29, %v3343_v15  ;;  %v4930_v17 = vpop.f32.mrb[78].mxu0 }
 0xb74   : > { %v3346_v43 = vpop.f32.mrb[79].mxu0  ;;  %v3373_v50 = vadd.f32 %v4930_v17, %v3365_v19  ;;  %v6967_v18 = vadd.f32 %v4386_v3, %v3372_v55 }
 0xb75   : > { %v3371_v37 = vadd.f32 %v3363_v63, %v3346_v43  ;;  %v6958_v11 = vadd.f32 %v4386_v3, %v3370_v46 }
 0xb76   : > { %v6965_v32 = vadd.f32 %v4386_v3, %v3373_v50 }
 0xb77   : > { %v6960_v30 = vadd.f32 %v4386_v3, %v3371_v37 }
 0xb78   : > { %v3393_v12 = vpack.c.bf16 %v6965_v32, %v6967_v18 }
 0xb79   : > { %v3392_v33 = vpack.c.bf16 %v6960_v30, %v6958_v11 }
 0xb7b   : > { %3560 = vmatmul.mubr.bf16.gmra.mrb[88].mxu1 %v3392_v33 }
 0xb7c   : > { %3569 = vmatprep.mubr.bf16.mxu1 %v7158_v61 }
 0xb83   : > { %3570 = vmatmul.mubr.bf16.gmra.mrb[92].mxu1 %v3393_v12 }
 0xc3b   : > { %v3541_v54 = vpop.f32.mrb[80].mxu1 }
 0xc3c   : > { %v3542_v9 = vadd.f32 %v3541_v54, %v3420_v53  ;;  %v3543_v16 = vpop.f32.mrb[81].mxu1 }
 0xc3d   : > { %v3544_v59 = vadd.f32 %v3543_v16, %v3424_v41  ;;  %v3545_v57 = vpop.f32.mrb[82].mxu1 }
 0xc3e   : > { %v3546_v61 = vadd.f32 %v3545_v57, %v3420_v53  ;;  %v3547_v2 = vpop.f32.mrb[83].mxu1  ;;  %v3580_v13 = vmax.f32 %v3542_v9, 0.0 }
 0xc3f   : > { %v3548_v5 = vadd.f32 %v3547_v2, %v3424_v41  ;;  %v3581_v48 = vmax.f32 %v3544_v59, 0.0  ;;  %v4421_v59 = vld [vmem:[%s3773_s17] ss:$0 sm:$0xff] }
 0xc40   : > { %v3582_v10 = vmax.f32 %v3546_v61, 0.0 }
 0xc41   : > { %v3583_v21 = vmax.f32 %v3548_v5, 0.0 }
 0xc42   : > { %v3596_v23 = vpack.c.bf16 %v3582_v10, %v3580_v13 }
 0xc43   : > { %v3597_v60 = vpack.c.bf16 %v3583_v21, %v3581_v48  ;;  %v3551_v14 = vpop.f32.mrb[84].mxu1 }
 0xc44   : > { %v3552_v38 = vadd.f32 %v3551_v14, %v3420_v53  ;;  %v3553_v58 = vpop.f32.mrb[85].mxu1 }
 0xc45   : > { %v3554_v34 = vadd.f32 %v3553_v58, %v3424_v41  ;;  %v3555_v51 = vpop.f32.mrb[86].mxu1  ;;  %4417 = vmatprep.mubr.msk.bf16.mxu0 %vm3687_vm9, %v3597_v60 }
 0xc46   : > { %v3556_v62 = vadd.f32 %v3555_v51, %v3420_v53  ;;  %v3557_v27 = vpop.f32.mrb[87].mxu1  ;;  %3733 = vmatmul.mubr.bf16.vlgmr.msra.gmra.mrb[80].mxu0 %v3596_v23  ;;  %v3584_v49 = vmax.f32 %v3552_v38, 0.0 }
 0xc47   : > { %v3558_v42 = vadd.f32 %v3557_v27, %v3424_v41  ;;  %v3585_v0 = vmax.f32 %v3554_v34, 0.0 }
 0xc48   : > { %v3586_v3 = vmax.f32 %v3556_v62, 0.0 }
 0xc49   : > { %v3587_v26 = vmax.f32 %v3558_v42, 0.0 }
 0xc4a   : > { %v3598_v7 = vpack.c.bf16 %v3586_v3, %v3584_v49 }
 0xc4b   : > { %v3599_v45 = vpack.c.bf16 %v3587_v26, %v3585_v0 }
 0xc4d   : > { %4418 = vmatprep.mubr.msk.bf16.mxu0 %vm3687_vm9, %v3599_v45 }
 0xc4e   : > { %v3561_v44 = vpop.f32.mrb[88].mxu1  ;;  %3741 = vmatmul.mubr.bf16.gmra.mrb[84].mxu0 %v3598_v7 }
 0xc4f   : > { %v3562_v56 = vadd.f32 %v3561_v44, %v3420_v53  ;;  %v3563_v36 = vpop.f32.mrb[89].mxu1  ;;  %v5382_v44 = vld [vmem:[%s7077_s10 + $0x18] sm:$0xff] (%p116_p2)  }
 0xc50   : > { %v3564_v25 = vadd.f32 %v3563_v36, %v3424_v41  ;;  %v3565_v29 = vpop.f32.mrb[90].mxu1 }
 0xc51   : > { %v3566_v1 = vadd.f32 %v3565_v29, %v3420_v53  ;;  %v3567_v15 = vpop.f32.mrb[91].mxu1  ;;  %v3588_v46 = vmax.f32 %v3562_v56, 0.0  ;;  %v5383_v29 = vld [vmem:[%s7077_s10 + $0x20] sm:$0xff] (%p116_p2)  }
 0xc52   : > { %v3568_v63 = vadd.f32 %v3567_v15, %v3424_v41  ;;  %v3589_v43 = vmax.f32 %v3564_v25, 0.0  ;;  %v5384_v15 = vld [vmem:[%s7077_s10 + $0x28] sm:$0xff] (%p116_p2)  }
 0xc53   : > { %v3590_v17 = vmax.f32 %v3566_v1, 0.0  ;;  %v5387_v1 = vld [vmem:[%s7079_s12] sm:$0xff] (%p116_p2)  }
 0xc54   : > { %v3591_v37 = vmax.f32 %v3568_v63, 0.0  ;;  %4955 = vmatprep.subr.bf16.mxu1 (%p116_p2), %v5387_v1  ;;  %v5385_v63 = vld [vmem:[%s7077_s10 + $0x30] sm:$0xff] (%p116_p2)  }
 0xc55   : > { %v3600_v19 = vpack.c.bf16 %v3590_v17, %v3588_v46  ;;  %4956 = vmatpush3.bf16.msra.mxu1 (%p116_p2), %v5387_v1  ;;  %v5386_v46 = vld [vmem:[%s7077_s10 + $0x38] sm:$0xff] (%p116_p2)  }
 0xc56   : > { %v3601_v24 = vpack.c.bf16 %v3591_v37, %v3589_v43  ;;  %v3571_v50 = vpop.f32.mrb[92].mxu1 }
 0xc57   : > { %v3572_v33 = vadd.f32 %v3571_v50, %v3420_v53  ;;  %v3573_v55 = vpop.f32.mrb[93].mxu1 }
 0xc58   : > { %v3574_v12 = vadd.f32 %v3573_v55, %v3424_v41  ;;  %v3575_v40 = vpop.f32.mrb[94].mxu1  ;;  %4419 = vmatprep.mubr.msk.bf16.mxu0 %vm3687_vm9, %v3601_v24 }
 0xc59   : > { %v3576_v52 = vadd.f32 %v3575_v40, %v3420_v53  ;;  %v3577_v39 = vpop.f32.mrb[95].mxu1  ;;  %3749 = vmatmul.mubr.bf16.gmra.mrb[88].mxu0 %v3600_v19  ;;  %v3592_v28 = vmax.f32 %v3572_v33, 0.0  ;;  %v5388_v40 = vld [vmem:[%s7079_s12 + $0x8] sm:$0xff] (%p116_p2)  }
 0xc5a   : > { %v3578_v47 = vadd.f32 %v3577_v39, %v3424_v41  ;;  %v3593_v4 = vmax.f32 %v3574_v12, 0.0  ;;  %4957 = vmatprep.subr.bf16.mxu1 (%p116_p2), %v5388_v40 }
 0xc5b   : > { %v3594_v6 = vmax.f32 %v3576_v52, 0.0  ;;  %4958 = vmatpush3.bf16.msra.mxu1 (%p116_p2), %v5388_v40  ;;  %v5389_v52 = vld [vmem:[%s7079_s12 + $0x10] ss:$0 sps:$4 sm:$0xff] (%p116_p2)   ;;  %v4439_v40 = vld [vmem:[%s7082_s15] ss:$0 sm:$0xff] (%p116_p2)  ;;  %s5436_s15 = scalar_lea.vmem (%p116_p2), %s4193_s28, 1024 }
 0xc5c   : > { %v3595_v35 = vmax.f32 %v3578_v47, 0.0  ;;  %5013 = vmatprep.subr.msk.bf16.mxu1 (%p116_p2), %vm3997_vm10, %v5389_v52  ;;  %v3999_v39 = vsel (%p116_p2), %vm3997_vm10, %v5389_v52, 0  ;;  %v5390_v47 = vld [vmem:[%s7081_s14] sm:$0xff] (%p116_p2)   ;;  %p5437_p3 = scmp.ne.s32.totalorder (%p116_p2), %s4193_s28, %s5436_s15  ;;  %p5442_p5 = scmp.lt.s32.totalorder (%p116_p2), %s5436_s15, %s5436_s15 }
 0xc5d   : > { %v3602_v54 = vpack.c.bf16 %v3594_v6, %v3592_v28  ;;  %v4422_v28 = vld [vmem:[%s7078_s11] ss:$0 sm:$0xff] (%p116_p2) }
 0xc5e   : > { %v3603_v9 = vpack.c.bf16 %v3595_v35, %v3593_v4  ;;  %p5443_p6 = por (%p116_p2), %p5442_p5, %p5441_p4 }
 0xc5f   :  { %4960 = vmatpush3.bf16.msra.mxu1 (%p116_p2), %v3999_v39 }
 0xc60   : > { %4420 = vmatprep.mubr.msk.bf16.mxu0 %vm3687_vm9, %v3603_v9  ;;  %4969 = vmatprep.subr.bf16.mxu1 (%p116_p2), %v5390_v47  ;;  %p5444_p7 = pnand (%p116_p2), %p5443_p6, %p5437_p3 }
 0xc61   : > { %3757 = vmatmul.mubr.bf16.gmra.mrb[92].mxu0 %v3602_v54 }
 0xd19   : > { %v3734_v16 = vpop.f32.mrb[80].mxu0 }
 0xd1a   : > { %v3765_v53 = vadd.f32 %v3734_v16, %v6944_v22  ;;  %v3736_v57 = vpop.f32.mrb[81].mxu0 }
 0xd1b   : > { %v3737_v61 = vpop.f32.mrb[82].mxu0 }
 0xd1c   : > { %v3781_v41 = vadd.f32 %v4421_v59, %v3765_v53  ;;  %v3766_v2 = vadd.f32 %v3737_v61, %v6946_v31  ;;  %v3739_v5 = vpop.f32.mrb[83].mxu0 }
 0xd1e   : > { %3789 = vst [vmem:[#allocation2] sm:$0xff] %v3781_v41  ;;  %v3782_v13 = vadd.f32 %v4421_v59, %v3766_v2 }
 0xd20   : > { %3790 = vst [vmem:[#allocation2 + $0x8] sm:$0xff] %v3782_v13 }
 0xd21   : > { %v3742_v10 = vpop.f32.mrb[84].mxu0 }
 0xd22   : > { %v3767_v48 = vadd.f32 %v3742_v10, %v6953_v8  ;;  %v3744_v21 = vpop.f32.mrb[85].mxu0 }
 0xd23   : > { %v3745_v23 = vpop.f32.mrb[86].mxu0 }
 0xd24   : > { %v3783_v60 = vadd.f32 %v4421_v59, %v3767_v48  ;;  %v3768_v14 = vadd.f32 %v3745_v23, %v6951_v20  ;;  %v3747_v38 = vpop.f32.mrb[87].mxu0 }
 0xd25   :  { %v3797_v56 = vld [vmem:[#allocation2] sm:$0xff] (%p116_p2) }
 0xd26   : > { %3791 = vst [vmem:[#allocation2 + $0x10] sm:$0xff] %v3783_v60  ;;  %v3784_v22 = vadd.f32 %v4421_v59, %v3768_v14 }
 0xd27   :  { %v3798_v36 = vld [vmem:[#allocation2 + $0x8] sm:$0xff] (%p116_p2) }
 0xd28   : > { %3792 = vst [vmem:[#allocation2 + $0x18] sm:$0xff] %v3784_v22  ;;  %v3805_v25 = vpack.c.bf16 (%p116_p2), %v3798_v36, %v3797_v56 }
 0xd2a   :  { %4947 = vmatprep.mubr.bf16.mxu0 (%p116_p2), %v3805_v25 }
 0xd2c   : > { %v3750_v58 = vpop.f32.mrb[88].mxu0 }
 0xd2d   : > { %v3769_v34 = vadd.f32 %v3750_v58, %v6958_v11  ;;  %v3752_v31 = vpop.f32.mrb[89].mxu0  ;;  %v3799_v17 = vld [vmem:[#allocation2 + $0x10] sm:$0xff] (%p116_p2) }
 0xd2e   : > { %v3753_v51 = vpop.f32.mrb[90].mxu0 }
 0xd2f   : > { %v3785_v62 = vadd.f32 %v4421_v59, %v3769_v34  ;;  %v3770_v27 = vadd.f32 %v3753_v51, %v6960_v30  ;;  %v3755_v42 = vpop.f32.mrb[91].mxu0  ;;  %v5379_v30 = vld [vmem:[%s7077_s10] sm:$0xff] (%p116_p2)   ;;  %v3800_v43 = vld [vmem:[#allocation2 + $0x18] sm:$0xff] (%p116_p2) }
 0xd30   :  { %4931 = vmatprep.subr.bf16.mxu0 (%p116_p2), %v5379_v30  ;;  %v3806_v24 = vpack.c.bf16 (%p116_p2), %v3800_v43, %v3799_v17  ;;  %v5391_v42 = vld [vmem:[%s7081_s14 + $0x8] ss:$0 sps:$4 sm:$0x33] (%p116_p2)  }
 0xd31   : > { %3793 = vst [vmem:[#allocation2 + $0x20] sm:$0xff] %v3785_v62  ;;  %v3786_v8 = vadd.f32 %v4421_v59, %v3770_v27  ;;  %4932 = vmatpush3.bf16.msra.mxu0 (%p116_p2), %v5379_v30 }
 0xd33   : > { %3794 = vst [vmem:[#allocation2 + $0x28] sm:$0xff] %v3786_v8  ;;  %v4112_v8 = vsel (%p116_p2), %vm4110_vm12, %v5391_v42, 0 }
 0xd34   : > { %v3758_v49 = vpop.f32.mrb[92].mxu0 }
 0xd35   : > { %v3771_v3 = vadd.f32 %v3758_v49, %v6967_v18  ;;  %v3760_v20 = vpop.f32.mrb[93].mxu0  ;;  %118 = sbr.rel (!%p116_p2) target bundleno = 53 (0x35), region = 106  ;;  %v5380_v18 = vld [vmem:[%s7077_s10 + $0x8] sm:$0xff] (%p116_p2)   ;;  %v4431_v49 = vld [vmem:[%s7080_s13] ss:$0 sm:$0xff] (%p116_p2) }
 0xd36   : > { %v3761_v0 = vpop.f32.mrb[94].mxu0  ;;  %4933 = vmatprep.subr.bf16.mxu0 (%p116_p2), %v5380_v18 }
 0xd37   : > { %v3787_v26 = vadd.f32 %v4421_v59, %v3771_v3  ;;  %v3772_v7 = vadd.f32 %v3761_v0, %v6965_v32  ;;  %v3763_v45 = vpop.f32.mrb[95].mxu0  ;;  %v5381_v32 = vld [vmem:[%s7077_s10 + $0x10] sm:$0xff] (%p116_p2)   ;;  %4934 = vmatpush3.bf16.msra.mxu0 (%p116_p2), %v5380_v18 }
 0xd38   :  { %4935 = vmatprep.subr.bf16.mxu0 (%p116_p2), %v5381_v32  ;;  %v3801_v37 = vld [vmem:[#allocation2 + $0x20] sm:$0xff] (%p116_p2) }
 0xd39   : > { %3795 = vst [vmem:[#allocation2 + $0x30] sm:$0xff] %v3787_v26  ;;  %v3788_v11 = vadd.f32 %v4421_v59, %v3772_v7 }
 0xd3a   :  { %v3802_v19 = vld [vmem:[#allocation2 + $0x28] sm:$0xff] (%p116_p2) }
 0xd3b   : > { %3796 = vst [vmem:[#allocation2 + $0x38] sm:$0xff] %v3788_v11  ;;  %4936 = vmatpush3.bf16.msra.mxu0 (%p116_p2), %v5381_v32  ;;  %v3807_v50 = vpack.c.bf16 (%p116_p2), %v3802_v19, %v3801_v37 }
 0xd3c   :  { %4937 = vmatprep.subr.bf16.mxu0 %v5382_v44 }
 0xd3f   :  { %4938 = vmatpush3.bf16.msra.mxu0 %v5382_v44 }
 0xd40   :  { %4939 = vmatprep.subr.bf16.mxu0 %v5383_v29  ;;  %v3803_v33 = vld [vmem:[#allocation2 + $0x30] sm:$0xff] }
 0xd42   :  { %v3804_v55 = vld [vmem:[#allocation2 + $0x38] sm:$0xff] }
 0xd43   :  { %4940 = vmatpush3.bf16.msra.mxu0 %v5383_v29  ;;  %v3808_v12 = vpack.c.bf16 %v3804_v55, %v3803_v33 }
 0xd44   :  { %4941 = vmatprep.subr.bf16.mxu0 %v5384_v15 }
 0xd47   :  { %4942 = vmatpush3.bf16.msra.mxu0 %v5384_v15 }
 0xd48   :  { %4943 = vmatprep.subr.bf16.mxu0 %v5385_v63 }
 0xd4b   :  { %4944 = vmatpush3.bf16.msra.mxu0 %v5385_v63 }
 0xd4c   :  { %4945 = vmatprep.subr.bf16.mxu0 %v5386_v46 }
 0xd4f   :  { %4946 = vmatpush3.bf16.msra.mxu0 %v5386_v46 }
 0xd52   :  { %4948 = vmatmul.mubr.bf16.vlgmr.msra.gmra.mrb[0].mxu0 %v3806_v24 }
 0xd53   :  { %4951 = vmatprep.mubr.bf16.mxu0 %v3807_v50 }
 0xd5a   :  { %4952 = vmatmul.mubr.bf16.gmra.mrb[4].mxu0 %v3808_v12 }
 0xe25   :  { %v4949_v6 = vpop.f32.mrb[0].mxu0 }
 0xe26   :  { %v3923_v4 = vadd.f32 %v4949_v6, %v4422_v28  ;;  %v3914_v35 = vpop.f32.mrb[1].mxu0 }
 0xe27   :  { %v3915_v54 = vadd.f32 %v4422_v28, %v3914_v35  ;;  %v4950_v9 = vpop.f32.mrb[2].mxu0 }
 0xe28   :  { %v3926_v16 = vadd.f32 %v4950_v9, %v4422_v28  ;;  %v3917_v59 = vpop.f32.mrb[3].mxu0  ;;  %v3947_v57 = vmax.f32 %v3923_v4, 0.0 }
 0xe29   :  { %v3918_v53 = vadd.f32 %v4422_v28, %v3917_v59  ;;  %v3945_v41 = vmax.f32 %v3915_v54, 0.0 }
 0xe2a   :  { %v3948_v61 = vmax.f32 %v3926_v16, 0.0 }
 0xe2b   :  { %v3946_v2 = vmax.f32 %v3918_v53, 0.0 }
 0xe2c   :  { %v3954_v5 = vpack.c.bf16 %v3948_v61, %v3947_v57 }
 0xe2d   :  { %v4953_v13 = vpop.f32.mrb[4].mxu0  ;;  %v3953_v10 = vpack.c.bf16 %v3946_v2, %v3945_v41 }
 0xe2e   :  { %v3939_v48 = vadd.f32 %v4953_v13, %v4422_v28  ;;  %v3930_v21 = vpop.f32.mrb[5].mxu0 }
 0xe2f   :  { %v3931_v23 = vadd.f32 %v4422_v28, %v3930_v21  ;;  %v4954_v60 = vpop.f32.mrb[6].mxu0  ;;  %4961 = vmatprep.mubr.msk.bf16.mxu1 %vm3984_vm11, %v3953_v10 }
 0xe30   :  { %v3942_v14 = vadd.f32 %v4954_v60, %v4422_v28  ;;  %v3933_v38 = vpop.f32.mrb[7].mxu0  ;;  %4962 = vmatmul.mubr.msk.bf16.vlgmr.msra.gmra.mrb[0].mxu1 %vm3984_vm11, %v3954_v5  ;;  %v3951_v58 = vmax.f32 %v3939_v48, 0.0 }
 0xe31   :  { %v3934_v22 = vadd.f32 %v4422_v28, %v3933_v38  ;;  %4970 = vmatpush3.bf16.msra.mxu1 %v5390_v47  ;;  %v3949_v31 = vmax.f32 %v3931_v23, 0.0 }
 0xe32   :  { %v3952_v34 = vmax.f32 %v3942_v14, 0.0  ;;  %5014 = vmatprep.subr.msk.bf16.mxu1 %vm4110_vm12, %v5391_v42 }
 0xe33   :  { %v3950_v51 = vmax.f32 %v3934_v22, 0.0 }
 0xe34   :  { %v3956_v62 = vpack.c.bf16 %v3952_v34, %v3951_v58 }
 0xe35   :  { %v3955_v27 = vpack.c.bf16 %v3950_v51, %v3949_v31  ;;  %4972 = vmatpush3.bf16.msra.mxu1 %v4112_v8 }
 0xe37   :  { %4965 = vmatprep.mubr.msk.bf16.mxu1 %vm3984_vm11, %v3955_v27 }
 0xe38   :  { %4966 = vmatmul.mubr.msk.bf16.gmra.mrb[4].mxu1 %vm3984_vm11, %v3956_v62 }
 0xf03   :  { %v4963_v3 = vpop.f32.mrb[0].mxu1 }
 0xf04   :  { %v4044_v20 = vadd.f32 %v4963_v3, %v4431_v49  ;;  %v4035_v0 = vpop.f32.mrb[1].mxu1 }
 0xf05   :  { %v4036_v26 = vadd.f32 %v4431_v49, %v4035_v0  ;;  %v4964_v7 = vpop.f32.mrb[2].mxu1 }
 0xf06   :  { %v4047_v45 = vadd.f32 %v4964_v7, %v4431_v49  ;;  %v4038_v11 = vpop.f32.mrb[3].mxu1  ;;  %v4068_v18 = vmax.f32 %v4044_v20, 0.0 }
 0xf07   :  { %v4039_v30 = vadd.f32 %v4431_v49, %v4038_v11  ;;  %v4066_v44 = vmax.f32 %v4036_v26, 0.0 }
 0xf08   :  { %v4069_v32 = vmax.f32 %v4047_v45, 0.0 }
 0xf09   :  { %v4067_v56 = vmax.f32 %v4039_v30, 0.0 }
 0xf0a   :  { %v4075_v36 = vpack.c.bf16 %v4069_v32, %v4068_v18 }
 0xf0b   :  { %v4074_v25 = vpack.c.bf16 %v4067_v56, %v4066_v44  ;;  %v4967_v29 = vpop.f32.mrb[4].mxu1 }
 0xf0c   :  { %v4060_v1 = vadd.f32 %v4967_v29, %v4431_v49  ;;  %v4051_v15 = vpop.f32.mrb[5].mxu1 }
 0xf0d   :  { %v4052_v63 = vadd.f32 %v4431_v49, %v4051_v15  ;;  %v4968_v46 = vpop.f32.mrb[6].mxu1  ;;  %4973 = vmatprep.mubr.msk.bf16.mxu1 %vm4097_vm13, %v4074_v25 }
 0xf0e   :  { %v4063_v17 = vadd.f32 %v4968_v46, %v4431_v49  ;;  %v4054_v43 = vpop.f32.mrb[7].mxu1  ;;  %4974 = vmatmul.mubr.msk.bf16.vlgmr.msra.gmra.mrb[8].mxu1 %vm4097_vm13, %v4075_v36  ;;  %v4072_v19 = vmax.f32 %v4060_v1, 0.0 }
 0xf0f   :  { %v4055_v37 = vadd.f32 %v4431_v49, %v4054_v43  ;;  %v4070_v50 = vmax.f32 %v4052_v63, 0.0 }
 0xf10   :  { %v4073_v24 = vmax.f32 %v4063_v17, 0.0 }
 0xf11   :  { %v4071_v33 = vmax.f32 %v4055_v37, 0.0 }
 0xf12   :  { %v4077_v55 = vpack.c.bf16 %v4073_v24, %v4072_v19 }
 0xf13   :  { %v4076_v12 = vpack.c.bf16 %v4071_v33, %v4070_v50 }
 0xf15   :  { %4977 = vmatprep.mubr.msk.bf16.mxu1 %vm4097_vm13, %v4076_v12 }
 0xf16   :  { %4978 = vmatmul.mubr.msk.bf16.gmra.mrb[12].mxu1 %vm4097_vm13, %v4077_v55 }
 0xfe1   :  { %v4975_v52 = vpop.f32.mrb[8].mxu1 }
 0xfe2   :  { %v4157_v39 = vadd.f32 %v4975_v52, %v4439_v40  ;;  %v4148_v47 = vpop.f32.mrb[9].mxu1 }
 0xfe3   :  { %v4149_v28 = vadd.f32 %v4439_v40, %v4148_v47  ;;  %v4976_v6 = vpop.f32.mrb[10].mxu1 }
 0xfe4   :  { %4181 = vst [vmem:[#allocation9 + $0x10] sm:$0xff] %v4157_v39  ;;  %v4160_v4 = vadd.f32 %v4976_v6, %v4439_v40  ;;  %v4151_v35 = vpop.f32.mrb[11].mxu1 }
 0xfe5   :  { %4179 = vst [vmem:[#allocation9] sm:$0xff] %v4149_v28  ;;  %v4152_v54 = vadd.f32 %v4439_v40, %v4151_v35 }
 0xfe6   :  { %4182 = vst [vmem:[#allocation9 + $0x18] sm:$0xff] %v4160_v4 }
 0xfe7   :  { %4180 = vst [vmem:[#allocation9 + $0x8] sm:$0xff] %v4152_v54 }
 0xfe9   :  { %v4979_v9 = vpop.f32.mrb[12].mxu1 }
 0xfea   :  { %v4173_v16 = vadd.f32 %v4979_v9, %v4439_v40  ;;  %v4164_v59 = vpop.f32.mrb[13].mxu1 }
 0xfeb   :  { %v4165_v53 = vadd.f32 %v4439_v40, %v4164_v59  ;;  %v4980_v57 = vpop.f32.mrb[14].mxu1 }
 0xfec   :  { %4185 = vst [vmem:[#allocation9 + $0x30] sm:$0xff] %v4173_v16  ;;  %v4176_v61 = vadd.f32 %v4980_v57, %v4439_v40  ;;  %v4167_v41 = vpop.f32.mrb[15].mxu1 }
 0xfed   :  { %4183 = vst [vmem:[#allocation9 + $0x20] sm:$0xff] %v4165_v53  ;;  %v4168_v2 = vadd.f32 %v4439_v40, %v4167_v41 }
 0xfee   :  { %4186 = vst [vmem:[#allocation9 + $0x38] sm:$0xff] %v4176_v61 }
 0xfef   :  { %4184 = vst [vmem:[#allocation9 + $0x28] sm:$0xff] %v4168_v2 }
 0xff0   :  { %5447 = shalt.err (!%p5444_p7)
}
 0xff1   :  { %s5448_s19 = scalar_lea.hbm %s7083_s16, 1024 }
 0xff2   :  { %p5449_p8 = scmp.ne.s32.totalorder %s7083_s16, %s5448_s19  ;;  %p5452_p9 = scmp.lt.u32.totalorder %s5448_s19, %s7083_s16 }
 0xff4   :  { %p5454_p10 = pnand %p5452_p9, %p5449_p8 }
 0xff6   :  { %5457 = shalt.err (!%p5454_p10)
}
 0xff7   :  { %s5486_s7 = smov 128   ;;  %s5487_s9 = smov 8  }
 0xff8   :  { %4198 = dma.vmem_to_hbm [thread:$0]  %s4193_s28, 1024, %s7083_s16, [#allocation6], %s5486_s7, %s5486_s7, %s5487_s9  }
 0xff9   :  { %5466 = dma.done.wait [#allocation6], 1024  }
 0xffa   :  { %5467 = vsyncadd [#allocation6], 4294966272 }
 0xffb   :  { %4202 = vsyncpa [#allocation5], 1 }
 0xffc   :  { %4203 = vsyncpa [#allocation8], 1 }
 0xffd   :  { %4204 = vsyncpa [#allocation6], 1 }

</bundles_post_ra>
